<compile_context>
chip_gen: v7x
topology: tpu7x:2x2x1
jax: 0.10.0
libtpu: 0.0.40
codegen_flags: <defaults>
</compile_context>

<pallas_src>
import jax
import jax.numpy as jnp
from jax.experimental import pallas as pl
from jax.experimental.pallas import tpu as pltpu

_BN_EPS = 1e-5
_LANE = 128
_VMEM_LIMIT = 32 * 1024 * 1024  # safe on v5e/v6e/v7x; kernels use far less


def _round_up(x, m):
    return (x + m - 1) // m * m


# -----------------------------------------------------------------------------
# Pass 1 kernel: conv as 27 shifted-tap MXU matmuls + bias, plus per-step
# partial BN statistics (sum, sum of squares) per output channel.
# Grid = (N, D, H); each step produces one (W, Cout_pad) output row-slab.
# -----------------------------------------------------------------------------
def _conv_taps_kernel(*refs):
    taps = refs[:9]                  # 9 x (W+2, Cin_pad) bf16, (kd, kh) shifted
    w_ref = refs[9]                  # (27, Cin_pad, Cout_pad) bf16, resident
    b_ref = refs[10]                 # (1, Cout_pad) f32, resident
    y_ref = refs[11]                 # (W, Cout_pad) f32 output block
    st_ref = refs[12]                # (2, Cout_pad) f32 partial stats block

    wp, _ = taps[0].shape
    wd = wp - 2
    coutp = w_ref.shape[-1]

    acc = jnp.zeros((wd, coutp), jnp.float32)
    for i9 in range(9):              # i9 = kd * 3 + kh
        for kw in range(3):
            lhs = taps[i9][pl.ds(kw, wd), :]                  # (W, Cin_pad) bf16
            acc = acc + jnp.dot(lhs, w_ref[i9 * 3 + kw],
                                preferred_element_type=jnp.float32)
    y = acc + b_ref[...]
    y_ref[...] = y
    st_ref[...] = jnp.concatenate(
        [jnp.sum(y, axis=0, keepdims=True),
         jnp.sum(y * y, axis=0, keepdims=True)], axis=0)


def _conv_bias_stats(x_pad, w_mat, bias_row):
    n, dp, hp, wp, cpad = x_pad.shape
    d, h, wd = dp - 2, hp - 2, wp - 2
    coutp = w_mat.shape[-1]

    tap_specs = []
    for kd in range(3):
        for kh in range(3):
            tap_specs.append(pl.BlockSpec(
                (pl.Squeezed(), pl.Squeezed(), pl.Squeezed(), wp, cpad),
                lambda ni, di, hi, _kd=kd, _kh=kh:
                    (ni, di + _kd, hi + _kh, 0, 0)))
    w_spec = pl.BlockSpec((27, cpad, coutp), lambda ni, di, hi: (0, 0, 0))
    b_spec = pl.BlockSpec((1, coutp), lambda ni, di, hi: (0, 0))
    y_spec = pl.BlockSpec(
        (pl.Squeezed(), pl.Squeezed(), pl.Squeezed(), wd, coutp),
        lambda ni, di, hi: (ni, di, hi, 0, 0))
    st_spec = pl.BlockSpec(
        (pl.Squeezed(), pl.Squeezed(), pl.Squeezed(), 2, coutp),
        lambda ni, di, hi: (ni, di, hi, 0, 0))

    flops = 2 * n * d * h * wd * 27 * cpad * coutp
    bytes_accessed = (9 * n * d * h * wp * cpad * 2      # tap reads (bf16)
                      + 27 * cpad * coutp * 2            # weights (bf16)
                      + n * d * h * wd * coutp * 4       # y writes (f32)
                      + n * d * h * 2 * coutp * 4)       # stat writes (f32)

    y, stats = pl.pallas_call(
        _conv_taps_kernel,
        out_shape=(jax.ShapeDtypeStruct((n, d, h, wd, coutp), jnp.float32),
                   jax.ShapeDtypeStruct((n, d, h, 2, coutp), jnp.float32)),
        grid=(n, d, h),
        in_specs=tap_specs + [w_spec, b_spec],
        out_specs=(y_spec, st_spec),
        compiler_params=pltpu.CompilerParams(
            dimension_semantics=("parallel", "parallel", "parallel"),
            vmem_limit_bytes=_VMEM_LIMIT),
        cost_estimate=pl.CostEstimate(flops=flops, transcendentals=0,
                                      bytes_accessed=bytes_accessed),
    )(*([x_pad] * 9), w_mat, bias_row)
    return y, stats


# -----------------------------------------------------------------------------
# Pass 2 kernel: lane-dense gridded  y * scale + shift  ->  ReLU.
# -----------------------------------------------------------------------------
def _bn_relu_kernel(y_ref, ss_ref, o_ref):
    ss = ss_ref[...]                                  # (2, Cout_pad) f32
    o = y_ref[...] * ss[0:1, :] + ss[1:2, :]
    o_ref[...] = jnp.maximum(o, 0.0).astype(o_ref.dtype)


def _bn_relu(y2d, scale_shift, out_dtype, row_tile=512):
    r, cpad = y2d.shape
    tr = min(row_tile, _round_up(r, 16))              # 16: bf16-safe sublanes
    rpad = _round_up(r, tr)
    if rpad != r:
        y2d = jnp.pad(y2d, ((0, rpad - r), (0, 0)))
    out = pl.pallas_call(
        _bn_relu_kernel,
        out_shape=jax.ShapeDtypeStruct((rpad, cpad), out_dtype),
        grid=(rpad // tr,),
        in_specs=[pl.BlockSpec((tr, cpad), lambda i: (i, 0)),
                  pl.BlockSpec((2, cpad), lambda i: (0, 0))],
        out_specs=pl.BlockSpec((tr, cpad), lambda i: (i, 0)),
        compiler_params=pltpu.CompilerParams(
            dimension_semantics=("parallel",),
            vmem_limit_bytes=_VMEM_LIMIT),
    )(y2d, scale_shift)
    return out[:r]


# -----------------------------------------------------------------------------
# One (Conv3d -> BN3d(training stats) -> ReLU) stage.
# -----------------------------------------------------------------------------
def _double_conv_stage(x_ndhwc, w_oidhw, bias, gamma, beta, out_dtype):
    n, d, h, wd, c = x_ndhwc.shape
    cout, cin = w_oidhw.shape[0], w_oidhw.shape[1]
    cpad = _round_up(max(c, cin), _LANE)
    coutp = _round_up(cout, _LANE)

    # Activation: spatial halo of 1 + channel pad to 128 lanes, bf16 for MXU.
    x_pad = jnp.pad(x_ndhwc, ((0, 0), (1, 1), (1, 1), (1, 1),
                              (0, cpad - c))).astype(jnp.bfloat16)

    # Weight (O, I, kD, kH, kW) -> (27, Cin_pad, Cout_pad), tap-major (kd,kh,kw).
    w_mat = jnp.transpose(w_oidhw, (2, 3, 4, 1, 0)).reshape(27, cin, cout)
    w_mat = jnp.pad(w_mat, ((0, 0), (0, cpad - cin),
                            (0, coutp - cout))).astype(jnp.bfloat16)
    bias_row = jnp.pad(bias, (0, coutp - cout)).astype(jnp.float32)[None, :]

    # Pass 1: conv + bias + per-step partial BN stats (heavy work on the MXU).
    y, stats = _conv_bias_stats(x_pad, w_mat, bias_row)

    # Tiny glue: fold partial stats into per-channel scale/shift (all f32).
    tot = jnp.sum(stats, axis=(0, 1, 2))                       # (2, Cout_pad)
    cnt = float(n * d * h * wd)
    mean = tot[0] / cnt
    var = jnp.maximum(tot[1] / cnt - mean * mean, 0.0)          # biased var
    gamma_p = jnp.pad(gamma, (0, coutp - cout)).astype(jnp.float32)
    beta_p = jnp.pad(beta, (0, coutp - cout)).astype(jnp.float32)
    scale = gamma_p * jax.lax.rsqrt(var + _BN_EPS)
    shift = beta_p - mean * scale
    scale_shift = jnp.stack([scale, shift], axis=0)             # (2, Cout_pad)

    # Pass 2: lane-dense gridded normalize + ReLU.
    o2d = _bn_relu(y.reshape(n * d * h * wd, coutp), scale_shift, out_dtype)
    return o2d.reshape(n, d, h, wd, coutp)


def inconv_forward(x_ncdhw, params):
    n, _, d, h, wd = x_ncdhw.shape
    cout = params["w1"].shape[0]
    x = jnp.transpose(x_ncdhw, (0, 2, 3, 4, 1)).astype(jnp.float32)   # NDHWC

    # Stage 1 output stays bf16 / channel-padded so stage 2 consumes it
    # directly (only a spatial zero-pad in between, no repacking round trip).
    y1 = _double_conv_stage(x, params["w1"], params["b1"], params["g1"],
                            params["beta1"], out_dtype=jnp.bfloat16)
    y2 = _double_conv_stage(y1, params["w2"], params["b2"], params["g2"],
                            params["beta2"], out_dtype=jnp.float32)
    y2 = y2[..., :cout]                                   # drop channel pad
    return jnp.transpose(y2, (0, 4, 1, 2, 3))             # back to NCDHW


# -----------------------------------------------------------------------------
# Pure-JAX reference mirroring the PyTorch forward (training-mode BN).  Conv
# operands are cast to bf16 exactly like the kernel's MXU path (f32 accumulate,
# f32 BN/ReLU, bf16 inter-stage activation), so the comparison isolates
# implementation errors rather than bf16 rounding of the inputs.
# -----------------------------------------------------------------------------
def _reference(x_ncdhw, params):
    def stage(x, wt, b, g, beta):
        y = jax.lax.conv_general_dilated(
            x.astype(jnp.bfloat16), wt.astype(jnp.bfloat16),
            window_strides=(1, 1, 1), padding="SAME",
            dimension_numbers=("NCDHW", "OIDHW", "NCDHW"),
            preferred_element_type=jnp.float32)
        y = y + b[None, :, None, None, None]
        mean = jnp.mean(y, axis=(0, 2, 3, 4), keepdims=True)
        var = jnp.mean((y - mean) ** 2, axis=(0, 2, 3, 4), keepdims=True)
        y = (y - mean) * jax.lax.rsqrt(var + _BN_EPS)
        y = y * g[None, :, None, None, None] + beta[None, :, None, None, None]
        return jnp.maximum(y, 0.0)

    y = stage(x_ncdhw.astype(jnp.float32), params["w1"], params["b1"],
              params["g1"], params["beta1"])
    y = y.astype(jnp.bfloat16).astype(jnp.float32)   # bf16 inter-stage storage
    y = stage(y, params["w2"], params["b2"], params["g2"], params["beta2"])
    return y


if __name__ == "__main__":
    key = jax.random.PRNGKey(0)
    in_ch, out_ch = 4, 8
    n, d, h, w = 2, 8, 8, 8
    ks = jax.random.split(key, 8)

    x = jax.random.normal(ks[0], (n, in_ch, d, h, w), dtype=jnp.float32)
    params = dict(
        w1=0.1 * jax.random.normal(ks[1], (out_ch, in_ch, 3, 3, 3), jnp.float32),
        b1=0.05 * jax.random.normal(ks[2], (out_ch,), jnp.float32),
        g1=1.0 + 0.1 * jax.random.normal(ks[3], (out_ch,), jnp.float32),
        beta1=0.1 * jax.random.normal(ks[4], (out_ch,), jnp.float32),
        w2=0.1 * jax.random.normal(ks[5], (out_ch, out_ch, 3, 3, 3), jnp.float32),
        b2=0.05 * jax.random.normal(ks[6], (out_ch,), jnp.float32),
        g2=1.0 + 0.1 * jax.random.normal(ks[7], (out_ch,), jnp.float32),
        beta2=jnp.zeros((out_ch,), jnp.float32),
    )

    out = jax.jit(inconv_forward)(x, params)
    out = jax.block_until_ready(out)
    assert out.shape == (n, out_ch, d, h, w)

    ref = _reference(x, params)
    err = float(jnp.max(jnp.abs(out - ref)))
    assert jnp.allclose(out, ref, atol=1e-2, rtol=1e-2), err
    print("KERNEL_OK")
</pallas_src>

<mosaic_0001>
module attributes {stable_mosaic.version = 11 : i64} {
  func.func @_conv_taps_kernel(%arg0: i32, %arg1: i32, %arg2: i32, %arg3: memref<1x1x1x10x128xbf16, #tpu.memory_space<vmem>>, %arg4: memref<1x1x1x10x128xbf16, #tpu.memory_space<vmem>>, %arg5: memref<1x1x1x10x128xbf16, #tpu.memory_space<vmem>>, %arg6: memref<1x1x1x10x128xbf16, #tpu.memory_space<vmem>>, %arg7: memref<1x1x1x10x128xbf16, #tpu.memory_space<vmem>>, %arg8: memref<1x1x1x10x128xbf16, #tpu.memory_space<vmem>>, %arg9: memref<1x1x1x10x128xbf16, #tpu.memory_space<vmem>>, %arg10: memref<1x1x1x10x128xbf16, #tpu.memory_space<vmem>>, %arg11: memref<1x1x1x10x128xbf16, #tpu.memory_space<vmem>>, %arg12: memref<27x128x128xbf16, #tpu.memory_space<vmem>>, %arg13: memref<1x128xf32, #tpu.memory_space<vmem>>, %arg14: memref<1x1x1x8x128xf32, #tpu.memory_space<vmem>>, %arg15: memref<1x1x1x2x128xf32, #tpu.memory_space<vmem>>) attributes {dimension_semantics = [#tpu.dimension_semantics<parallel>, #tpu.dimension_semantics<parallel>, #tpu.dimension_semantics<parallel>], iteration_bounds = array<i64: 2, 8, 8>, scalar_prefetch = 0 : i64, scratch_operands = 0 : i64, tpu.core_type = #tpu.core_type<tc>, window_params = [{transform_indices = @transform_0, window_bounds = array<i64: 1, 1, 1, 10, 128>}, {transform_indices = @transform_1, window_bounds = array<i64: 1, 1, 1, 10, 128>}, {transform_indices = @transform_2, window_bounds = array<i64: 1, 1, 1, 10, 128>}, {transform_indices = @transform_3, window_bounds = array<i64: 1, 1, 1, 10, 128>}, {transform_indices = @transform_4, window_bounds = array<i64: 1, 1, 1, 10, 128>}, {transform_indices = @transform_5, window_bounds = array<i64: 1, 1, 1, 10, 128>}, {transform_indices = @transform_6, window_bounds = array<i64: 1, 1, 1, 10, 128>}, {transform_indices = @transform_7, window_bounds = array<i64: 1, 1, 1, 10, 128>}, {transform_indices = @transform_8, window_bounds = array<i64: 1, 1, 1, 10, 128>}, {pipeline_mode = #tpu.pipeline_mode<synchronous>, transform_indices = @transform_9, window_bounds = array<i64: 27, 128, 128>}, {pipeline_mode = #tpu.pipeline_mode<synchronous>, transform_indices = @transform_10, window_bounds = array<i64: 1, 128>}, {transform_indices = @transform_11, window_bounds = array<i64: 1, 1, 1, 8, 128>}, {transform_indices = @transform_12, window_bounds = array<i64: 1, 1, 1, 2, 128>}]} {
    %cst = arith.constant 0.000000e+00 : f32
    %0 = vector.broadcast %cst : f32 to vector<8x128xf32>
    %c0 = arith.constant 0 : index
    %c0_0 = arith.constant 0 : index
    %c0_1 = arith.constant 0 : index
    %c0_2 = arith.constant 0 : index
    %c0_3 = arith.constant 0 : index
    %1 = vector.load %arg3[%c0, %c0_0, %c0_1, %c0_2, %c0_3] : memref<1x1x1x10x128xbf16, #tpu.memory_space<vmem>>, vector<1x1x1x8x128xbf16>
    %2 = vector.shape_cast %1 : vector<1x1x1x8x128xbf16> to vector<8x128xbf16>
    %c0_4 = arith.constant 0 : index
    %c0_5 = arith.constant 0 : index
    %c0_6 = arith.constant 0 : index
    %3 = vector.load %arg12[%c0_4, %c0_5, %c0_6] : memref<27x128x128xbf16, #tpu.memory_space<vmem>>, vector<1x128x128xbf16>
    %4 = vector.shape_cast %3 : vector<1x128x128xbf16> to vector<128x128xbf16>
    %cst_7 = arith.constant dense<0.000000e+00> : vector<8x128xf32>
    %5 = tpu.matmul %2, %4, %cst_7 {dimension_numbers = #tpu.dot_dimension_numbers<[1], [0], [0], [1], [0, 0, 1, 1], [], []>} : vector<8x128xbf16>, vector<128x128xbf16>, vector<8x128xf32> -> vector<8x128xf32>
    %6 = arith.addf %0, %5 : vector<8x128xf32>
    %c0_8 = arith.constant 0 : index
    %c0_9 = arith.constant 0 : index
    %c0_10 = arith.constant 0 : index
    %c1 = arith.constant 1 : index
    %c0_11 = arith.constant 0 : index
    %7 = vector.load %arg3[%c0_8, %c0_9, %c0_10, %c1, %c0_11] : memref<1x1x1x10x128xbf16, #tpu.memory_space<vmem>>, vector<1x1x1x8x128xbf16>
    %8 = vector.shape_cast %7 : vector<1x1x1x8x128xbf16> to vector<8x128xbf16>
    %c1_12 = arith.constant 1 : index
    %c0_13 = arith.constant 0 : index
    %c0_14 = arith.constant 0 : index
    %9 = vector.load %arg12[%c1_12, %c0_13, %c0_14] : memref<27x128x128xbf16, #tpu.memory_space<vmem>>, vector<1x128x128xbf16>
    %10 = vector.shape_cast %9 : vector<1x128x128xbf16> to vector<128x128xbf16>
    %cst_15 = arith.constant dense<0.000000e+00> : vector<8x128xf32>
    %11 = tpu.matmul %8, %10, %cst_15 {dimension_numbers = #tpu.dot_dimension_numbers<[1], [0], [0], [1], [0, 0, 1, 1], [], []>} : vector<8x128xbf16>, vector<128x128xbf16>, vector<8x128xf32> -> vector<8x128xf32>
    %12 = arith.addf %6, %11 : vector<8x128xf32>
    %c0_16 = arith.constant 0 : index
    %c0_17 = arith.constant 0 : index
    %c0_18 = arith.constant 0 : index
    %c2 = arith.constant 2 : index
    %c0_19 = arith.constant 0 : index
    %13 = vector.load %arg3[%c0_16, %c0_17, %c0_18, %c2, %c0_19] : memref<1x1x1x10x128xbf16, #tpu.memory_space<vmem>>, vector<1x1x1x8x128xbf16>
    %14 = vector.shape_cast %13 : vector<1x1x1x8x128xbf16> to vector<8x128xbf16>
    %c2_20 = arith.constant 2 : index
    %c0_21 = arith.constant 0 : index
    %c0_22 = arith.constant 0 : index
    %15 = vector.load %arg12[%c2_20, %c0_21, %c0_22] : memref<27x128x128xbf16, #tpu.memory_space<vmem>>, vector<1x128x128xbf16>
    %16 = vector.shape_cast %15 : vector<1x128x128xbf16> to vector<128x128xbf16>
    %cst_23 = arith.constant dense<0.000000e+00> : vector<8x128xf32>
    %17 = tpu.matmul %14, %16, %cst_23 {dimension_numbers = #tpu.dot_dimension_numbers<[1], [0], [0], [1], [0, 0, 1, 1], [], []>} : vector<8x128xbf16>, vector<128x128xbf16>, vector<8x128xf32> -> vector<8x128xf32>
    %18 = arith.addf %12, %17 : vector<8x128xf32>
    %c0_24 = arith.constant 0 : index
    %c0_25 = arith.constant 0 : index
    %c0_26 = arith.constant 0 : index
    %c0_27 = arith.constant 0 : index
    %c0_28 = arith.constant 0 : index
    %19 = vector.load %arg4[%c0_24, %c0_25, %c0_26, %c0_27, %c0_28] : memref<1x1x1x10x128xbf16, #tpu.memory_space<vmem>>, vector<1x1x1x8x128xbf16>
    %20 = vector.shape_cast %19 : vector<1x1x1x8x128xbf16> to vector<8x128xbf16>
    %c3 = arith.constant 3 : index
    %c0_29 = arith.constant 0 : index
    %c0_30 = arith.constant 0 : index
    %21 = vector.load %arg12[%c3, %c0_29, %c0_30] : memref<27x128x128xbf16, #tpu.memory_space<vmem>>, vector<1x128x128xbf16>
    %22 = vector.shape_cast %21 : vector<1x128x128xbf16> to vector<128x128xbf16>
    %cst_31 = arith.constant dense<0.000000e+00> : vector<8x128xf32>
    %23 = tpu.matmul %20, %22, %cst_31 {dimension_numbers = #tpu.dot_dimension_numbers<[1], [0], [0], [1], [0, 0, 1, 1], [], []>} : vector<8x128xbf16>, vector<128x128xbf16>, vector<8x128xf32> -> vector<8x128xf32>
    %24 = arith.addf %18, %23 : vector<8x128xf32>
    %c0_32 = arith.constant 0 : index
    %c0_33 = arith.constant 0 : index
    %c0_34 = arith.constant 0 : index
    %c1_35 = arith.constant 1 : index
    %c0_36 = arith.constant 0 : index
    %25 = vector.load %arg4[%c0_32, %c0_33, %c0_34, %c1_35, %c0_36] : memref<1x1x1x10x128xbf16, #tpu.memory_space<vmem>>, vector<1x1x1x8x128xbf16>
    %26 = vector.shape_cast %25 : vector<1x1x1x8x128xbf16> to vector<8x128xbf16>
    %c4 = arith.constant 4 : index
    %c0_37 = arith.constant 0 : index
    %c0_38 = arith.constant 0 : index
    %27 = vector.load %arg12[%c4, %c0_37, %c0_38] : memref<27x128x128xbf16, #tpu.memory_space<vmem>>, vector<1x128x128xbf16>
    %28 = vector.shape_cast %27 : vector<1x128x128xbf16> to vector<128x128xbf16>
    %cst_39 = arith.constant dense<0.000000e+00> : vector<8x128xf32>
    %29 = tpu.matmul %26, %28, %cst_39 {dimension_numbers = #tpu.dot_dimension_numbers<[1], [0], [0], [1], [0, 0, 1, 1], [], []>} : vector<8x128xbf16>, vector<128x128xbf16>, vector<8x128xf32> -> vector<8x128xf32>
    %30 = arith.addf %24, %29 : vector<8x128xf32>
    %c0_40 = arith.constant 0 : index
    %c0_41 = arith.constant 0 : index
    %c0_42 = arith.constant 0 : index
    %c2_43 = arith.constant 2 : index
    %c0_44 = arith.constant 0 : index
    %31 = vector.load %arg4[%c0_40, %c0_41, %c0_42, %c2_43, %c0_44] : memref<1x1x1x10x128xbf16, #tpu.memory_space<vmem>>, vector<1x1x1x8x128xbf16>
    %32 = vector.shape_cast %31 : vector<1x1x1x8x128xbf16> to vector<8x128xbf16>
    %c5 = arith.constant 5 : index
    %c0_45 = arith.constant 0 : index
    %c0_46 = arith.constant 0 : index
    %33 = vector.load %arg12[%c5, %c0_45, %c0_46] : memref<27x128x128xbf16, #tpu.memory_space<vmem>>, vector<1x128x128xbf16>
    %34 = vector.shape_cast %33 : vector<1x128x128xbf16> to vector<128x128xbf16>
    %cst_47 = arith.constant dense<0.000000e+00> : vector<8x128xf32>
    %35 = tpu.matmul %32, %34, %cst_47 {dimension_numbers = #tpu.dot_dimension_numbers<[1], [0], [0], [1], [0, 0, 1, 1], [], []>} : vector<8x128xbf16>, vector<128x128xbf16>, vector<8x128xf32> -> vector<8x128xf32>
    %36 = arith.addf %30, %35 : vector<8x128xf32>
    %c0_48 = arith.constant 0 : index
    %c0_49 = arith.constant 0 : index
    %c0_50 = arith.constant 0 : index
    %c0_51 = arith.constant 0 : index
    %c0_52 = arith.constant 0 : index
    %37 = vector.load %arg5[%c0_48, %c0_49, %c0_50, %c0_51, %c0_52] : memref<1x1x1x10x128xbf16, #tpu.memory_space<vmem>>, vector<1x1x1x8x128xbf16>
    %38 = vector.shape_cast %37 : vector<1x1x1x8x128xbf16> to vector<8x128xbf16>
    %c6 = arith.constant 6 : index
    %c0_53 = arith.constant 0 : index
    %c0_54 = arith.constant 0 : index
    %39 = vector.load %arg12[%c6, %c0_53, %c0_54] : memref<27x128x128xbf16, #tpu.memory_space<vmem>>, vector<1x128x128xbf16>
    %40 = vector.shape_cast %39 : vector<1x128x128xbf16> to vector<128x128xbf16>
    %cst_55 = arith.constant dense<0.000000e+00> : vector<8x128xf32>
    %41 = tpu.matmul %38, %40, %cst_55 {dimension_numbers = #tpu.dot_dimension_numbers<[1], [0], [0], [1], [0, 0, 1, 1], [], []>} : vector<8x128xbf16>, vector<128x128xbf16>, vector<8x128xf32> -> vector<8x128xf32>
    %42 = arith.addf %36, %41 : vector<8x128xf32>
    %c0_56 = arith.constant 0 : index
    %c0_57 = arith.constant 0 : index
    %c0_58 = arith.constant 0 : index
    %c1_59 = arith.constant 1 : index
    %c0_60 = arith.constant 0 : index
    %43 = vector.load %arg5[%c0_56, %c0_57, %c0_58, %c1_59, %c0_60] : memref<1x1x1x10x128xbf16, #tpu.memory_space<vmem>>, vector<1x1x1x8x128xbf16>
    %44 = vector.shape_cast %43 : vector<1x1x1x8x128xbf16> to vector<8x128xbf16>
    %c7 = arith.constant 7 : index
    %c0_61 = arith.constant 0 : index
    %c0_62 = arith.constant 0 : index
    %45 = vector.load %arg12[%c7, %c0_61, %c0_62] : memref<27x128x128xbf16, #tpu.memory_space<vmem>>, vector<1x128x128xbf16>
    %46 = vector.shape_cast %45 : vector<1x128x128xbf16> to vector<128x128xbf16>
    %cst_63 = arith.constant dense<0.000000e+00> : vector<8x128xf32>
    %47 = tpu.matmul %44, %46, %cst_63 {dimension_numbers = #tpu.dot_dimension_numbers<[1], [0], [0], [1], [0, 0, 1, 1], [], []>} : vector<8x128xbf16>, vector<128x128xbf16>, vector<8x128xf32> -> vector<8x128xf32>
    %48 = arith.addf %42, %47 : vector<8x128xf32>
    %c0_64 = arith.constant 0 : index
    %c0_65 = arith.constant 0 : index
    %c0_66 = arith.constant 0 : index
    %c2_67 = arith.constant 2 : index
    %c0_68 = arith.constant 0 : index
    %49 = vector.load %arg5[%c0_64, %c0_65, %c0_66, %c2_67, %c0_68] : memref<1x1x1x10x128xbf16, #tpu.memory_space<vmem>>, vector<1x1x1x8x128xbf16>
    %50 = vector.shape_cast %49 : vector<1x1x1x8x128xbf16> to vector<8x128xbf16>
    %c8 = arith.constant 8 : index
    %c0_69 = arith.constant 0 : index
    %c0_70 = arith.constant 0 : index
    %51 = vector.load %arg12[%c8, %c0_69, %c0_70] : memref<27x128x128xbf16, #tpu.memory_space<vmem>>, vector<1x128x128xbf16>
    %52 = vector.shape_cast %51 : vector<1x128x128xbf16> to vector<128x128xbf16>
    %cst_71 = arith.constant dense<0.000000e+00> : vector<8x128xf32>
    %53 = tpu.matmul %50, %52, %cst_71 {dimension_numbers = #tpu.dot_dimension_numbers<[1], [0], [0], [1], [0, 0, 1, 1], [], []>} : vector<8x128xbf16>, vector<128x128xbf16>, vector<8x128xf32> -> vector<8x128xf32>
    %54 = arith.addf %48, %53 : vector<8x128xf32>
    %c0_72 = arith.constant 0 : index
    %c0_73 = arith.constant 0 : index
    %c0_74 = arith.constant 0 : index
    %c0_75 = arith.constant 0 : index
    %c0_76 = arith.constant 0 : index
    %55 = vector.load %arg6[%c0_72, %c0_73, %c0_74, %c0_75, %c0_76] : memref<1x1x1x10x128xbf16, #tpu.memory_space<vmem>>, vector<1x1x1x8x128xbf16>
    %56 = vector.shape_cast %55 : vector<1x1x1x8x128xbf16> to vector<8x128xbf16>
    %c9 = arith.constant 9 : index
    %c0_77 = arith.constant 0 : index
    %c0_78 = arith.constant 0 : index
    %57 = vector.load %arg12[%c9, %c0_77, %c0_78] : memref<27x128x128xbf16, #tpu.memory_space<vmem>>, vector<1x128x128xbf16>
    %58 = vector.shape_cast %57 : vector<1x128x128xbf16> to vector<128x128xbf16>
    %cst_79 = arith.constant dense<0.000000e+00> : vector<8x128xf32>
    %59 = tpu.matmul %56, %58, %cst_79 {dimension_numbers = #tpu.dot_dimension_numbers<[1], [0], [0], [1], [0, 0, 1, 1], [], []>} : vector<8x128xbf16>, vector<128x128xbf16>, vector<8x128xf32> -> vector<8x128xf32>
    %60 = arith.addf %54, %59 : vector<8x128xf32>
    %c0_80 = arith.constant 0 : index
    %c0_81 = arith.constant 0 : index
    %c0_82 = arith.constant 0 : index
    %c1_83 = arith.constant 1 : index
    %c0_84 = arith.constant 0 : index
    %61 = vector.load %arg6[%c0_80, %c0_81, %c0_82, %c1_83, %c0_84] : memref<1x1x1x10x128xbf16, #tpu.memory_space<vmem>>, vector<1x1x1x8x128xbf16>
    %62 = vector.shape_cast %61 : vector<1x1x1x8x128xbf16> to vector<8x128xbf16>
    %c10 = arith.constant 10 : index
    %c0_85 = arith.constant 0 : index
    %c0_86 = arith.constant 0 : index
    %63 = vector.load %arg12[%c10, %c0_85, %c0_86] : memref<27x128x128xbf16, #tpu.memory_space<vmem>>, vector<1x128x128xbf16>
    %64 = vector.shape_cast %63 : vector<1x128x128xbf16> to vector<128x128xbf16>
    %cst_87 = arith.constant dense<0.000000e+00> : vector<8x128xf32>
    %65 = tpu.matmul %62, %64, %cst_87 {dimension_numbers = #tpu.dot_dimension_numbers<[1], [0], [0], [1], [0, 0, 1, 1], [], []>} : vector<8x128xbf16>, vector<128x128xbf16>, vector<8x128xf32> -> vector<8x128xf32>
    %66 = arith.addf %60, %65 : vector<8x128xf32>
    %c0_88 = arith.constant 0 : index
    %c0_89 = arith.constant 0 : index
    %c0_90 = arith.constant 0 : index
    %c2_91 = arith.constant 2 : index
    %c0_92 = arith.constant 0 : index
    %67 = vector.load %arg6[%c0_88, %c0_89, %c0_90, %c2_91, %c0_92] : memref<1x1x1x10x128xbf16, #tpu.memory_space<vmem>>, vector<1x1x1x8x128xbf16>
    %68 = vector.shape_cast %67 : vector<1x1x1x8x128xbf16> to vector<8x128xbf16>
    %c11 = arith.constant 11 : index
    %c0_93 = arith.constant 0 : index
    %c0_94 = arith.constant 0 : index
    %69 = vector.load %arg12[%c11, %c0_93, %c0_94] : memref<27x128x128xbf16, #tpu.memory_space<vmem>>, vector<1x128x128xbf16>
    %70 = vector.shape_cast %69 : vector<1x128x128xbf16> to vector<128x128xbf16>
    %cst_95 = arith.constant dense<0.000000e+00> : vector<8x128xf32>
    %71 = tpu.matmul %68, %70, %cst_95 {dimension_numbers = #tpu.dot_dimension_numbers<[1], [0], [0], [1], [0, 0, 1, 1], [], []>} : vector<8x128xbf16>, vector<128x128xbf16>, vector<8x128xf32> -> vector<8x128xf32>
    %72 = arith.addf %66, %71 : vector<8x128xf32>
    %c0_96 = arith.constant 0 : index
    %c0_97 = arith.constant 0 : index
    %c0_98 = arith.constant 0 : index
    %c0_99 = arith.constant 0 : index
    %c0_100 = arith.constant 0 : index
    %73 = vector.load %arg7[%c0_96, %c0_97, %c0_98, %c0_99, %c0_100] : memref<1x1x1x10x128xbf16, #tpu.memory_space<vmem>>, vector<1x1x1x8x128xbf16>
    %74 = vector.shape_cast %73 : vector<1x1x1x8x128xbf16> to vector<8x128xbf16>
    %c12 = arith.constant 12 : index
    %c0_101 = arith.constant 0 : index
    %c0_102 = arith.constant 0 : index
    %75 = vector.load %arg12[%c12, %c0_101, %c0_102] : memref<27x128x128xbf16, #tpu.memory_space<vmem>>, vector<1x128x128xbf16>
    %76 = vector.shape_cast %75 : vector<1x128x128xbf16> to vector<128x128xbf16>
    %cst_103 = arith.constant dense<0.000000e+00> : vector<8x128xf32>
    %77 = tpu.matmul %74, %76, %cst_103 {dimension_numbers = #tpu.dot_dimension_numbers<[1], [0], [0], [1], [0, 0, 1, 1], [], []>} : vector<8x128xbf16>, vector<128x128xbf16>, vector<8x128xf32> -> vector<8x128xf32>
    %78 = arith.addf %72, %77 : vector<8x128xf32>
    %c0_104 = arith.constant 0 : index
    %c0_105 = arith.constant 0 : index
    %c0_106 = arith.constant 0 : index
    %c1_107 = arith.constant 1 : index
    %c0_108 = arith.constant 0 : index
    %79 = vector.load %arg7[%c0_104, %c0_105, %c0_106, %c1_107, %c0_108] : memref<1x1x1x10x128xbf16, #tpu.memory_space<vmem>>, vector<1x1x1x8x128xbf16>
    %80 = vector.shape_cast %79 : vector<1x1x1x8x128xbf16> to vector<8x128xbf16>
    %c13 = arith.constant 13 : index
    %c0_109 = arith.constant 0 : index
    %c0_110 = arith.constant 0 : index
    %81 = vector.load %arg12[%c13, %c0_109, %c0_110] : memref<27x128x128xbf16, #tpu.memory_space<vmem>>, vector<1x128x128xbf16>
    %82 = vector.shape_cast %81 : vector<1x128x128xbf16> to vector<128x128xbf16>
    %cst_111 = arith.constant dense<0.000000e+00> : vector<8x128xf32>
    %83 = tpu.matmul %80, %82, %cst_111 {dimension_numbers = #tpu.dot_dimension_numbers<[1], [0], [0], [1], [0, 0, 1, 1], [], []>} : vector<8x128xbf16>, vector<128x128xbf16>, vector<8x128xf32> -> vector<8x128xf32>
    %84 = arith.addf %78, %83 : vector<8x128xf32>
    %c0_112 = arith.constant 0 : index
    %c0_113 = arith.constant 0 : index
    %c0_114 = arith.constant 0 : index
    %c2_115 = arith.constant 2 : index
    %c0_116 = arith.constant 0 : index
    %85 = vector.load %arg7[%c0_112, %c0_113, %c0_114, %c2_115, %c0_116] : memref<1x1x1x10x128xbf16, #tpu.memory_space<vmem>>, vector<1x1x1x8x128xbf16>
    %86 = vector.shape_cast %85 : vector<1x1x1x8x128xbf16> to vector<8x128xbf16>
    %c14 = arith.constant 14 : index
    %c0_117 = arith.constant 0 : index
    %c0_118 = arith.constant 0 : index
    %87 = vector.load %arg12[%c14, %c0_117, %c0_118] : memref<27x128x128xbf16, #tpu.memory_space<vmem>>, vector<1x128x128xbf16>
    %88 = vector.shape_cast %87 : vector<1x128x128xbf16> to vector<128x128xbf16>
    %cst_119 = arith.constant dense<0.000000e+00> : vector<8x128xf32>
    %89 = tpu.matmul %86, %88, %cst_119 {dimension_numbers = #tpu.dot_dimension_numbers<[1], [0], [0], [1], [0, 0, 1, 1], [], []>} : vector<8x128xbf16>, vector<128x128xbf16>, vector<8x128xf32> -> vector<8x128xf32>
    %90 = arith.addf %84, %89 : vector<8x128xf32>
    %c0_120 = arith.constant 0 : index
    %c0_121 = arith.constant 0 : index
    %c0_122 = arith.constant 0 : index
    %c0_123 = arith.constant 0 : index
    %c0_124 = arith.constant 0 : index
    %91 = vector.load %arg8[%c0_120, %c0_121, %c0_122, %c0_123, %c0_124] : memref<1x1x1x10x128xbf16, #tpu.memory_space<vmem>>, vector<1x1x1x8x128xbf16>
    %92 = vector.shape_cast %91 : vector<1x1x1x8x128xbf16> to vector<8x128xbf16>
    %c15 = arith.constant 15 : index
    %c0_125 = arith.constant 0 : index
    %c0_126 = arith.constant 0 : index
    %93 = vector.load %arg12[%c15, %c0_125, %c0_126] : memref<27x128x128xbf16, #tpu.memory_space<vmem>>, vector<1x128x128xbf16>
    %94 = vector.shape_cast %93 : vector<1x128x128xbf16> to vector<128x128xbf16>
    %cst_127 = arith.constant dense<0.000000e+00> : vector<8x128xf32>
    %95 = tpu.matmul %92, %94, %cst_127 {dimension_numbers = #tpu.dot_dimension_numbers<[1], [0], [0], [1], [0, 0, 1, 1], [], []>} : vector<8x128xbf16>, vector<128x128xbf16>, vector<8x128xf32> -> vector<8x128xf32>
    %96 = arith.addf %90, %95 : vector<8x128xf32>
    %c0_128 = arith.constant 0 : index
    %c0_129 = arith.constant 0 : index
    %c0_130 = arith.constant 0 : index
    %c1_131 = arith.constant 1 : index
    %c0_132 = arith.constant 0 : index
    %97 = vector.load %arg8[%c0_128, %c0_129, %c0_130, %c1_131, %c0_132] : memref<1x1x1x10x128xbf16, #tpu.memory_space<vmem>>, vector<1x1x1x8x128xbf16>
    %98 = vector.shape_cast %97 : vector<1x1x1x8x128xbf16> to vector<8x128xbf16>
    %c16 = arith.constant 16 : index
    %c0_133 = arith.constant 0 : index
    %c0_134 = arith.constant 0 : index
    %99 = vector.load %arg12[%c16, %c0_133, %c0_134] : memref<27x128x128xbf16, #tpu.memory_space<vmem>>, vector<1x128x128xbf16>
    %100 = vector.shape_cast %99 : vector<1x128x128xbf16> to vector<128x128xbf16>
    %cst_135 = arith.constant dense<0.000000e+00> : vector<8x128xf32>
    %101 = tpu.matmul %98, %100, %cst_135 {dimension_numbers = #tpu.dot_dimension_numbers<[1], [0], [0], [1], [0, 0, 1, 1], [], []>} : vector<8x128xbf16>, vector<128x128xbf16>, vector<8x128xf32> -> vector<8x128xf32>
    %102 = arith.addf %96, %101 : vector<8x128xf32>
    %c0_136 = arith.constant 0 : index
    %c0_137 = arith.constant 0 : index
    %c0_138 = arith.constant 0 : index
    %c2_139 = arith.constant 2 : index
    %c0_140 = arith.constant 0 : index
    %103 = vector.load %arg8[%c0_136, %c0_137, %c0_138, %c2_139, %c0_140] : memref<1x1x1x10x128xbf16, #tpu.memory_space<vmem>>, vector<1x1x1x8x128xbf16>
    %104 = vector.shape_cast %103 : vector<1x1x1x8x128xbf16> to vector<8x128xbf16>
    %c17 = arith.constant 17 : index
    %c0_141 = arith.constant 0 : index
    %c0_142 = arith.constant 0 : index
    %105 = vector.load %arg12[%c17, %c0_141, %c0_142] : memref<27x128x128xbf16, #tpu.memory_space<vmem>>, vector<1x128x128xbf16>
    %106 = vector.shape_cast %105 : vector<1x128x128xbf16> to vector<128x128xbf16>
    %cst_143 = arith.constant dense<0.000000e+00> : vector<8x128xf32>
    %107 = tpu.matmul %104, %106, %cst_143 {dimension_numbers = #tpu.dot_dimension_numbers<[1], [0], [0], [1], [0, 0, 1, 1], [], []>} : vector<8x128xbf16>, vector<128x128xbf16>, vector<8x128xf32> -> vector<8x128xf32>
    %108 = arith.addf %102, %107 : vector<8x128xf32>
    %c0_144 = arith.constant 0 : index
    %c0_145 = arith.constant 0 : index
    %c0_146 = arith.constant 0 : index
    %c0_147 = arith.constant 0 : index
    %c0_148 = arith.constant 0 : index
    %109 = vector.load %arg9[%c0_144, %c0_145, %c0_146, %c0_147, %c0_148] : memref<1x1x1x10x128xbf16, #tpu.memory_space<vmem>>, vector<1x1x1x8x128xbf16>
    %110 = vector.shape_cast %109 : vector<1x1x1x8x128xbf16> to vector<8x128xbf16>
    %c18 = arith.constant 18 : index
    %c0_149 = arith.constant 0 : index
    %c0_150 = arith.constant 0 : index
    %111 = vector.load %arg12[%c18, %c0_149, %c0_150] : memref<27x128x128xbf16, #tpu.memory_space<vmem>>, vector<1x128x128xbf16>
    %112 = vector.shape_cast %111 : vector<1x128x128xbf16> to vector<128x128xbf16>
    %cst_151 = arith.constant dense<0.000000e+00> : vector<8x128xf32>
    %113 = tpu.matmul %110, %112, %cst_151 {dimension_numbers = #tpu.dot_dimension_numbers<[1], [0], [0], [1], [0, 0, 1, 1], [], []>} : vector<8x128xbf16>, vector<128x128xbf16>, vector<8x128xf32> -> vector<8x128xf32>
    %114 = arith.addf %108, %113 : vector<8x128xf32>
    %c0_152 = arith.constant 0 : index
    %c0_153 = arith.constant 0 : index
    %c0_154 = arith.constant 0 : index
    %c1_155 = arith.constant 1 : index
    %c0_156 = arith.constant 0 : index
    %115 = vector.load %arg9[%c0_152, %c0_153, %c0_154, %c1_155, %c0_156] : memref<1x1x1x10x128xbf16, #tpu.memory_space<vmem>>, vector<1x1x1x8x128xbf16>
    %116 = vector.shape_cast %115 : vector<1x1x1x8x128xbf16> to vector<8x128xbf16>
    %c19 = arith.constant 19 : index
    %c0_157 = arith.constant 0 : index
    %c0_158 = arith.constant 0 : index
    %117 = vector.load %arg12[%c19, %c0_157, %c0_158] : memref<27x128x128xbf16, #tpu.memory_space<vmem>>, vector<1x128x128xbf16>
    %118 = vector.shape_cast %117 : vector<1x128x128xbf16> to vector<128x128xbf16>
    %cst_159 = arith.constant dense<0.000000e+00> : vector<8x128xf32>
    %119 = tpu.matmul %116, %118, %cst_159 {dimension_numbers = #tpu.dot_dimension_numbers<[1], [0], [0], [1], [0, 0, 1, 1], [], []>} : vector<8x128xbf16>, vector<128x128xbf16>, vector<8x128xf32> -> vector<8x128xf32>
    %120 = arith.addf %114, %119 : vector<8x128xf32>
    %c0_160 = arith.constant 0 : index
    %c0_161 = arith.constant 0 : index
    %c0_162 = arith.constant 0 : index
    %c2_163 = arith.constant 2 : index
    %c0_164 = arith.constant 0 : index
    %121 = vector.load %arg9[%c0_160, %c0_161, %c0_162, %c2_163, %c0_164] : memref<1x1x1x10x128xbf16, #tpu.memory_space<vmem>>, vector<1x1x1x8x128xbf16>
    %122 = vector.shape_cast %121 : vector<1x1x1x8x128xbf16> to vector<8x128xbf16>
    %c20 = arith.constant 20 : index
    %c0_165 = arith.constant 0 : index
    %c0_166 = arith.constant 0 : index
    %123 = vector.load %arg12[%c20, %c0_165, %c0_166] : memref<27x128x128xbf16, #tpu.memory_space<vmem>>, vector<1x128x128xbf16>
    %124 = vector.shape_cast %123 : vector<1x128x128xbf16> to vector<128x128xbf16>
    %cst_167 = arith.constant dense<0.000000e+00> : vector<8x128xf32>
    %125 = tpu.matmul %122, %124, %cst_167 {dimension_numbers = #tpu.dot_dimension_numbers<[1], [0], [0], [1], [0, 0, 1, 1], [], []>} : vector<8x128xbf16>, vector<128x128xbf16>, vector<8x128xf32> -> vector<8x128xf32>
    %126 = arith.addf %120, %125 : vector<8x128xf32>
    %c0_168 = arith.constant 0 : index
    %c0_169 = arith.constant 0 : index
    %c0_170 = arith.constant 0 : index
    %c0_171 = arith.constant 0 : index
    %c0_172 = arith.constant 0 : index
    %127 = vector.load %arg10[%c0_168, %c0_169, %c0_170, %c0_171, %c0_172] : memref<1x1x1x10x128xbf16, #tpu.memory_space<vmem>>, vector<1x1x1x8x128xbf16>
    %128 = vector.shape_cast %127 : vector<1x1x1x8x128xbf16> to vector<8x128xbf16>
    %c21 = arith.constant 21 : index
    %c0_173 = arith.constant 0 : index
    %c0_174 = arith.constant 0 : index
    %129 = vector.load %arg12[%c21, %c0_173, %c0_174] : memref<27x128x128xbf16, #tpu.memory_space<vmem>>, vector<1x128x128xbf16>
    %130 = vector.shape_cast %129 : vector<1x128x128xbf16> to vector<128x128xbf16>
    %cst_175 = arith.constant dense<0.000000e+00> : vector<8x128xf32>
    %131 = tpu.matmul %128, %130, %cst_175 {dimension_numbers = #tpu.dot_dimension_numbers<[1], [0], [0], [1], [0, 0, 1, 1], [], []>} : vector<8x128xbf16>, vector<128x128xbf16>, vector<8x128xf32> -> vector<8x128xf32>
    %132 = arith.addf %126, %131 : vector<8x128xf32>
    %c0_176 = arith.constant 0 : index
    %c0_177 = arith.constant 0 : index
    %c0_178 = arith.constant 0 : index
    %c1_179 = arith.constant 1 : index
    %c0_180 = arith.constant 0 : index
    %133 = vector.load %arg10[%c0_176, %c0_177, %c0_178, %c1_179, %c0_180] : memref<1x1x1x10x128xbf16, #tpu.memory_space<vmem>>, vector<1x1x1x8x128xbf16>
    %134 = vector.shape_cast %133 : vector<1x1x1x8x128xbf16> to vector<8x128xbf16>
    %c22 = arith.constant 22 : index
    %c0_181 = arith.constant 0 : index
    %c0_182 = arith.constant 0 : index
    %135 = vector.load %arg12[%c22, %c0_181, %c0_182] : memref<27x128x128xbf16, #tpu.memory_space<vmem>>, vector<1x128x128xbf16>
    %136 = vector.shape_cast %135 : vector<1x128x128xbf16> to vector<128x128xbf16>
    %cst_183 = arith.constant dense<0.000000e+00> : vector<8x128xf32>
    %137 = tpu.matmul %134, %136, %cst_183 {dimension_numbers = #tpu.dot_dimension_numbers<[1], [0], [0], [1], [0, 0, 1, 1], [], []>} : vector<8x128xbf16>, vector<128x128xbf16>, vector<8x128xf32> -> vector<8x128xf32>
    %138 = arith.addf %132, %137 : vector<8x128xf32>
    %c0_184 = arith.constant 0 : index
    %c0_185 = arith.constant 0 : index
    %c0_186 = arith.constant 0 : index
    %c2_187 = arith.constant 2 : index
    %c0_188 = arith.constant 0 : index
    %139 = vector.load %arg10[%c0_184, %c0_185, %c0_186, %c2_187, %c0_188] : memref<1x1x1x10x128xbf16, #tpu.memory_space<vmem>>, vector<1x1x1x8x128xbf16>
    %140 = vector.shape_cast %139 : vector<1x1x1x8x128xbf16> to vector<8x128xbf16>
    %c23 = arith.constant 23 : index
    %c0_189 = arith.constant 0 : index
    %c0_190 = arith.constant 0 : index
    %141 = vector.load %arg12[%c23, %c0_189, %c0_190] : memref<27x128x128xbf16, #tpu.memory_space<vmem>>, vector<1x128x128xbf16>
    %142 = vector.shape_cast %141 : vector<1x128x128xbf16> to vector<128x128xbf16>
    %cst_191 = arith.constant dense<0.000000e+00> : vector<8x128xf32>
    %143 = tpu.matmul %140, %142, %cst_191 {dimension_numbers = #tpu.dot_dimension_numbers<[1], [0], [0], [1], [0, 0, 1, 1], [], []>} : vector<8x128xbf16>, vector<128x128xbf16>, vector<8x128xf32> -> vector<8x128xf32>
    %144 = arith.addf %138, %143 : vector<8x128xf32>
    %c0_192 = arith.constant 0 : index
    %c0_193 = arith.constant 0 : index
    %c0_194 = arith.constant 0 : index
    %c0_195 = arith.constant 0 : index
    %c0_196 = arith.constant 0 : index
    %145 = vector.load %arg11[%c0_192, %c0_193, %c0_194, %c0_195, %c0_196] : memref<1x1x1x10x128xbf16, #tpu.memory_space<vmem>>, vector<1x1x1x8x128xbf16>
    %146 = vector.shape_cast %145 : vector<1x1x1x8x128xbf16> to vector<8x128xbf16>
    %c24 = arith.constant 24 : index
    %c0_197 = arith.constant 0 : index
    %c0_198 = arith.constant 0 : index
    %147 = vector.load %arg12[%c24, %c0_197, %c0_198] : memref<27x128x128xbf16, #tpu.memory_space<vmem>>, vector<1x128x128xbf16>
    %148 = vector.shape_cast %147 : vector<1x128x128xbf16> to vector<128x128xbf16>
    %cst_199 = arith.constant dense<0.000000e+00> : vector<8x128xf32>
    %149 = tpu.matmul %146, %148, %cst_199 {dimension_numbers = #tpu.dot_dimension_numbers<[1], [0], [0], [1], [0, 0, 1, 1], [], []>} : vector<8x128xbf16>, vector<128x128xbf16>, vector<8x128xf32> -> vector<8x128xf32>
    %150 = arith.addf %144, %149 : vector<8x128xf32>
    %c0_200 = arith.constant 0 : index
    %c0_201 = arith.constant 0 : index
    %c0_202 = arith.constant 0 : index
    %c1_203 = arith.constant 1 : index
    %c0_204 = arith.constant 0 : index
    %151 = vector.load %arg11[%c0_200, %c0_201, %c0_202, %c1_203, %c0_204] : memref<1x1x1x10x128xbf16, #tpu.memory_space<vmem>>, vector<1x1x1x8x128xbf16>
    %152 = vector.shape_cast %151 : vector<1x1x1x8x128xbf16> to vector<8x128xbf16>
    %c25 = arith.constant 25 : index
    %c0_205 = arith.constant 0 : index
    %c0_206 = arith.constant 0 : index
    %153 = vector.load %arg12[%c25, %c0_205, %c0_206] : memref<27x128x128xbf16, #tpu.memory_space<vmem>>, vector<1x128x128xbf16>
    %154 = vector.shape_cast %153 : vector<1x128x128xbf16> to vector<128x128xbf16>
    %cst_207 = arith.constant dense<0.000000e+00> : vector<8x128xf32>
    %155 = tpu.matmul %152, %154, %cst_207 {dimension_numbers = #tpu.dot_dimension_numbers<[1], [0], [0], [1], [0, 0, 1, 1], [], []>} : vector<8x128xbf16>, vector<128x128xbf16>, vector<8x128xf32> -> vector<8x128xf32>
    %156 = arith.addf %150, %155 : vector<8x128xf32>
    %c0_208 = arith.constant 0 : index
    %c0_209 = arith.constant 0 : index
    %c0_210 = arith.constant 0 : index
    %c2_211 = arith.constant 2 : index
    %c0_212 = arith.constant 0 : index
    %157 = vector.load %arg11[%c0_208, %c0_209, %c0_210, %c2_211, %c0_212] : memref<1x1x1x10x128xbf16, #tpu.memory_space<vmem>>, vector<1x1x1x8x128xbf16>
    %158 = vector.shape_cast %157 : vector<1x1x1x8x128xbf16> to vector<8x128xbf16>
    %c26 = arith.constant 26 : index
    %c0_213 = arith.constant 0 : index
    %c0_214 = arith.constant 0 : index
    %159 = vector.load %arg12[%c26, %c0_213, %c0_214] : memref<27x128x128xbf16, #tpu.memory_space<vmem>>, vector<1x128x128xbf16>
    %160 = vector.shape_cast %159 : vector<1x128x128xbf16> to vector<128x128xbf16>
    %cst_215 = arith.constant dense<0.000000e+00> : vector<8x128xf32>
    %161 = tpu.matmul %158, %160, %cst_215 {dimension_numbers = #tpu.dot_dimension_numbers<[1], [0], [0], [1], [0, 0, 1, 1], [], []>} : vector<8x128xbf16>, vector<128x128xbf16>, vector<8x128xf32> -> vector<8x128xf32>
    %162 = arith.addf %156, %161 : vector<8x128xf32>
    %c0_216 = arith.constant 0 : index
    %c0_217 = arith.constant 0 : index
    %163 = vector.load %arg13[%c0_216, %c0_217] : memref<1x128xf32, #tpu.memory_space<vmem>>, vector<1x128xf32>
    %164 = vector.broadcast %163 : vector<1x128xf32> to vector<8x128xf32>
    %165 = arith.addf %162, %164 : vector<8x128xf32>
    %c0_218 = arith.constant 0 : index
    %c0_219 = arith.constant 0 : index
    %c0_220 = arith.constant 0 : index
    %c0_221 = arith.constant 0 : index
    %c0_222 = arith.constant 0 : index
    %166 = vector.load %arg14[%c0_218, %c0_219, %c0_220, %c0_221, %c0_222] : memref<1x1x1x8x128xf32, #tpu.memory_space<vmem>>, vector<1x1x1x8x128xf32>
    %167 = vector.shape_cast %166 : vector<1x1x1x8x128xf32> to vector<8x128xf32>
    %168 = vector.shape_cast %165 : vector<8x128xf32> to vector<1x1x1x8x128xf32>
    tpu.vector_store %arg14[%c0_218, %c0_219, %c0_220, %c0_221, %c0_222], %168 {strides = array<i32>} : memref<1x1x1x8x128xf32, #tpu.memory_space<vmem>>, vector<1x1x1x8x128xf32>,
    %cst_223 = arith.constant dense<0.000000e+00> : vector<128xf32>
    %169 = vector.multi_reduction <add>, %165, %cst_223 [0] : vector<8x128xf32> to vector<128xf32>
    %170 = vector.shape_cast %169 : vector<128xf32> to vector<1x128xf32>
    %171 = arith.mulf %165, %165 : vector<8x128xf32>
    %cst_224 = arith.constant dense<0.000000e+00> : vector<128xf32>
    %172 = vector.multi_reduction <add>, %171, %cst_224 [0] : vector<8x128xf32> to vector<128xf32>
    %173 = vector.shape_cast %172 : vector<128xf32> to vector<1x128xf32>
    %174 = tpu.concatenate %170, %173 in 0 : vector<1x128xf32>, vector<1x128xf32> -> vector<2x128xf32>
    %c0_225 = arith.constant 0 : index
    %c0_226 = arith.constant 0 : index
    %c0_227 = arith.constant 0 : index
    %c0_228 = arith.constant 0 : index
    %c0_229 = arith.constant 0 : index
    %175 = vector.load %arg15[%c0_225, %c0_226, %c0_227, %c0_228, %c0_229] : memref<1x1x1x2x128xf32, #tpu.memory_space<vmem>>, vector<1x1x1x2x128xf32>
    %176 = vector.shape_cast %175 : vector<1x1x1x2x128xf32> to vector<2x128xf32>
    %177 = vector.shape_cast %174 : vector<2x128xf32> to vector<1x1x1x2x128xf32>
    tpu.vector_store %arg15[%c0_225, %c0_226, %c0_227, %c0_228, %c0_229], %177 {strides = array<i32>} : memref<1x1x1x2x128xf32, #tpu.memory_space<vmem>>, vector<1x1x1x2x128xf32>,
    return
  }
  func.func @transform_0(%arg0: i32, %arg1: i32, %arg2: i32) -> (i32, i32, i32, i32, i32) {
    %c0_i32 = arith.constant 0 : i32
    %0 = arith.addi %arg1, %c0_i32 : i32
    %c0_i32_0 = arith.constant 0 : i32
    %1 = arith.addi %arg2, %c0_i32_0 : i32
    %c0_i32_1 = arith.constant 0 : i32
    %c0_i32_2 = arith.constant 0 : i32
    %c0_i32_3 = arith.constant 0 : i32
    return %arg0, %0, %1, %c0_i32_1, %c0_i32_2 : i32, i32, i32, i32, i32
  }
  func.func @transform_1(%arg0: i32, %arg1: i32, %arg2: i32) -> (i32, i32, i32, i32, i32) {
    %c0_i32 = arith.constant 0 : i32
    %0 = arith.addi %arg1, %c0_i32 : i32
    %c1_i32 = arith.constant 1 : i32
    %1 = arith.addi %arg2, %c1_i32 : i32
    %c0_i32_0 = arith.constant 0 : i32
    %c0_i32_1 = arith.constant 0 : i32
    %c0_i32_2 = arith.constant 0 : i32
    return %arg0, %0, %1, %c0_i32_0, %c0_i32_1 : i32, i32, i32, i32, i32
  }
  func.func @transform_2(%arg0: i32, %arg1: i32, %arg2: i32) -> (i32, i32, i32, i32, i32) {
    %c0_i32 = arith.constant 0 : i32
    %0 = arith.addi %arg1, %c0_i32 : i32
    %c2_i32 = arith.constant 2 : i32
    %1 = arith.addi %arg2, %c2_i32 : i32
    %c0_i32_0 = arith.constant 0 : i32
    %c0_i32_1 = arith.constant 0 : i32
    %c0_i32_2 = arith.constant 0 : i32
    return %arg0, %0, %1, %c0_i32_0, %c0_i32_1 : i32, i32, i32, i32, i32
  }
  func.func @transform_3(%arg0: i32, %arg1: i32, %arg2: i32) -> (i32, i32, i32, i32, i32) {
    %c1_i32 = arith.constant 1 : i32
    %0 = arith.addi %arg1, %c1_i32 : i32
    %c0_i32 = arith.constant 0 : i32
    %1 = arith.addi %arg2, %c0_i32 : i32
    %c0_i32_0 = arith.constant 0 : i32
    %c0_i32_1 = arith.constant 0 : i32
    %c0_i32_2 = arith.constant 0 : i32
    return %arg0, %0, %1, %c0_i32_0, %c0_i32_1 : i32, i32, i32, i32, i32
  }
  func.func @transform_4(%arg0: i32, %arg1: i32, %arg2: i32) -> (i32, i32, i32, i32, i32) {
    %c1_i32 = arith.constant 1 : i32
    %0 = arith.addi %arg1, %c1_i32 : i32
    %c1_i32_0 = arith.constant 1 : i32
    %1 = arith.addi %arg2, %c1_i32_0 : i32
    %c0_i32 = arith.constant 0 : i32
    %c0_i32_1 = arith.constant 0 : i32
    %c0_i32_2 = arith.constant 0 : i32
    return %arg0, %0, %1, %c0_i32, %c0_i32_1 : i32, i32, i32, i32, i32
  }
  func.func @transform_5(%arg0: i32, %arg1: i32, %arg2: i32) -> (i32, i32, i32, i32, i32) {
    %c1_i32 = arith.constant 1 : i32
    %0 = arith.addi %arg1, %c1_i32 : i32
    %c2_i32 = arith.constant 2 : i32
    %1 = arith.addi %arg2, %c2_i32 : i32
    %c0_i32 = arith.constant 0 : i32
    %c0_i32_0 = arith.constant 0 : i32
    %c0_i32_1 = arith.constant 0 : i32
    return %arg0, %0, %1, %c0_i32, %c0_i32_0 : i32, i32, i32, i32, i32
  }
  func.func @transform_6(%arg0: i32, %arg1: i32, %arg2: i32) -> (i32, i32, i32, i32, i32) {
    %c2_i32 = arith.constant 2 : i32
    %0 = arith.addi %arg1, %c2_i32 : i32
    %c0_i32 = arith.constant 0 : i32
    %1 = arith.addi %arg2, %c0_i32 : i32
    %c0_i32_0 = arith.constant 0 : i32
    %c0_i32_1 = arith.constant 0 : i32
    %c0_i32_2 = arith.constant 0 : i32
    return %arg0, %0, %1, %c0_i32_0, %c0_i32_1 : i32, i32, i32, i32, i32
  }
  func.func @transform_7(%arg0: i32, %arg1: i32, %arg2: i32) -> (i32, i32, i32, i32, i32) {
    %c2_i32 = arith.constant 2 : i32
    %0 = arith.addi %arg1, %c2_i32 : i32
    %c1_i32 = arith.constant 1 : i32
    %1 = arith.addi %arg2, %c1_i32 : i32
    %c0_i32 = arith.constant 0 : i32
    %c0_i32_0 = arith.constant 0 : i32
    %c0_i32_1 = arith.constant 0 : i32
    return %arg0, %0, %1, %c0_i32, %c0_i32_0 : i32, i32, i32, i32, i32
  }
  func.func @transform_8(%arg0: i32, %arg1: i32, %arg2: i32) -> (i32, i32, i32, i32, i32) {
    %c2_i32 = arith.constant 2 : i32
    %0 = arith.addi %arg1, %c2_i32 : i32
    %c2_i32_0 = arith.constant 2 : i32
    %1 = arith.addi %arg2, %c2_i32_0 : i32
    %c0_i32 = arith.constant 0 : i32
    %c0_i32_1 = arith.constant 0 : i32
    %c0_i32_2 = arith.constant 0 : i32
    return %arg0, %0, %1, %c0_i32, %c0_i32_1 : i32, i32, i32, i32, i32
  }
  func.func @transform_9(%arg0: i32, %arg1: i32, %arg2: i32) -> (i32, i32, i32) {
    %c0_i32 = arith.constant 0 : i32
    %c0_i32_0 = arith.constant 0 : i32
    %c0_i32_1 = arith.constant 0 : i32
    %c0_i32_2 = arith.constant 0 : i32
    return %c0_i32, %c0_i32_0, %c0_i32_1 : i32, i32, i32
  }
  func.func @transform_10(%arg0: i32, %arg1: i32, %arg2: i32) -> (i32, i32) {
    %c0_i32 = arith.constant 0 : i32
    %c0_i32_0 = arith.constant 0 : i32
    %c0_i32_1 = arith.constant 0 : i32
    return %c0_i32, %c0_i32_0 : i32, i32
  }
  func.func @transform_11(%arg0: i32, %arg1: i32, %arg2: i32) -> (i32, i32, i32, i32, i32) {
    %c0_i32 = arith.constant 0 : i32
    %c0_i32_0 = arith.constant 0 : i32
    %c0_i32_1 = arith.constant 0 : i32
    return %arg0, %arg1, %arg2, %c0_i32, %c0_i32_0 : i32, i32, i32, i32, i32
  }
  func.func @transform_12(%arg0: i32, %arg1: i32, %arg2: i32) -> (i32, i32, i32, i32, i32) {
    %c0_i32 = arith.constant 0 : i32
    %c0_i32_0 = arith.constant 0 : i32
    %c0_i32_1 = arith.constant 0 : i32
    return %arg0, %arg1, %arg2, %c0_i32, %c0_i32_0 : i32, i32, i32, i32, i32
  }
}

module attributes {stable_mosaic.version = 11 : i64} {
  func.func @_bn_relu_kernel(%arg0: i32, %arg1: memref<512x128xf32, #tpu.memory_space<vmem>>, %arg2: memref<2x128xf32, #tpu.memory_space<vmem>>, %arg3: memref<512x128xbf16, #tpu.memory_space<vmem>>) attributes {dimension_semantics = [#tpu.dimension_semantics<parallel>], iteration_bounds = array<i64: 2>, scalar_prefetch = 0 : i64, scratch_operands = 0 : i64, tpu.core_type = #tpu.core_type<tc>, window_params = [{transform_indices = @transform_0, window_bounds = array<i64: 512, 128>}, {pipeline_mode = #tpu.pipeline_mode<synchronous>, transform_indices = @transform_1, window_bounds = array<i64: 2, 128>}, {transform_indices = @transform_2, window_bounds = array<i64: 512, 128>}]} {
    %c0 = arith.constant 0 : index
    %c0_0 = arith.constant 0 : index
    %0 = vector.load %arg2[%c0, %c0_0] : memref<2x128xf32, #tpu.memory_space<vmem>>, vector<2x128xf32>
    %c0_1 = arith.constant 0 : index
    %c0_2 = arith.constant 0 : index
    %1 = vector.load %arg1[%c0_1, %c0_2] : memref<512x128xf32, #tpu.memory_space<vmem>>, vector<512x128xf32>
    %2 = vector.extract_strided_slice %0 {offsets = [0, 0], sizes = [1, 128], strides = [1, 1]} : vector<2x128xf32> to vector<1x128xf32>
    %3 = vector.broadcast %2 : vector<1x128xf32> to vector<512x128xf32>
    %4 = arith.mulf %1, %3 : vector<512x128xf32>
    %5 = vector.extract_strided_slice %0 {offsets = [1, 0], sizes = [1, 128], strides = [1, 1]} : vector<2x128xf32> to vector<1x128xf32>
    %6 = vector.broadcast %5 : vector<1x128xf32> to vector<512x128xf32>
    %7 = arith.addf %4, %6 : vector<512x128xf32>
    %cst = arith.constant 0.000000e+00 : f32
    %8 = vector.broadcast %cst : f32 to vector<512x128xf32>
    %9 = arith.maximumf %7, %8 : vector<512x128xf32>
    %10 = arith.truncf %9 : vector<512x128xf32> to vector<512x128xbf16>
    %c0_3 = arith.constant 0 : index
    %c0_4 = arith.constant 0 : index
    %11 = vector.load %arg3[%c0_3, %c0_4] : memref<512x128xbf16, #tpu.memory_space<vmem>>, vector<512x128xbf16>
    tpu.vector_store %arg3[%c0_3, %c0_4], %10 {strides = array<i32>} : memref<512x128xbf16, #tpu.memory_space<vmem>>, vector<512x128xbf16>,
    return
  }
  func.func @transform_0(%arg0: i32) -> (i32, i32) {
    %c0_i32 = arith.constant 0 : i32
    %c0_i32_0 = arith.constant 0 : i32
    return %arg0, %c0_i32 : i32, i32
  }
  func.func @transform_1(%arg0: i32) -> (i32, i32) {
    %c0_i32 = arith.constant 0 : i32
    %c0_i32_0 = arith.constant 0 : i32
    %c0_i32_1 = arith.constant 0 : i32
    return %c0_i32, %c0_i32_0 : i32, i32
  }
  func.func @transform_2(%arg0: i32) -> (i32, i32) {
    %c0_i32 = arith.constant 0 : i32
    %c0_i32_0 = arith.constant 0 : i32
    return %arg0, %c0_i32 : i32, i32
  }
}

module attributes {stable_mosaic.version = 11 : i64} {
  func.func @_bn_relu_kernel(%arg0: i32, %arg1: memref<512x128xf32, #tpu.memory_space<vmem>>, %arg2: memref<2x128xf32, #tpu.memory_space<vmem>>, %arg3: memref<512x128xf32, #tpu.memory_space<vmem>>) attributes {dimension_semantics = [#tpu.dimension_semantics<parallel>], iteration_bounds = array<i64: 2>, scalar_prefetch = 0 : i64, scratch_operands = 0 : i64, tpu.core_type = #tpu.core_type<tc>, window_params = [{transform_indices = @transform_0, window_bounds = array<i64: 512, 128>}, {pipeline_mode = #tpu.pipeline_mode<synchronous>, transform_indices = @transform_1, window_bounds = array<i64: 2, 128>}, {transform_indices = @transform_2, window_bounds = array<i64: 512, 128>}]} {
    %c0 = arith.constant 0 : index
    %c0_0 = arith.constant 0 : index
    %0 = vector.load %arg2[%c0, %c0_0] : memref<2x128xf32, #tpu.memory_space<vmem>>, vector<2x128xf32>
    %c0_1 = arith.constant 0 : index
    %c0_2 = arith.constant 0 : index
    %1 = vector.load %arg1[%c0_1, %c0_2] : memref<512x128xf32, #tpu.memory_space<vmem>>, vector<512x128xf32>
    %2 = vector.extract_strided_slice %0 {offsets = [0, 0], sizes = [1, 128], strides = [1, 1]} : vector<2x128xf32> to vector<1x128xf32>
    %3 = vector.broadcast %2 : vector<1x128xf32> to vector<512x128xf32>
    %4 = arith.mulf %1, %3 : vector<512x128xf32>
    %5 = vector.extract_strided_slice %0 {offsets = [1, 0], sizes = [1, 128], strides = [1, 1]} : vector<2x128xf32> to vector<1x128xf32>
    %6 = vector.broadcast %5 : vector<1x128xf32> to vector<512x128xf32>
    %7 = arith.addf %4, %6 : vector<512x128xf32>
    %cst = arith.constant 0.000000e+00 : f32
    %8 = vector.broadcast %cst : f32 to vector<512x128xf32>
    %9 = arith.maximumf %7, %8 : vector<512x128xf32>
    %c0_3 = arith.constant 0 : index
    %c0_4 = arith.constant 0 : index
    %10 = vector.load %arg3[%c0_3, %c0_4] : memref<512x128xf32, #tpu.memory_space<vmem>>, vector<512x128xf32>
    tpu.vector_store %arg3[%c0_3, %c0_4], %9 {strides = array<i32>} : memref<512x128xf32, #tpu.memory_space<vmem>>, vector<512x128xf32>,
    return
  }
  func.func @transform_0(%arg0: i32) -> (i32, i32) {
    %c0_i32 = arith.constant 0 : i32
    %c0_i32_0 = arith.constant 0 : i32
    return %arg0, %c0_i32 : i32, i32
  }
  func.func @transform_1(%arg0: i32) -> (i32, i32) {
    %c0_i32 = arith.constant 0 : i32
    %c0_i32_0 = arith.constant 0 : i32
    %c0_i32_1 = arith.constant 0 : i32
    return %c0_i32, %c0_i32_0 : i32, i32
  }
  func.func @transform_2(%arg0: i32) -> (i32, i32) {
    %c0_i32 = arith.constant 0 : i32
    %c0_i32_0 = arith.constant 0 : i32
    return %arg0, %c0_i32 : i32, i32
  }
}

</mosaic_0001>

<bundles_post_ra>
// kernel: inconv_forward.5
= control target key start
LH: loop header
LB: loop body
LE: loop exit
PB: predicated region body
PF: predicated region fallthrough
CT: control target
= control target key end

     0   :  { %s1149_s9 = smov 0   ;;  %s1405_s0 = inlined_call_operand.vmem [shape: f32[1024,128], index: 0, kind: input, shape index: {}]   ;;  %s1406_s1 = inlined_call_operand.vmem [shape: f32[2,128], index: 1, kind: input, shape index: {}]   ;;  %s1407_s2 = inlined_call_operand.vmem [shape: bf16[1024,128], index: 2, kind: output, shape index: {}]  }
   0x1 LB: > { %s788_s10 = sadd.s32 4294967295, %s1132_s9   ;;  %p792_p0 = scmp.ge.s32.totalorder %s1132_s9, 1  ;;  %s1132_s9 = sphi %s1149_s9, %s12_s9  }
   0x2   : > { %p113_p1 = scmp.lt.s32.totalorder %s1132_s9, 3 }
   0x4   : > { %p114_p2 = pnand %p792_p0, %p113_p1 }
   0x5   : > { %s793_s11 = sshll.u32 (!%p114_p2), %s788_s10, 6  ;;  %v212_v0 = vlaneseq (!%p114_p2)  ;;  %v147_v2 = vld [vmem:[%s1406_s1] sm:$0x3] (!%p114_p2) }
   0x6   : > { %117 = sbr.rel (%p114_p2) target bundleno = 79 (0x4f), region = 28  ;;  %p136_p3 = scmp.lt.s32.totalorder (!%p114_p2), %s793_s11, 127 }
   0x7   : > { %v213_v1 = vshrl.u32 (!%p114_p2), %v212_v0, 7 }
   0x9   : > { %v214_v3 = vsub.s32 (!%p114_p2), 0, %v213_v1  ;;  %v282_v4 = vsub.s32 (!%p114_p2), 1, %v213_v1 }
   0xb   : > { %v1168_v5 = vrot.slane (!%p114_p2), %v147_v2, %v214_v3  ;;  %v1170_v6 = vrot.slane (!%p114_p2), %v147_v2, %v282_v4 }
   0xd   : > { %s1409_s11 = smov (!%p136_p3, %s793_s11), 127 }
   0xe   : > { %s794_s14 = sshll.u32 %s1409_s11, 3  ;;  %s796_s18 = sshll.u32 %s1409_s11, 2 }
   0xf   : > { %s1166_s17 = scalar_lea.vmem %s1405_s0, %s794_s14  ;;  %s1202_s21 = scalar_lea.vmem %s1407_s2, %s796_s18 }
  0x10   : > { %v148_v7 = vld [vmem:[%s1166_s17] sm:$0xff]  ;;  %v149_v8 = vld [vmem:[%s1166_s17 + $0x8] sm:$0xff]  ;;  %v150_v9 = vld [vmem:[%s1166_s17 + $0x10] sm:$0xff] }
  0x11   : > { %v216_v10 = vmul.f32 %v1168_v5, %v148_v7  ;;  %v217_v11 = vmul.f32 %v1168_v5, %v149_v8  ;;  %v151_v12 = vld [vmem:[%s1166_s17 + $0x18] sm:$0xff]  ;;  %v218_v13 = vmul.f32 %v1168_v5, %v150_v9  ;;  %v152_v14 = vld [vmem:[%s1166_s17 + $0x20] sm:$0xff]  ;;  %v153_v15 = vld [vmem:[%s1166_s17 + $0x28] sm:$0xff] }
  0x12   : > { %v219_v16 = vmul.f32 %v1168_v5, %v151_v12  ;;  %v220_v17 = vmul.f32 %v1168_v5, %v152_v14  ;;  %v221_v18 = vmul.f32 %v1168_v5, %v153_v15  ;;  %v154_v19 = vld [vmem:[%s1166_s17 + $0x30] sm:$0xff]  ;;  %v155_v20 = vld [vmem:[%s1166_s17 + $0x38] sm:$0xff]  ;;  %v156_v29 = vld [vmem:[%s1166_s17 + $0x40] sm:$0xff] }
  0x13   : > { %v284_v21 = vadd.f32 %v1170_v6, %v216_v10  ;;  %v285_v22 = vadd.f32 %v1170_v6, %v217_v11  ;;  %v286_v23 = vadd.f32 %v1170_v6, %v218_v13  ;;  %v222_v24 = vmul.f32 %v1168_v5, %v154_v19  ;;  %v157_v30 = vld [vmem:[%s1166_s17 + $0x48] sm:$0xff]  ;;  %v158_v35 = vld [vmem:[%s1166_s17 + $0x50] sm:$0xff]  ;;  %v159_v40 = vld [vmem:[%s1166_s17 + $0x58] sm:$0xff] }
  0x14   : > { %v287_v25 = vadd.f32 %v1170_v6, %v219_v16  ;;  %v288_v26 = vadd.f32 %v1170_v6, %v220_v17  ;;  %v289_v27 = vadd.f32 %v1170_v6, %v221_v18  ;;  %v223_v28 = vmul.f32 %v1168_v5, %v155_v20  ;;  %v160_v41 = vld [vmem:[%s1166_s17 + $0x60] sm:$0xff]  ;;  %v161_v46 = vld [vmem:[%s1166_s17 + $0x68] sm:$0xff]  ;;  %v162_v47 = vld [vmem:[%s1166_s17 + $0x70] sm:$0xff] }
  0x15   : > { %v348_v31 = vmax.f32 %v284_v21, 0.0  ;;  %v349_v32 = vmax.f32 %v285_v22, 0.0  ;;  %v350_v33 = vmax.f32 %v286_v23, 0.0  ;;  %v290_v34 = vadd.f32 %v1170_v6, %v222_v24  ;;  %v163_v56 = vld [vmem:[%s1166_s17 + $0x78] sm:$0xff]  ;;  %v164_v61 = vld [vmem:[%s1166_s17 + $0x80] sm:$0xff]  ;;  %v165_v2 = vld [vmem:[%s1166_s17 + $0x88] sm:$0xff] }
  0x16   : > { %v351_v36 = vmax.f32 %v287_v25, 0.0  ;;  %v352_v37 = vmax.f32 %v288_v26, 0.0  ;;  %v353_v38 = vmax.f32 %v289_v27, 0.0  ;;  %v291_v39 = vadd.f32 %v1170_v6, %v223_v28  ;;  %v166_v9 = vld [vmem:[%s1166_s17 + $0x90] sm:$0xff]  ;;  %v167_v10 = vld [vmem:[%s1166_s17 + $0x98] sm:$0xff]  ;;  %v168_v15 = vld [vmem:[%s1166_s17 + $0xa0] sm:$0xff] }
  0x17   : > { %v930_v42 = vpack.c.bf16 %v349_v32, %v348_v31  ;;  %v354_v43 = vmax.f32 %v290_v34, 0.0  ;;  %v224_v44 = vmul.f32 %v1168_v5, %v156_v29  ;;  %v225_v45 = vmul.f32 %v1168_v5, %v157_v30  ;;  %v169_v20 = vld [vmem:[%s1166_s17 + $0xa8] sm:$0xff]  ;;  %v170_v25 = vld [vmem:[%s1166_s17 + $0xb0] sm:$0xff]  ;;  %v171_v30 = vld [vmem:[%s1166_s17 + $0xb8] sm:$0xff] }
  0x18   : > { %v935_v48 = vpack.c.bf16 %v351_v36, %v350_v33  ;;  %v940_v49 = vpack.c.bf16 %v353_v38, %v352_v37  ;;  %v355_v50 = vmax.f32 %v291_v39, 0.0  ;;  %v226_v51 = vmul.f32 %v1168_v5, %v158_v35  ;;  %v172_v35 = vld [vmem:[%s1166_s17 + $0xc0] sm:$0xff] }
  0x19   : > { %931 = vst [vmem:[%s1202_s21] sm:$0xff] %v930_v42   ;;  %v292_v52 = vadd.f32 %v1170_v6, %v224_v44  ;;  %v293_v53 = vadd.f32 %v1170_v6, %v225_v45  ;;  %v227_v54 = vmul.f32 %v1168_v5, %v159_v40  ;;  %v228_v55 = vmul.f32 %v1168_v5, %v160_v41  ;;  %v173_v40 = vld [vmem:[%s1166_s17 + $0xc8] sm:$0xff]  ;;  %v174_v45 = vld [vmem:[%s1166_s17 + $0xd0] sm:$0xff] }
  0x1a   : > { %1087 = vst [vmem:[%s1202_s21 + $0x8] sm:$0xff] %v935_v48   ;;  %1088 = vst [vmem:[%s1202_s21 + $0x10] sm:$0xff] %v940_v49   ;;  %v945_v57 = vpack.c.bf16 %v355_v50, %v354_v43  ;;  %v294_v58 = vadd.f32 %v1170_v6, %v226_v51  ;;  %v229_v59 = vmul.f32 %v1168_v5, %v161_v46  ;;  %v175_v46 = vld [vmem:[%s1166_s17 + $0xd8] sm:$0xff]  ;;  %v176_v51 = vld [vmem:[%s1166_s17 + $0xe0] sm:$0xff] }
  0x1b   : > { %v230_v60 = vmul.f32 %v1168_v5, %v162_v47  ;;  %v356_v62 = vmax.f32 %v292_v52, 0.0  ;;  %v357_v63 = vmax.f32 %v293_v53, 0.0  ;;  %v295_v0 = vadd.f32 %v1170_v6, %v227_v54 }
  0x1c   : > { %v296_v1 = vadd.f32 %v1170_v6, %v228_v55  ;;  %1089 = vst [vmem:[%s1202_s21 + $0x18] sm:$0xff] %v945_v57   ;;  %v358_v3 = vmax.f32 %v294_v58, 0.0  ;;  %v297_v4 = vadd.f32 %v1170_v6, %v229_v59  ;;  %v231_v7 = vmul.f32 %v1168_v5, %v163_v56  ;;  %v177_v56 = vld [vmem:[%s1166_s17 + $0xe8] sm:$0xff] }
  0x1d   : > { %v298_v8 = vadd.f32 %v1170_v6, %v230_v60  ;;  %v950_v11 = vpack.c.bf16 %v357_v63, %v356_v62  ;;  %v359_v12 = vmax.f32 %v295_v0, 0.0  ;;  %v232_v14 = vmul.f32 %v1168_v5, %v164_v61  ;;  %v178_v61 = vld [vmem:[%s1166_s17 + $0xf0] sm:$0xff] }
  0x1e   : > { %v360_v13 = vmax.f32 %v296_v1, 0.0  ;;  %v361_v16 = vmax.f32 %v297_v4, 0.0  ;;  %v299_v17 = vadd.f32 %v1170_v6, %v231_v7  ;;  %v233_v19 = vmul.f32 %v1168_v5, %v165_v2  ;;  %v179_v2 = vld [vmem:[%s1166_s17 + $0xf8] sm:$0xff] }
  0x1f   : > { %v362_v18 = vmax.f32 %v298_v8, 0.0  ;;  %1090 = vst [vmem:[%s1202_s21 + $0x20] sm:$0xff] %v950_v11   ;;  %v955_v21 = vpack.c.bf16 %v359_v12, %v358_v3  ;;  %v300_v22 = vadd.f32 %v1170_v6, %v232_v14  ;;  %v234_v23 = vmul.f32 %v1168_v5, %v166_v9  ;;  %v180_v9 = vld [vmem:[%s1166_s17 + $0x100] sm:$0xff]  ;;  %v181_v14 = vld [vmem:[%s1166_s17 + $0x108] sm:$0xff] }
  0x20   : > { %v235_v24 = vmul.f32 %v1168_v5, %v167_v10  ;;  %v960_v26 = vpack.c.bf16 %v361_v16, %v360_v13  ;;  %v363_v27 = vmax.f32 %v299_v17, 0.0  ;;  %v301_v28 = vadd.f32 %v1170_v6, %v233_v19  ;;  %v182_v19 = vld [vmem:[%s1166_s17 + $0x110] sm:$0xff] }
  0x21   : > { %v236_v29 = vmul.f32 %v1168_v5, %v168_v15  ;;  %1091 = vst [vmem:[%s1202_s21 + $0x28] sm:$0xff] %v955_v21   ;;  %v364_v31 = vmax.f32 %v300_v22, 0.0  ;;  %v302_v32 = vadd.f32 %v1170_v6, %v234_v23  ;;  %v237_v34 = vmul.f32 %v1168_v5, %v169_v20  ;;  %v183_v20 = vld [vmem:[%s1166_s17 + $0x118] sm:$0xff] }
  0x22   : > { %v303_v33 = vadd.f32 %v1170_v6, %v235_v24  ;;  %1092 = vst [vmem:[%s1202_s21 + $0x30] sm:$0xff] %v960_v26   ;;  %v965_v36 = vpack.c.bf16 %v363_v27, %v362_v18  ;;  %v365_v37 = vmax.f32 %v301_v28, 0.0  ;;  %v238_v39 = vmul.f32 %v1168_v5, %v170_v25  ;;  %v184_v25 = vld [vmem:[%s1166_s17 + $0x120] sm:$0xff] }
  0x23   : > { %v304_v38 = vadd.f32 %v1170_v6, %v236_v29  ;;  %v366_v41 = vmax.f32 %v302_v32, 0.0  ;;  %v305_v43 = vadd.f32 %v1170_v6, %v237_v34  ;;  %v239_v44 = vmul.f32 %v1168_v5, %v171_v30  ;;  %v185_v30 = vld [vmem:[%s1166_s17 + $0x128] sm:$0xff] }
  0x24   : > { %v367_v42 = vmax.f32 %v303_v33, 0.0  ;;  %1093 = vst [vmem:[%s1202_s21 + $0x38] sm:$0xff] %v965_v36   ;;  %v970_v47 = vpack.c.bf16 %v365_v37, %v364_v31  ;;  %v306_v49 = vadd.f32 %v1170_v6, %v238_v39  ;;  %v240_v50 = vmul.f32 %v1168_v5, %v172_v35  ;;  %v186_v35 = vld [vmem:[%s1166_s17 + $0x130] sm:$0xff] }
  0x25   : > { %v368_v48 = vmax.f32 %v304_v38, 0.0  ;;  %v369_v53 = vmax.f32 %v305_v43, 0.0  ;;  %v307_v54 = vadd.f32 %v1170_v6, %v239_v44  ;;  %v241_v55 = vmul.f32 %v1168_v5, %v173_v40  ;;  %v187_v40 = vld [vmem:[%s1166_s17 + $0x138] sm:$0xff] }
  0x26   : > { %v975_v52 = vpack.c.bf16 %v367_v42, %v366_v41  ;;  %1094 = vst [vmem:[%s1202_s21 + $0x40] sm:$0xff] %v970_v47   ;;  %v370_v57 = vmax.f32 %v306_v49, 0.0  ;;  %v308_v58 = vadd.f32 %v1170_v6, %v240_v50  ;;  %v242_v59 = vmul.f32 %v1168_v5, %v174_v45  ;;  %v188_v45 = vld [vmem:[%s1166_s17 + $0x140] sm:$0xff]  ;;  %v189_v50 = vld [vmem:[%s1166_s17 + $0x148] sm:$0xff] }
  0x27   : > { %v243_v60 = vmul.f32 %v1168_v5, %v175_v46  ;;  %v980_v62 = vpack.c.bf16 %v369_v53, %v368_v48  ;;  %v371_v63 = vmax.f32 %v307_v54, 0.0  ;;  %v309_v0 = vadd.f32 %v1170_v6, %v241_v55  ;;  %v190_v55 = vld [vmem:[%s1166_s17 + $0x150] sm:$0xff] }
  0x28   : > { %1095 = vst [vmem:[%s1202_s21 + $0x48] sm:$0xff] %v975_v52   ;;  %v244_v1 = vmul.f32 %v1168_v5, %v176_v51  ;;  %v372_v3 = vmax.f32 %v308_v58, 0.0  ;;  %v310_v4 = vadd.f32 %v1170_v6, %v242_v59  ;;  %v245_v8 = vmul.f32 %v1168_v5, %v177_v56  ;;  %v191_v56 = vld [vmem:[%s1166_s17 + $0x158] sm:$0xff] }
  0x29   : > { %v311_v7 = vadd.f32 %v1170_v6, %v243_v60  ;;  %1096 = vst [vmem:[%s1202_s21 + $0x50] sm:$0xff] %v980_v62   ;;  %v985_v10 = vpack.c.bf16 %v371_v63, %v370_v57  ;;  %v373_v11 = vmax.f32 %v309_v0, 0.0  ;;  %v246_v13 = vmul.f32 %v1168_v5, %v178_v61  ;;  %v192_v61 = vld [vmem:[%s1166_s17 + $0x160] sm:$0xff] }
  0x2a   : > { %v312_v12 = vadd.f32 %v1170_v6, %v244_v1  ;;  %v374_v15 = vmax.f32 %v310_v4, 0.0  ;;  %v313_v17 = vadd.f32 %v1170_v6, %v245_v8  ;;  %v247_v18 = vmul.f32 %v1168_v5, %v179_v2  ;;  %v193_v2 = vld [vmem:[%s1166_s17 + $0x168] sm:$0xff] }
  0x2b   : > { %v375_v16 = vmax.f32 %v311_v7, 0.0  ;;  %1097 = vst [vmem:[%s1202_s21 + $0x58] sm:$0xff] %v985_v10   ;;  %v990_v21 = vpack.c.bf16 %v373_v11, %v372_v3  ;;  %v314_v23 = vadd.f32 %v1170_v6, %v246_v13  ;;  %v248_v24 = vmul.f32 %v1168_v5, %v180_v9  ;;  %v194_v9 = vld [vmem:[%s1166_s17 + $0x170] sm:$0xff] }
  0x2c   : > { %v376_v22 = vmax.f32 %v312_v12, 0.0  ;;  %v377_v27 = vmax.f32 %v313_v17, 0.0  ;;  %v315_v28 = vadd.f32 %v1170_v6, %v247_v18  ;;  %v249_v29 = vmul.f32 %v1168_v5, %v181_v14  ;;  %v195_v14 = vld [vmem:[%s1166_s17 + $0x178] sm:$0xff] }
  0x2d   : > { %v995_v26 = vpack.c.bf16 %v375_v16, %v374_v15  ;;  %1098 = vst [vmem:[%s1202_s21 + $0x60] sm:$0xff] %v990_v21   ;;  %v378_v31 = vmax.f32 %v314_v23, 0.0  ;;  %v316_v32 = vadd.f32 %v1170_v6, %v248_v24  ;;  %v250_v33 = vmul.f32 %v1168_v5, %v182_v19  ;;  %v196_v19 = vld [vmem:[%s1166_s17 + $0x180] sm:$0xff]  ;;  %v197_v24 = vld [vmem:[%s1166_s17 + $0x188] sm:$0xff] }
  0x2e   : > { %v251_v34 = vmul.f32 %v1168_v5, %v183_v20  ;;  %v1000_v36 = vpack.c.bf16 %v377_v27, %v376_v22  ;;  %v379_v37 = vmax.f32 %v315_v28, 0.0  ;;  %v317_v38 = vadd.f32 %v1170_v6, %v249_v29  ;;  %v198_v29 = vld [vmem:[%s1166_s17 + $0x190] sm:$0xff] }
  0x2f   : > { %1099 = vst [vmem:[%s1202_s21 + $0x68] sm:$0xff] %v995_v26   ;;  %v252_v39 = vmul.f32 %v1168_v5, %v184_v25  ;;  %v380_v41 = vmax.f32 %v316_v32, 0.0  ;;  %v318_v42 = vadd.f32 %v1170_v6, %v250_v33  ;;  %v253_v44 = vmul.f32 %v1168_v5, %v185_v30  ;;  %v199_v30 = vld [vmem:[%s1166_s17 + $0x198] sm:$0xff] }
  0x30   : > { %v319_v43 = vadd.f32 %v1170_v6, %v251_v34  ;;  %1100 = vst [vmem:[%s1202_s21 + $0x70] sm:$0xff] %v1000_v36   ;;  %v1005_v46 = vpack.c.bf16 %v379_v37, %v378_v31  ;;  %v381_v47 = vmax.f32 %v317_v38, 0.0  ;;  %v254_v49 = vmul.f32 %v1168_v5, %v186_v35  ;;  %v200_v35 = vld [vmem:[%s1166_s17 + $0x1a0] sm:$0xff] }
  0x31   : > { %v320_v48 = vadd.f32 %v1170_v6, %v252_v39  ;;  %v382_v51 = vmax.f32 %v318_v42, 0.0  ;;  %v321_v53 = vadd.f32 %v1170_v6, %v253_v44  ;;  %v255_v54 = vmul.f32 %v1168_v5, %v187_v40  ;;  %v201_v40 = vld [vmem:[%s1166_s17 + $0x1a8] sm:$0xff] }
  0x32   : > { %v383_v52 = vmax.f32 %v319_v43, 0.0  ;;  %1101 = vst [vmem:[%s1202_s21 + $0x78] sm:$0xff] %v1005_v46   ;;  %v1010_v57 = vpack.c.bf16 %v381_v47, %v380_v41  ;;  %v322_v59 = vadd.f32 %v1170_v6, %v254_v49  ;;  %v256_v60 = vmul.f32 %v1168_v5, %v188_v45  ;;  %v202_v45 = vld [vmem:[%s1166_s17 + $0x1b0] sm:$0xff] }
  0x33   : > { %v384_v58 = vmax.f32 %v320_v48, 0.0  ;;  %v385_v63 = vmax.f32 %v321_v53, 0.0  ;;  %v323_v0 = vadd.f32 %v1170_v6, %v255_v54  ;;  %v257_v1 = vmul.f32 %v1168_v5, %v189_v50  ;;  %v203_v50 = vld [vmem:[%s1166_s17 + $0x1b8] sm:$0xff] }
  0x34   : > { %v1015_v62 = vpack.c.bf16 %v383_v52, %v382_v51  ;;  %1102 = vst [vmem:[%s1202_s21 + $0x80] sm:$0xff] %v1010_v57   ;;  %v386_v3 = vmax.f32 %v322_v59, 0.0  ;;  %v324_v4 = vadd.f32 %v1170_v6, %v256_v60  ;;  %v258_v7 = vmul.f32 %v1168_v5, %v190_v55  ;;  %v204_v55 = vld [vmem:[%s1166_s17 + $0x1c0] sm:$0xff]  ;;  %v205_v60 = vld [vmem:[%s1166_s17 + $0x1c8] sm:$0xff] }
  0x35   : > { %v259_v8 = vmul.f32 %v1168_v5, %v191_v56  ;;  %v1020_v10 = vpack.c.bf16 %v385_v63, %v384_v58  ;;  %v387_v11 = vmax.f32 %v323_v0, 0.0  ;;  %v325_v12 = vadd.f32 %v1170_v6, %v257_v1  ;;  %v206_v1 = vld [vmem:[%s1166_s17 + $0x1d0] sm:$0xff] }
  0x36   : > { %1103 = vst [vmem:[%s1202_s21 + $0x88] sm:$0xff] %v1015_v62   ;;  %v260_v13 = vmul.f32 %v1168_v5, %v192_v61  ;;  %v388_v15 = vmax.f32 %v324_v4, 0.0  ;;  %v326_v16 = vadd.f32 %v1170_v6, %v258_v7  ;;  %v261_v18 = vmul.f32 %v1168_v5, %v193_v2  ;;  %v207_v2 = vld [vmem:[%s1166_s17 + $0x1d8] sm:$0xff] }
  0x37   : > { %v327_v17 = vadd.f32 %v1170_v6, %v259_v8  ;;  %1104 = vst [vmem:[%s1202_s21 + $0x90] sm:$0xff] %v1020_v10   ;;  %v1025_v20 = vpack.c.bf16 %v387_v11, %v386_v3  ;;  %v389_v21 = vmax.f32 %v325_v12, 0.0  ;;  %v262_v23 = vmul.f32 %v1168_v5, %v194_v9  ;;  %v208_v9 = vld [vmem:[%s1166_s17 + $0x1e0] sm:$0xff] }
  0x38   : > { %v328_v22 = vadd.f32 %v1170_v6, %v260_v13  ;;  %v390_v25 = vmax.f32 %v326_v16, 0.0  ;;  %v329_v27 = vadd.f32 %v1170_v6, %v261_v18  ;;  %v263_v28 = vmul.f32 %v1168_v5, %v195_v14  ;;  %v209_v14 = vld [vmem:[%s1166_s17 + $0x1e8] sm:$0xff] }
  0x39   : > { %v391_v26 = vmax.f32 %v327_v17, 0.0  ;;  %1105 = vst [vmem:[%s1202_s21 + $0x98] sm:$0xff] %v1025_v20   ;;  %v1030_v31 = vpack.c.bf16 %v389_v21, %v388_v15  ;;  %v330_v33 = vadd.f32 %v1170_v6, %v262_v23  ;;  %v264_v34 = vmul.f32 %v1168_v5, %v196_v19  ;;  %v210_v19 = vld [vmem:[%s1166_s17 + $0x1f0] sm:$0xff] }
  0x3a   : > { %v392_v32 = vmax.f32 %v328_v22, 0.0  ;;  %v393_v37 = vmax.f32 %v329_v27, 0.0  ;;  %v331_v38 = vadd.f32 %v1170_v6, %v263_v28  ;;  %v265_v39 = vmul.f32 %v1168_v5, %v197_v24  ;;  %v211_v24 = vld [vmem:[%s1166_s17 + $0x1f8] sm:$0xff] }
  0x3b   : > { %v1035_v36 = vpack.c.bf16 %v391_v26, %v390_v25  ;;  %1106 = vst [vmem:[%s1202_s21 + $0xa0] sm:$0xff] %v1030_v31   ;;  %v394_v41 = vmax.f32 %v330_v33, 0.0  ;;  %v332_v42 = vadd.f32 %v1170_v6, %v264_v34  ;;  %v266_v43 = vmul.f32 %v1168_v5, %v198_v29 }
  0x3c   : > { %v267_v44 = vmul.f32 %v1168_v5, %v199_v30  ;;  %v1040_v46 = vpack.c.bf16 %v393_v37, %v392_v32  ;;  %v395_v47 = vmax.f32 %v331_v38, 0.0  ;;  %v333_v48 = vadd.f32 %v1170_v6, %v265_v39 }
  0x3d   : > { %1107 = vst [vmem:[%s1202_s21 + $0xa8] sm:$0xff] %v1035_v36   ;;  %v268_v49 = vmul.f32 %v1168_v5, %v200_v35  ;;  %v396_v51 = vmax.f32 %v332_v42, 0.0  ;;  %v334_v52 = vadd.f32 %v1170_v6, %v266_v43  ;;  %v269_v54 = vmul.f32 %v1168_v5, %v201_v40 }
  0x3e   : > { %v335_v53 = vadd.f32 %v1170_v6, %v267_v44  ;;  %1108 = vst [vmem:[%s1202_s21 + $0xb0] sm:$0xff] %v1040_v46   ;;  %v1045_v56 = vpack.c.bf16 %v395_v47, %v394_v41  ;;  %v397_v57 = vmax.f32 %v333_v48, 0.0  ;;  %v270_v59 = vmul.f32 %v1168_v5, %v202_v45 }
  0x3f   : > { %v336_v58 = vadd.f32 %v1170_v6, %v268_v49  ;;  %v398_v61 = vmax.f32 %v334_v52, 0.0  ;;  %v337_v63 = vadd.f32 %v1170_v6, %v269_v54  ;;  %v271_v0 = vmul.f32 %v1168_v5, %v203_v50 }
  0x40   : > { %v399_v62 = vmax.f32 %v335_v53, 0.0  ;;  %1109 = vst [vmem:[%s1202_s21 + $0xb8] sm:$0xff] %v1045_v56   ;;  %v1050_v3 = vpack.c.bf16 %v397_v57, %v396_v51  ;;  %v338_v7 = vadd.f32 %v1170_v6, %v270_v59  ;;  %v272_v8 = vmul.f32 %v1168_v5, %v204_v55 }
  0x41   : > { %v400_v4 = vmax.f32 %v336_v58, 0.0  ;;  %v401_v11 = vmax.f32 %v337_v63, 0.0  ;;  %v339_v12 = vadd.f32 %v1170_v6, %v271_v0  ;;  %v273_v13 = vmul.f32 %v1168_v5, %v205_v60 }
  0x42   : > { %v1055_v10 = vpack.c.bf16 %v399_v62, %v398_v61  ;;  %1110 = vst [vmem:[%s1202_s21 + $0xc0] sm:$0xff] %v1050_v3   ;;  %v402_v15 = vmax.f32 %v338_v7, 0.0  ;;  %v340_v16 = vadd.f32 %v1170_v6, %v272_v8  ;;  %v274_v17 = vmul.f32 %v1168_v5, %v206_v1 }
  0x43   : > { %v275_v18 = vmul.f32 %v1168_v5, %v207_v2  ;;  %v1060_v20 = vpack.c.bf16 %v401_v11, %v400_v4  ;;  %v403_v21 = vmax.f32 %v339_v12, 0.0  ;;  %v341_v22 = vadd.f32 %v1170_v6, %v273_v13 }
  0x44   : > { %1111 = vst [vmem:[%s1202_s21 + $0xc8] sm:$0xff] %v1055_v10   ;;  %v276_v23 = vmul.f32 %v1168_v5, %v208_v9  ;;  %v404_v25 = vmax.f32 %v340_v16, 0.0  ;;  %v342_v26 = vadd.f32 %v1170_v6, %v274_v17  ;;  %v277_v28 = vmul.f32 %v1168_v5, %v209_v14 }
  0x45   : > { %v343_v27 = vadd.f32 %v1170_v6, %v275_v18  ;;  %1112 = vst [vmem:[%s1202_s21 + $0xd0] sm:$0xff] %v1060_v20   ;;  %v1065_v29 = vpack.c.bf16 %v403_v21, %v402_v15  ;;  %v405_v30 = vmax.f32 %v341_v22, 0.0  ;;  %v278_v32 = vmul.f32 %v1168_v5, %v210_v19 }
  0x46   : > { %v344_v31 = vadd.f32 %v1170_v6, %v276_v23  ;;  %v406_v33 = vmax.f32 %v342_v26, 0.0  ;;  %v345_v35 = vadd.f32 %v1170_v6, %v277_v28  ;;  %v279_v36 = vmul.f32 %v1168_v5, %v211_v24 }
  0x47   : > { %v407_v34 = vmax.f32 %v343_v27, 0.0  ;;  %1113 = vst [vmem:[%s1202_s21 + $0xd8] sm:$0xff] %v1065_v29   ;;  %v1070_v37 = vpack.c.bf16 %v405_v30, %v404_v25  ;;  %v346_v39 = vadd.f32 %v1170_v6, %v278_v32 }
  0x48   : > { %v408_v38 = vmax.f32 %v344_v31, 0.0  ;;  %v409_v41 = vmax.f32 %v345_v35, 0.0  ;;  %v347_v42 = vadd.f32 %v1170_v6, %v279_v36 }
  0x49   : > { %v1075_v40 = vpack.c.bf16 %v407_v34, %v406_v33  ;;  %1114 = vst [vmem:[%s1202_s21 + $0xe0] sm:$0xff] %v1070_v37   ;;  %v410_v43 = vmax.f32 %v346_v39, 0.0 }
  0x4a   : > { %v1080_v44 = vpack.c.bf16 %v409_v41, %v408_v38  ;;  %v411_v45 = vmax.f32 %v347_v42, 0.0 }
  0x4b   : > { %1115 = vst [vmem:[%s1202_s21 + $0xe8] sm:$0xff] %v1075_v40  }
  0x4c   : > { %1116 = vst [vmem:[%s1202_s21 + $0xf0] sm:$0xff] %v1080_v44   ;;  %v1085_v46 = vpack.c.bf16 %v411_v45, %v410_v43 }
  0x4e   : > { %1117 = vst [vmem:[%s1202_s21 + $0xf8] sm:$0xff] %v1085_v46  }
  0x4f PF: > { %s12_s9 = sadd.s32 1, %s1132_s9  }
  0x50   : > { %p9_p4 = scmp.ge.s32.totalorder %s12_s9, 4  }
  0x52   :  { %11 = sbr.rel (!%p9_p4) target bundleno = 1 (0x1), region = 58 }

// kernel: inconv_forward.4
= control target key start
LH: loop header
LB: loop body
LE: loop exit
PB: predicated region body
PF: predicated region fallthrough
CT: control target
= control target key end

     0   :  { %s6340_s21 = smov 0   ;;  %s6342_s22 = smov 0   ;;  %s7507_s0 = inlined_call_operand.vmem [shape: bf16[2,10,10,10,128], index: 0, kind: input, shape index: {}, may-alias: {0,1,2,3,4,5,6,7,8}]   ;;  %s7508_s1 = inlined_call_operand.vmem [shape: bf16[2,10,10,10,128], index: 1, kind: input, shape index: {}, may-alias: {0,1,2,3,4,5,6,7,8}]   ;;  %s7509_s2 = inlined_call_operand.vmem [shape: bf16[2,10,10,10,128], index: 2, kind: input, shape index: {}, may-alias: {0,1,2,3,4,5,6,7,8}]   ;;  %s7510_s3 = inlined_call_operand.vmem [shape: bf16[2,10,10,10,128], index: 3, kind: input, shape index: {}, may-alias: {0,1,2,3,4,5,6,7,8}]   ;;  %s7511_s4 = inlined_call_operand.vmem [shape: bf16[2,10,10,10,128], index: 4, kind: input, shape index: {}, may-alias: {0,1,2,3,4,5,6,7,8}]   ;;  %s7512_s5 = inlined_call_operand.vmem [shape: bf16[2,10,10,10,128], index: 5, kind: input, shape index: {}, may-alias: {0,1,2,3,4,5,6,7,8}]   ;;  %s7513_s6 = inlined_call_operand.vmem [shape: bf16[2,10,10,10,128], index: 6, kind: input, shape index: {}, may-alias: {0,1,2,3,4,5,6,7,8}]   ;;  %s7514_s7 = inlined_call_operand.vmem [shape: bf16[2,10,10,10,128], index: 7, kind: input, shape index: {}, may-alias: {0,1,2,3,4,5,6,7,8}]   ;;  %s7515_s8 = inlined_call_operand.vmem [shape: bf16[2,10,10,10,128], index: 8, kind: input, shape index: {}, may-alias: {0,1,2,3,4,5,6,7,8}]   ;;  %s7516_s9 = inlined_call_operand.vmem [shape: bf16[27,128,128], index: 9, kind: input, shape index: {}]   ;;  %s7517_s10 = inlined_call_operand.vmem [shape: f32[1,128], index: 10, kind: input, shape index: {}]   ;;  %s7518_s11 = inlined_call_operand.vmem [shape: f32[2,8,8,8,128], index: 11, kind: output, shape index: {0}]   ;;  %s7519_s12 = inlined_call_operand.vmem [shape: f32[2,8,8,2,128], index: 12, kind: output, shape index: {1}]  }
   0x1   :  { %7522 = sst [smem:[#allocation7_spill]] %s7507_s0  ;;  %s6344_s23 = smov 0  }
   0x2   :  { %7523 = sst [smem:[#allocation8_spill]] %s7508_s1  ;;  %s6346_s24 = smov 0  }
   0x3   :  { %s6348_s25 = smov 0   ;;  %s6350_s26 = smov 0  }
   0x4   :  { %s6352_s27 = smov 0  }
   0x5 LB: > { %7524 = sst [smem:[#allocation2_spill]] %s6263_s25  ;;  %s35_s28 = sadd.s32 1, %s6259_s24  ;;  %s6271_s27 = sphi %s6352_s27, %s23_s27   ;;  %s6267_s26 = sphi %s6350_s26, %s7535_s26   ;;  %s6263_s25 = sphi %s6348_s25, %s7534_s25   ;;  %s6259_s24 = sphi %s6346_s24, %s7537_s24   ;;  %s6255_s23 = sphi %s6344_s23, %s7532_s23   ;;  %s6251_s22 = sphi %s6342_s22, %s7531_s22   ;;  %s6247_s21 = sphi %s6340_s21, %s7536_s21  }
   0x6   : > { %7525 = sst [smem:[#allocation3_spill]] %s6267_s26  ;;  %p36_p0 = scmp.ge.s32.totalorder %s35_s28, 8 }
   0x7   : > { %s38_s29 = sadd.s32 1, %s6263_s25  ;;  %p4460_p1 = scmp.ge.s32.totalorder %s6271_s27, 1 }
   0x8   : > { %p628_p2 = scmp.lt.s32.totalorder %s6271_s27, 129  ;;  %s7539_s28 = smov (%p36_p0, %s35_s28), 0 }
   0x9   : > { %7526 = sst [smem:[#allocation4_spill]] %s7539_s28  ;;  %s7541_s29 = smov (!%p36_p0, %s38_s29), %s6263_s25 }
   0xa   : > { %p629_p3 = pnand %p4460_p1, %p628_p2  ;;  %p40_p4 = scmp.ge.s32.totalorder %s7541_s29, 8 }
   0xb   : > { %s42_s30 = sadd.s32 1, %s6267_s26  ;;  %v5983_v0 = vld [vmem:[%s7516_s9 + $0x40] sm:$0xff] (!%p629_p3)   ;;  %v6273_v1 = vmov (!%p629_p3), 0.0   ;;  %v5985_v3 = vld [vmem:[%s7516_s9 + $0x48] sm:$0xff] (!%p629_p3)   ;;  %vm6274_vm0 = vmmov (!%p629_p3), 0   ;;  %p813_p6 = scmp.lt.s32.totalorder (!%p629_p3), %s6255_s23, 1 }
   0xc   : > { %s7543_s29 = smov (%p40_p4, %s7541_s29), 0  ;;  %s7545_s30 = smov (!%p40_p4, %s42_s30), %s6267_s26 }
   0xd   : > { %7527 = sst [smem:[#allocation5_spill]] %s7543_s29  ;;  %p44_p5 = scmp.ge.s32.totalorder %s7545_s30, 2  ;;  %5381 = vmatprep.subr.bf16.mxu0 (!%p629_p3), %v6273_v1  ;;  %5401 = vmatprep.subr.bf16.mxu1 (!%p629_p3), %v6273_v1  ;;  %v5984_v2 = vld [vmem:[%s7516_s9] sm:$0xff] (!%p629_p3)   ;;  %v5986_v4 = vld [vmem:[%s7516_s9 + $0x8] sm:$0xff] (!%p629_p3)   ;;  %v5987_v5 = vld [vmem:[%s7516_s9 + $0x50] sm:$0xff] (!%p629_p3)   ;;  %vm4057_vm1 = vcmask (!%p629_p3), 1040384  }
   0xe   : > { %632 = sbr.rel (%p629_p3) target bundleno = 693 (0x2b5), region = 64  ;;  %5382 = vmatpush3.bf16.msra.mxu0 (!%p629_p3), %v5983_v0  ;;  %5397 = vmatprep.mubr.msk.bf16.mxu0 (!%p629_p3), %vm6274_vm0, %v6273_v1  ;;  %p815_p7 = scmp.lt.s32.totalorder (!%p629_p3), %s6251_s22, 9  ;;  %v5988_v6 = vld [vmem:[%s7516_s9 + $0x10] sm:$0xff] (!%p629_p3)   ;;  %v5989_v7 = vld [vmem:[%s7516_s9 + $0x58] sm:$0xff] (!%p629_p3)   ;;  %v5991_v9 = vld [vmem:[%s7516_s9 + $0x60] sm:$0xff] (!%p629_p3)  }
   0xf   : > { %s7547_s30 = smov (%p44_p5, %s7545_s30), 0  ;;  %5402 = vmatpush3.bf16.msra.mxu1 (!%p629_p3), %v5984_v2  ;;  %5383 = vmatprep.subr.bf16.mxu0 (!%p629_p3), %v6273_v1  ;;  %p817_p8 = scmp.lt.s32.totalorder (!%p629_p3), %s6247_s21, 9  ;;  %v5990_v8 = vld [vmem:[%s7516_s9 + $0x18] sm:$0xff] (!%p629_p3)   ;;  %v5992_v10 = vld [vmem:[%s7516_s9 + $0x20] sm:$0xff] (!%p629_p3)   ;;  %v5993_v14 = vld [vmem:[%s7516_s9 + $0x68] sm:$0xff] (!%p629_p3)  }
  0x10   : > { %7528 = sst [smem:[#allocation6_spill]] %s7547_s30  ;;  %5403 = vmatprep.subr.bf16.mxu1 (!%p629_p3), %v6273_v1  ;;  %5417 = vmatprep.mubr.msk.bf16.mxu1 (!%p629_p3), %vm6274_vm0, %v6273_v1  ;;  %s7529_s0 = sld [smem:[#allocation7_spill]] (!%p629_p3)  ;;  %v5994_v15 = vld [vmem:[%s7516_s9 + $0x28] sm:$0xff] (!%p629_p3)   ;;  %v5995_v17 = vld [vmem:[%s7516_s9 + $0x70] sm:$0xff] (!%p629_p3)   ;;  %v5997_v21 = vld [vmem:[%s7516_s9 + $0x78] sm:$0xff] (!%p629_p3)  }
  0x11   : > { %v5996_v18 = vld [vmem:[%s7516_s9 + $0x30] sm:$0xff] (!%p629_p3)   ;;  %v5998_v22 = vld [vmem:[%s7516_s9 + $0x38] sm:$0xff] (!%p629_p3)   ;;  %v6000_v24 = vld [vmem:[%s7516_s9 + $0x80] sm:$0xff] (!%p629_p3)   ;;  %s7530_s1 = sld [smem:[#allocation8_spill]] (!%p629_p3)  ;;  %p956_p13 = scmp.lt.s32.totalorder (!%p629_p3), %s6251_s22, 7 }
  0x12   : > { %5384 = vmatpush3.bf16.msra.mxu0 (!%p629_p3), %v5985_v3  ;;  %v6001_v25 = vld [vmem:[%s7516_s9 + $0xc0] sm:$0xff] (!%p629_p3)   ;;  %v6002_v26 = vld [vmem:[%s7516_s9 + $0x88] sm:$0xff] (!%p629_p3)   ;;  %v6004_v28 = vld [vmem:[%s7516_s9 + $0x90] sm:$0xff] (!%p629_p3)   ;;  %p958_p0 = scmp.lt.s32.totalorder (!%p629_p3), %s6247_s21, 7 }
  0x13   : > { %5404 = vmatpush3.bf16.msra.mxu1 (!%p629_p3), %v5986_v4  ;;  %5385 = vmatprep.subr.bf16.mxu0 (!%p629_p3), %v6273_v1  ;;  %v6003_v27 = vld [vmem:[%s7516_s9 + $0xc8] sm:$0xff] (!%p629_p3)   ;;  %v6005_v29 = vld [vmem:[%s7516_s9 + $0xd0] sm:$0xff] (!%p629_p3)   ;;  %v6006_v30 = vld [vmem:[%s7516_s9 + $0x98] sm:$0xff] (!%p629_p3)  }
  0x14   : > { %5405 = vmatprep.subr.bf16.mxu1 (!%p629_p3), %v6273_v1  ;;  %v6007_v31 = vld [vmem:[%s7516_s9 + $0xd8] sm:$0xff] (!%p629_p3)   ;;  %v6008_v32 = vld [vmem:[%s7516_s9 + $0xa0] sm:$0xff] (!%p629_p3)   ;;  %v6010_v34 = vld [vmem:[%s7516_s9 + $0xa8] sm:$0xff] (!%p629_p3)  }
  0x15   : > { %s7549_s23 = smov (!%p813_p6, %s6255_s23), 1  ;;  %v6009_v33 = vld [vmem:[%s7516_s9 + $0xe0] sm:$0xff]   ;;  %v6011_v35 = vld [vmem:[%s7516_s9 + $0xe8] sm:$0xff]   ;;  %v6012_v36 = vld [vmem:[%s7516_s9 + $0xb0] sm:$0xff]  }
  0x16   : > { %s816_s13 = scalar_select %p815_p7, %s6251_s22, 9  ;;  %5386 = vmatpush3.bf16.msra.mxu0 %v5987_v5  ;;  %v6013_v38 = vld [vmem:[%s7516_s9 + $0xf0] sm:$0xff]   ;;  %v6014_v40 = vld [vmem:[%s7516_s9 + $0xb8] sm:$0xff]   ;;  %v6017_v43 = vld [vmem:[%s7516_s9 + $0x100] sm:$0xff]  }
  0x17   : > { %s818_s19 = scalar_select %p817_p8, %s6247_s21, 9  ;;  %5406 = vmatpush3.bf16.msra.mxu1 %v5988_v6  ;;  %5387 = vmatprep.subr.bf16.mxu0 %v6273_v1  ;;  %v6015_v41 = vld [vmem:[%s7516_s9 + $0xf8] sm:$0xff]   ;;  %v6018_v45 = vld [vmem:[%s7516_s9 + $0x140] sm:$0xff]   ;;  %v6019_v46 = vld [vmem:[%s7516_s9 + $0x108] sm:$0xff]  }
  0x18   : > { %s6422_s18 = smul.u32 20, %s816_s13  ;;  %5407 = vmatprep.subr.bf16.mxu1 %v6273_v1  ;;  %v6020_v47 = vld [vmem:[%s7516_s9 + $0x148] sm:$0xff]   ;;  %v6021_v48 = vld [vmem:[%s7516_s9 + $0x110] sm:$0xff]   ;;  %v6023_v50 = vld [vmem:[%s7516_s9 + $0x118] sm:$0xff]  }
  0x19   : > { %s6427_s20 = smul.u32 200, %s7549_s23  ;;  %s6432_s30 = sshll.u32 %s818_s19, 1  ;;  %v6022_v49 = vld [vmem:[%s7516_s9 + $0x150] sm:$0xff]   ;;  %v6024_v51 = vld [vmem:[%s7516_s9 + $0x158] sm:$0xff]   ;;  %v6025_v54 = vld [vmem:[%s7516_s9 + $0x120] sm:$0xff]  }
  0x1a   : > { %s821_s17 = sadd.s32 %s6422_s18, %s6432_s30  ;;  %5388 = vmatpush3.bf16.msra.mxu0 %v5989_v7  ;;  %v6026_v55 = vld [vmem:[%s7516_s9 + $0x160] sm:$0xff]   ;;  %v6027_v57 = vld [vmem:[%s7516_s9 + $0x128] sm:$0xff]   ;;  %v6029_v59 = vld [vmem:[%s7516_s9 + $0x130] sm:$0xff]  }
  0x1b   : > { %s823_s29 = sadd.s32 %s6427_s20, %s821_s17  ;;  %5408 = vmatpush3.bf16.msra.mxu1 %v5990_v8  ;;  %5389 = vmatprep.subr.bf16.mxu0 %v6273_v1  ;;  %v6028_v58 = vld [vmem:[%s7516_s9 + $0x168] sm:$0xff]   ;;  %v6030_v61 = vld [vmem:[%s7516_s9 + $0x170] sm:$0xff]   ;;  %v6031_v2 = vld [vmem:[%s7516_s9 + $0x138] sm:$0xff]  }
  0x1c   : > { %s4462_s28 = sshll.u32 %s823_s29, 2  ;;  %5409 = vmatprep.subr.bf16.mxu1 %v6273_v1  ;;  %v6032_v4 = vld [vmem:[%s7516_s9 + $0x178] sm:$0xff]   ;;  %v6034_v6 = vld [vmem:[%s7516_s9 + $0x180] sm:$0xff]  }
  0x1d   : > { %s6448_s15 = scalar_lea.vmem %s7529_s0, %s4462_s28  ;;  %s826_s28 = sadd.s32 1, %s6247_s21  ;;  %v6036_v8 = vld [vmem:[%s7516_s9 + $0x1c0] sm:$0xff]  }
  0x1e   : > { %v979_v11 = vld [vmem:[%s6448_s15] sm:$0xf]  ;;  %v6457_v12 = vld [vmem:[%s6448_s15 + $0x4] sm:$0x1]  ;;  %5390 = vmatpush3.bf16.msra.mxu0 %v5991_v9  ;;  %p831_p9 = scmp.lt.s32.totalorder %s826_s28, 9  ;;  %v6037_v9 = vld [vmem:[%s7516_s9 + $0x188] sm:$0xff]  }
  0x1f   : > { %v4501_v13 = vcombine.low %v979_v11, %v6457_v12  ;;  %5410 = vmatpush3.bf16.msra.mxu1 %v5992_v10  ;;  %5391 = vmatprep.subr.bf16.mxu0 %v6273_v1  ;;  %v1203_v37 = vld [vmem:[%s6448_s15] sm:$0xe]  ;;  %v6038_v10 = vld [vmem:[%s7516_s9 + $0x1c8] sm:$0xff]  }
  0x20   : > { %5411 = vmatprep.subr.bf16.mxu1 %v6273_v1  ;;  %s7551_s28 = smov (!%p831_p9, %s826_s28), 9  ;;  %v4534_v39 = vcombine.low %v1203_v37, %v6457_v12  ;;  %v6040_v12 = vld [vmem:[%s7516_s9 + $0x1d0] sm:$0xff]   ;;  %v6058_v37 = vld [vmem:[%s7516_s9 + $0x218] sm:$0xff]  }
  0x21   : > { %v1022_v16 = vshll.u32 %v4501_v13, 16  ;;  %v1020_v19 = vshrl.u32 %v4501_v13, 16  ;;  %s6528_s13 = sshll.u32 %s7551_s28, 1  ;;  %v6041_v13 = vld [vmem:[%s7516_s9 + $0x198] sm:$0xff]  }
  0x22   : > { %5392 = vmatpush3.bf16.msra.mxu0 %v5993_v14  ;;  %s835_s26 = sadd.s32 %s6422_s18, %s6528_s13  ;;  %v1224_v42 = vrot.slane %v4534_v39, 1  ;;  %v6042_v14 = vld [vmem:[%s7516_s9 + $0x1d8] sm:$0xff]   ;;  %v6060_v39 = vld [vmem:[%s7516_s9 + $0x220] sm:$0xff]  }
  0x23   : > { %5412 = vmatpush3.bf16.msra.mxu1 %v5994_v15  ;;  %5393 = vmatprep.subr.bf16.mxu0 %v6273_v1  ;;  %v1024_v20 = vrot.slane %v1022_v16, 1  ;;  %s837_s14 = sadd.s32 %s6427_s20, %s835_s26  ;;  %s841_s26 = sadd.s32 2, %s6247_s21  ;;  %v6043_v15 = vld [vmem:[%s7516_s9 + $0x1a0] sm:$0xff]  }
  0x24   : > { %5413 = vmatprep.subr.bf16.mxu1 %v6273_v1  ;;  %s4464_s29 = sshll.u32 %s837_s14, 2  ;;  %p846_p10 = scmp.lt.s32.totalorder %s841_s26, 9  ;;  %v6044_v16 = vld [vmem:[%s7516_s9 + $0x1e0] sm:$0xff]  }
  0x25   : > { %v1025_v23 = vor.u32 %v1024_v20, %v1020_v19  ;;  %s6562_s16 = scalar_lea.vmem %s7530_s1, %s4464_s29  ;;  %v6045_v19 = vld [vmem:[%s7516_s9 + $0x1a8] sm:$0xff]   ;;  %s7561_s21 = smov (!%p958_p0, %s6247_s21), 7 }
  0x26   : > { %5394 = vmatpush3.bf16.msra.mxu0 %v5995_v17  ;;  %v1315_v44 = vld [vmem:[%s6562_s16] sm:$0xf]  ;;  %v1423_v53 = vld [vmem:[%s6562_s16 + $0x4] sm:$0x1]  ;;  %s7553_s26 = smov (!%p846_p10, %s841_s26), 9 }
  0x27   : > { %5414 = vmatpush3.bf16.msra.mxu1 %v5996_v18  ;;  %5395 = vmatprep.subr.bf16.mxu0 %v6273_v1  ;;  %v1422_v52 = vld [vmem:[%s6562_s16] sm:$0xf]  ;;  %s6645_s25 = sshll.u32 %s7553_s26, 1 }
  0x28   : > { %5415 = vmatprep.subr.bf16.mxu1 %v6273_v1  ;;  %v4583_v56 = vcombine.low %v1422_v52, %v1423_v53  ;;  %v1543_v62 = vld [vmem:[%s6562_s16] sm:$0xe]  ;;  %s850_s29 = sadd.s32 %s6422_s18, %s6645_s25 }
  0x29   : > { %v4608_v3 = vcombine.low %v1543_v62, %v1423_v53  ;;  %s852_s26 = sadd.s32 %s6427_s20, %s850_s29  ;;  %v6070_v52 = vld [vmem:[%s7516_s9 + $0x2c0] sm:$0xff]   ;;  %v6071_v53 = vld [vmem:[%s7516_s9 + $0x288] sm:$0xff]  }
  0x2a   : > { %5396 = vmatpush3.bf16.msra.mxu0 %v5997_v21  ;;  %v1449_v60 = vshll.u32 %v4583_v56, 16  ;;  %v1447_v63 = vshrl.u32 %v4583_v56, 16  ;;  %s4466_s0 = sshll.u32 %s852_s26, 2  ;;  %v6046_v21 = vld [vmem:[%s7516_s9 + $0x1e8] sm:$0xff]   ;;  %v6074_v56 = vld [vmem:[%s7516_s9 + $0x2d0] sm:$0xff]   ;;  %v6078_v62 = vld [vmem:[%s7516_s9 + $0x2e0] sm:$0xff]  }
  0x2b   : > { %5416 = vmatpush3.bf16.msra.mxu1 %v5998_v22  ;;  %5421 = vmatprep.subr.bf16.mxu0 %v6273_v1  ;;  %v1564_v7 = vrot.slane %v4608_v3, 1  ;;  %s6681_s18 = scalar_lea.vmem %s7509_s2, %s4466_s0  ;;  %v6047_v22 = vld [vmem:[%s7516_s9 + $0x1b0] sm:$0xff]   ;;  %s856_s0 = sadd.s32 1, %s6251_s22 }
  0x2c   : > { %5441 = vmatprep.subr.bf16.mxu1 %v6273_v1  ;;  %v1451_v0 = vrot.slane %v1449_v60, 1  ;;  %v1762_v17 = vld [vmem:[%s6681_s18] sm:$0xf]  ;;  %v6693_v18 = vld [vmem:[%s6681_s18 + $0x4] sm:$0x1]  ;;  %p859_p11 = scmp.lt.s32.totalorder %s856_s0, 9 }
  0x2d   : > { %5398 = vmatmul.mubr.bf16.vlgmr.msra.gmra.mrb[0].mxu0 %v1025_v23  ;;  %v4657_v20 = vcombine.low %v1762_v17, %v6693_v18  ;;  %v6076_v60 = vld [vmem:[%s7516_s9 + $0x2d8] sm:$0xff]   ;;  %v6081_v3 = vld [vmem:[%s7516_s9 + $0x2b0] sm:$0xff]   ;;  %v6090_v17 = vld [vmem:[%s7516_s9 + $0x348] sm:$0xff]  }
  0x2e   : > { %5418 = vmatmul.mubr.bf16.vlgmr.msra.gmra.mrb[0].mxu1 %v979_v11  ;;  %5422 = vmatpush3.bf16.msra.mxu0 %v6000_v24  ;;  %v1452_v5 = vor.u32 %v1451_v0, %v1447_v63  ;;  %v6039_v11 = vld [vmem:[%s7516_s9 + $0x190] sm:$0xff]   ;;  %s7555_s0 = smov (!%p859_p11, %s856_s0), 9  ;;  %v6079_v63 = vld [vmem:[%s7516_s9 + $0x2a8] sm:$0xff]  }
  0x2f   : > { %5442 = vmatpush3.bf16.msra.mxu1 %v6001_v25  ;;  %5423 = vmatprep.subr.bf16.mxu0 %v6273_v1  ;;  %v1789_v23 = vshll.u32 %v4657_v20, 16  ;;  %v6048_v24 = vld [vmem:[%s7516_s9 + $0x1f0] sm:$0xff]   ;;  %v6049_v25 = vld [vmem:[%s7516_s9 + $0x1b8] sm:$0xff]   ;;  %s6759_s28 = smul.u32 20, %s7555_s0 }
  0x30   : > { %5443 = vmatprep.subr.bf16.mxu1 %v6273_v1  ;;  %5437 = vmatprep.mubr.msk.bf16.mxu0 %vm6274_vm0, %v6273_v1 }
  0x31   : > { %5457 = vmatprep.mubr.msk.bf16.mxu1 %vm6274_vm0, %v6273_v1  ;;  %s865_s0 = sadd.s32 %s6759_s28, %s6432_s30  ;;  %s881_s26 = sadd.s32 %s6759_s28, %s6528_s13 }
  0x32   : > { %5424 = vmatpush3.bf16.msra.mxu0 %v6002_v26  ;;  %v1787_v26 = vshrl.u32 %v4657_v20, 16  ;;  %s867_s14 = sadd.s32 %s6427_s20, %s865_s0  ;;  %v6093_v20 = vld [vmem:[%s7516_s9 + $0x318] sm:$0xff]  }
  0x33   : > { %5444 = vmatpush3.bf16.msra.mxu1 %v6003_v27  ;;  %5425 = vmatprep.subr.bf16.mxu0 %v6273_v1  ;;  %v1791_v27 = vrot.slane %v1789_v23, 1  ;;  %s4468_s1 = sshll.u32 %s867_s14, 2  ;;  %v6096_v23 = vld [vmem:[%s7516_s9 + $0x360] sm:$0xff]  }
  0x34   : > { %5445 = vmatprep.subr.bf16.mxu1 %v6273_v1  ;;  %s6800_s14 = scalar_lea.vmem %s7510_s3, %s4468_s1  ;;  %s883_s1 = sadd.s32 %s6427_s20, %s881_s26 }
  0x35   : > { %s4470_s17 = sshll.u32 %s883_s1, 2 }
  0x36   : > { %5426 = vmatpush3.bf16.msra.mxu0 %v6004_v28  ;;  %v6050_v28 = vld [vmem:[%s7516_s9 + $0x1f8] sm:$0xff]   ;;  %s6916_s0 = scalar_lea.vmem %s7511_s4, %s4470_s17  ;;  %s898_s17 = sadd.s32 %s6759_s28, %s6645_s25 }
  0x37   : > { %5446 = vmatpush3.bf16.msra.mxu1 %v6005_v29  ;;  %5427 = vmatprep.subr.bf16.mxu0 %v6273_v1  ;;  %v1655_v29 = vld [vmem:[%s6681_s18] sm:$0xf] }
  0x38   : > { %5447 = vmatprep.subr.bf16.mxu1 %v6273_v1 }
  0x3a   : > { %5428 = vmatpush3.bf16.msra.mxu0 %v6006_v30  ;;  %v6051_v30 = vld [vmem:[%s7516_s9 + $0x200] sm:$0xff]  }
  0x3b   : > { %5448 = vmatpush3.bf16.msra.mxu1 %v6007_v31  ;;  %5429 = vmatprep.subr.bf16.mxu0 %v6273_v1  ;;  %v1792_v31 = vor.u32 %v1791_v27, %v1787_v26  ;;  %v6097_v26 = vld [vmem:[%s7516_s9 + $0x328] sm:$0xff]  }
  0x3c   : > { %5449 = vmatprep.subr.bf16.mxu1 %v6273_v1 }
  0x3e   : > { %5430 = vmatpush3.bf16.msra.mxu0 %v6008_v32  ;;  %v6053_v32 = vld [vmem:[%s7516_s9 + $0x240] sm:$0xff]  }
  0x3f   : > { %5450 = vmatpush3.bf16.msra.mxu1 %v6009_v33  ;;  %5431 = vmatprep.subr.bf16.mxu0 %v6273_v1  ;;  %v6054_v33 = vld [vmem:[%s7516_s9 + $0x208] sm:$0xff]  }
  0x40   : > { %5451 = vmatprep.subr.bf16.mxu1 %v6273_v1 }
  0x42   : > { %5432 = vmatpush3.bf16.msra.mxu0 %v6010_v34  ;;  %v6055_v34 = vld [vmem:[%s7516_s9 + $0x248] sm:$0xff]  }
  0x43   : > { %5452 = vmatpush3.bf16.msra.mxu1 %v6011_v35  ;;  %5433 = vmatprep.subr.bf16.mxu0 %v6273_v1  ;;  %v6056_v35 = vld [vmem:[%s7516_s9 + $0x210] sm:$0xff]  }
  0x44   : > { %5453 = vmatprep.subr.bf16.mxu1 %v6273_v1 }
  0x46   : > { %5434 = vmatpush3.bf16.msra.mxu0 %v6012_v36  ;;  %v6057_v36 = vld [vmem:[%s7516_s9 + $0x250] sm:$0xff]  }
  0x47   : > { %5454 = vmatpush3.bf16.msra.mxu1 %v6013_v38  ;;  %5435 = vmatprep.subr.bf16.mxu0 %v6273_v1  ;;  %v6059_v38 = vld [vmem:[%s7516_s9 + $0x258] sm:$0xff]  }
  0x48   : > { %5455 = vmatprep.subr.bf16.mxu1 %v6273_v1 }
  0x4a   : > { %5436 = vmatpush3.bf16.msra.mxu0 %v6014_v40  ;;  %v6061_v40 = vld [vmem:[%s7516_s9 + $0x260] sm:$0xff]  }
  0x4b   : > { %5456 = vmatpush3.bf16.msra.mxu1 %v6015_v41  ;;  %5461 = vmatprep.subr.bf16.mxu0 %v6273_v1  ;;  %v6062_v41 = vld [vmem:[%s7516_s9 + $0x228] sm:$0xff]  }
  0x4c   : > { %5481 = vmatprep.subr.bf16.mxu1 %v6273_v1 }
  0x4d   : > { %5438 = vmatmul.mubr.bf16.vlgmr.msra.gmra.mrb[4].mxu0 %v1224_v42  ;;  %v6063_v42 = vld [vmem:[%s7516_s9 + $0x268] sm:$0xff]  }
  0x4e   : > { %5462 = vmatpush3.bf16.msra.mxu0 %v6017_v43  ;;  %5458 = vmatmul.mubr.bf16.vlgmr.msra.gmra.mrb[4].mxu1 %v1315_v44  ;;  %v6064_v43 = vld [vmem:[%s7516_s9 + $0x230] sm:$0xff]   ;;  %v1883_v44 = vld [vmem:[%s6681_s18] sm:$0xe] }
  0x4f   : > { %5482 = vmatpush3.bf16.msra.mxu1 %v6018_v45  ;;  %5463 = vmatprep.subr.bf16.mxu0 %v6273_v1  ;;  %v6065_v45 = vld [vmem:[%s7516_s9 + $0x270] sm:$0xff]  }
  0x50   : > { %5483 = vmatprep.subr.bf16.mxu1 %v6273_v1  ;;  %5477 = vmatprep.mubr.msk.bf16.mxu0 %vm6274_vm0, %v6273_v1 }
  0x51   : > { %5497 = vmatprep.mubr.msk.bf16.mxu1 %vm6274_vm0, %v6273_v1 }
  0x52   : > { %5464 = vmatpush3.bf16.msra.mxu0 %v6019_v46  ;;  %v4682_v46 = vcombine.low %v1883_v44, %v6693_v18  ;;  %v6091_v18 = vld [vmem:[%s7516_s9 + $0x310] sm:$0xff]   ;;  %v6110_v44 = vld [vmem:[%s7516_s9 + $0x398] sm:$0xff]  }
  0x53   : > { %5484 = vmatpush3.bf16.msra.mxu1 %v6020_v47  ;;  %5465 = vmatprep.subr.bf16.mxu0 %v6273_v1  ;;  %v6066_v47 = vld [vmem:[%s7516_s9 + $0x238] sm:$0xff]  }
  0x54   : > { %5485 = vmatprep.subr.bf16.mxu1 %v6273_v1 }
  0x56   : > { %5466 = vmatpush3.bf16.msra.mxu0 %v6021_v48  ;;  %v6067_v48 = vld [vmem:[%s7516_s9 + $0x278] sm:$0xff]  }
  0x57   : > { %5486 = vmatpush3.bf16.msra.mxu1 %v6022_v49  ;;  %5467 = vmatprep.subr.bf16.mxu0 %v6273_v1  ;;  %v1904_v49 = vrot.slane %v4682_v46, 1  ;;  %v6112_v46 = vld [vmem:[%s7516_s9 + $0x3a0] sm:$0xff]  }
  0x58   : > { %5487 = vmatprep.subr.bf16.mxu1 %v6273_v1 }
  0x5a   : > { %5468 = vmatpush3.bf16.msra.mxu0 %v6023_v50  ;;  %v6069_v50 = vld [vmem:[%s7516_s9 + $0x280] sm:$0xff]  }
  0x5b   : > { %5488 = vmatpush3.bf16.msra.mxu1 %v6024_v51  ;;  %5469 = vmatprep.subr.bf16.mxu0 %v6273_v1  ;;  %v1995_v51 = vld [vmem:[%s6800_s14] sm:$0xf] }
  0x5c   : > { %5489 = vmatprep.subr.bf16.mxu1 %v6273_v1 }
  0x5e   : > { %5470 = vmatpush3.bf16.msra.mxu0 %v6025_v54  ;;  %v6072_v54 = vld [vmem:[%s7516_s9 + $0x2c8] sm:$0xff]  }
  0x5f   : > { %5490 = vmatpush3.bf16.msra.mxu1 %v6026_v55  ;;  %5471 = vmatprep.subr.bf16.mxu0 %v6273_v1  ;;  %v6073_v55 = vld [vmem:[%s7516_s9 + $0x290] sm:$0xff]  }
  0x60   : > { %5491 = vmatprep.subr.bf16.mxu1 %v6273_v1 }
  0x62   : > { %5472 = vmatpush3.bf16.msra.mxu0 %v6027_v57  ;;  %v6075_v57 = vld [vmem:[%s7516_s9 + $0x298] sm:$0xff]  }
  0x63   : > { %5492 = vmatpush3.bf16.msra.mxu1 %v6028_v58  ;;  %5473 = vmatprep.subr.bf16.mxu0 %v6273_v1  ;;  %v2102_v58 = vld [vmem:[%s6800_s14] sm:$0xf] }
  0x64   : > { %5493 = vmatprep.subr.bf16.mxu1 %v6273_v1 }
  0x66   : > { %5474 = vmatpush3.bf16.msra.mxu0 %v6029_v59  ;;  %v2103_v59 = vld [vmem:[%s6800_s14 + $0x4] sm:$0x1] }
  0x67   : > { %5494 = vmatpush3.bf16.msra.mxu1 %v6030_v61  ;;  %5475 = vmatprep.subr.bf16.mxu0 %v6273_v1  ;;  %v6077_v61 = vld [vmem:[%s7516_s9 + $0x2a0] sm:$0xff]   ;;  %v4731_v0 = vcombine.low %v2102_v58, %v2103_v59 }
  0x68   : > { %5495 = vmatprep.subr.bf16.mxu1 %v6273_v1 }
  0x6a   : > { %5476 = vmatpush3.bf16.msra.mxu0 %v6031_v2  ;;  %v6080_v2 = vld [vmem:[%s7516_s9 + $0x2e8] sm:$0xff]  }
  0x6b   : > { %5496 = vmatpush3.bf16.msra.mxu1 %v6032_v4  ;;  %5501 = vmatprep.subr.bf16.mxu0 %v6273_v1  ;;  %v2129_v4 = vshll.u32 %v4731_v0, 16 }
  0x6c   : > { %5521 = vmatprep.subr.bf16.mxu1 %v6273_v1 }
  0x6d   : > { %5478 = vmatmul.mubr.bf16.vlgmr.msra.gmra.mrb[8].mxu0 %v1452_v5  ;;  %v6082_v5 = vld [vmem:[%s7516_s9 + $0x2f0] sm:$0xff]  }
  0x6e   : > { %5502 = vmatpush3.bf16.msra.mxu0 %v6034_v6  ;;  %5498 = vmatmul.mubr.bf16.vlgmr.msra.gmra.mrb[8].mxu1 %v1564_v7  ;;  %v2223_v6 = vld [vmem:[%s6800_s14] sm:$0xe]  ;;  %v2127_v7 = vshrl.u32 %v4731_v0, 16  ;;  %s900_s14 = sadd.s32 %s6427_s20, %s898_s17  ;;  %v6119_v0 = vld [vmem:[%s7516_s9 + $0x3f8] sm:$0xff]  }
  0x6f   : > { %5522 = vmatpush3.bf16.msra.mxu1 %v6036_v8  ;;  %5503 = vmatprep.subr.bf16.mxu0 %v6273_v1  ;;  %v2131_v8 = vrot.slane %v2129_v4, 1  ;;  %s4472_s1 = sshll.u32 %s900_s14, 2 }
  0x70   : > { %5523 = vmatprep.subr.bf16.mxu1 %v6273_v1  ;;  %5517 = vmatprep.mubr.msk.bf16.mxu0 %vm6274_vm0, %v6273_v1  ;;  %s7035_s16 = scalar_lea.vmem %s7512_s5, %s4472_s1  ;;  %s905_s1 = sadd.s32 2, %s6251_s22 }
  0x71   : > { %5537 = vmatprep.mubr.msk.bf16.mxu1 %vm6274_vm0, %v6273_v1  ;;  %v2675_v4 = vld [vmem:[%s7035_s16] sm:$0xf]  ;;  %p908_p12 = scmp.lt.s32.totalorder %s905_s1, 9  ;;  %s7559_s22 = smov (!%p956_p13, %s6251_s22), 7 }
  0x72   : > { %5504 = vmatpush3.bf16.msra.mxu0 %v6037_v9  ;;  %v6083_v9 = vld [vmem:[%s7516_s9 + $0x2b8] sm:$0xff]  }
  0x73   : > { %5524 = vmatpush3.bf16.msra.mxu1 %v6038_v10  ;;  %5505 = vmatprep.subr.bf16.mxu0 %v6273_v1  ;;  %v4756_v10 = vcombine.low %v2223_v6, %v2103_v59  ;;  %v6117_v59 = vld [vmem:[%s7516_s9 + $0x3f0] sm:$0xff]   ;;  %v6123_v6 = vld [vmem:[%s7516_s9 + $0x408] sm:$0xff]   ;;  %s7557_s1 = smov (!%p908_p12, %s905_s1), 9 }
  0x74   : > { %5525 = vmatprep.subr.bf16.mxu1 %v6273_v1  ;;  %s7120_s29 = smul.u32 20, %s7557_s1 }
  0x76   : > { %5506 = vmatpush3.bf16.msra.mxu0 %v6039_v11  ;;  %v6084_v11 = vld [vmem:[%s7516_s9 + $0x2f8] sm:$0xff]   ;;  %s914_s18 = sadd.s32 %s7120_s29, %s6432_s30  ;;  %s947_s14 = sadd.s32 %s7120_s29, %s6645_s25 }
  0x77   : > { %5526 = vmatpush3.bf16.msra.mxu1 %v6040_v12  ;;  %5507 = vmatprep.subr.bf16.mxu0 %v6273_v1  ;;  %v2132_v12 = vor.u32 %v2131_v8, %v2127_v7  ;;  %v6124_v7 = vld [vmem:[%s7516_s9 + $0x448] sm:$0xff]   ;;  %v6125_v8 = vld [vmem:[%s7516_s9 + $0x410] sm:$0xff]   ;;  %s916_s19 = sadd.s32 %s6427_s20, %s914_s18  ;;  %s949_s1 = sadd.s32 %s6427_s20, %s947_s14 }
  0x78   : > { %5527 = vmatprep.subr.bf16.mxu1 %v6273_v1  ;;  %s4474_s30 = sshll.u32 %s916_s19, 2  ;;  %s930_s19 = sadd.s32 %s7120_s29, %s6528_s13 }
  0x79   : > { %s932_s17 = sadd.s32 %s6427_s20, %s930_s19  ;;  %s4478_s25 = sshll.u32 %s949_s1, 2 }
  0x7a   : > { %5508 = vmatpush3.bf16.msra.mxu0 %v6041_v13  ;;  %v6086_v13 = vld [vmem:[%s7516_s9 + $0x300] sm:$0xff]   ;;  %s4476_s15 = sshll.u32 %s932_s17, 2 }
  0x7b   : > { %5528 = vmatpush3.bf16.msra.mxu1 %v6042_v14  ;;  %5509 = vmatprep.subr.bf16.mxu0 %v6273_v1  ;;  %v2244_v14 = vrot.slane %v4756_v10, 1  ;;  %v6127_v10 = vld [vmem:[%s7516_s9 + $0x418] sm:$0xff]  }
  0x7c   : > { %5529 = vmatprep.subr.bf16.mxu1 %v6273_v1 }
  0x7e   : > { %5510 = vmatpush3.bf16.msra.mxu0 %v6043_v15  ;;  %v6088_v15 = vld [vmem:[%s7516_s9 + $0x340] sm:$0xff]  }
  0x7f   : > { %5530 = vmatpush3.bf16.msra.mxu1 %v6044_v16  ;;  %5511 = vmatprep.subr.bf16.mxu0 %v6273_v1  ;;  %v6089_v16 = vld [vmem:[%s7516_s9 + $0x308] sm:$0xff]  }
  0x80   : > { %5531 = vmatprep.subr.bf16.mxu1 %v6273_v1 }
  0x82   : > { %5512 = vmatpush3.bf16.msra.mxu0 %v6045_v19  ;;  %v6092_v19 = vld [vmem:[%s7516_s9 + $0x350] sm:$0xff]  }
  0x83   : > { %5532 = vmatpush3.bf16.msra.mxu1 %v6046_v21  ;;  %5513 = vmatprep.subr.bf16.mxu0 %v6273_v1  ;;  %v6094_v21 = vld [vmem:[%s7516_s9 + $0x358] sm:$0xff]  }
  0x84   : > { %5533 = vmatprep.subr.bf16.mxu1 %v6273_v1 }
  0x86   : > { %5514 = vmatpush3.bf16.msra.mxu0 %v6047_v22  ;;  %v6095_v22 = vld [vmem:[%s7516_s9 + $0x320] sm:$0xff]  }
  0x87   : > { %5534 = vmatpush3.bf16.msra.mxu1 %v6048_v24  ;;  %5515 = vmatprep.subr.bf16.mxu0 %v6273_v1  ;;  %v2442_v24 = vld [vmem:[%s6916_s0] sm:$0xf] }
  0x88   : > { %5535 = vmatprep.subr.bf16.mxu1 %v6273_v1 }
  0x8a   : > { %5516 = vmatpush3.bf16.msra.mxu0 %v6049_v25  ;;  %v6928_v25 = vld [vmem:[%s6916_s0 + $0x4] sm:$0x1] }
  0x8b   : > { %5536 = vmatpush3.bf16.msra.mxu1 %v6050_v28  ;;  %5541 = vmatprep.subr.bf16.mxu0 %v6273_v1  ;;  %v4805_v27 = vcombine.low %v2442_v24, %v6928_v25  ;;  %v6098_v28 = vld [vmem:[%s7516_s9 + $0x368] sm:$0xff]  }
  0x8c   : > { %5561 = vmatprep.subr.bf16.mxu1 %v6273_v1 }
  0x8d   : > { %5518 = vmatmul.mubr.bf16.vlgmr.msra.gmra.mrb[12].mxu0 %v1655_v29  ;;  %v6099_v29 = vld [vmem:[%s7516_s9 + $0x330] sm:$0xff]  }
  0x8e   : > { %5542 = vmatpush3.bf16.msra.mxu0 %v6051_v30  ;;  %5538 = vmatmul.mubr.bf16.vlgmr.msra.gmra.mrb[12].mxu1 %v1792_v31  ;;  %v2469_v30 = vshll.u32 %v4805_v27, 16  ;;  %v6100_v31 = vld [vmem:[%s7516_s9 + $0x370] sm:$0xff]  }
  0x8f   : > { %5562 = vmatpush3.bf16.msra.mxu1 %v6053_v32  ;;  %5543 = vmatprep.subr.bf16.mxu0 %v6273_v1  ;;  %v6101_v32 = vld [vmem:[%s7516_s9 + $0x338] sm:$0xff]  }
  0x90   : > { %5563 = vmatprep.subr.bf16.mxu1 %v6273_v1  ;;  %5557 = vmatprep.mubr.msk.bf16.mxu0 %vm6274_vm0, %v6273_v1 }
  0x91   : > { %5577 = vmatprep.mubr.msk.bf16.mxu1 %vm6274_vm0, %v6273_v1 }
  0x92   : > { %5544 = vmatpush3.bf16.msra.mxu0 %v6054_v33  ;;  %v2467_v33 = vshrl.u32 %v4805_v27, 16 }
  0x93   : > { %5564 = vmatpush3.bf16.msra.mxu1 %v6055_v34  ;;  %5545 = vmatprep.subr.bf16.mxu0 %v6273_v1  ;;  %v2471_v34 = vrot.slane %v2469_v30, 1  ;;  %v2903_v30 = vld [vmem:[%s7035_s16] sm:$0xe] }
  0x94   : > { %5565 = vmatprep.subr.bf16.mxu1 %v6273_v1 }
  0x96   : > { %5546 = vmatpush3.bf16.msra.mxu0 %v6056_v35  ;;  %v6102_v35 = vld [vmem:[%s7516_s9 + $0x378] sm:$0xff]  }
  0x97   : > { %5566 = vmatpush3.bf16.msra.mxu1 %v6057_v36  ;;  %5547 = vmatprep.subr.bf16.mxu0 %v6273_v1  ;;  %v2335_v36 = vld [vmem:[%s6916_s0] sm:$0xf] }
  0x98   : > { %5567 = vmatprep.subr.bf16.mxu1 %v6273_v1 }
  0x9a   : > { %5548 = vmatpush3.bf16.msra.mxu0 %v6058_v37  ;;  %v6103_v37 = vld [vmem:[%s7516_s9 + $0x380] sm:$0xff]  }
  0x9b   : > { %5568 = vmatpush3.bf16.msra.mxu1 %v6059_v38  ;;  %5549 = vmatprep.subr.bf16.mxu0 %v6273_v1  ;;  %v2472_v38 = vor.u32 %v2471_v34, %v2467_v33 }
  0x9c   : > { %5569 = vmatprep.subr.bf16.mxu1 %v6273_v1 }
  0x9e   : > { %5550 = vmatpush3.bf16.msra.mxu0 %v6060_v39  ;;  %v6105_v39 = vld [vmem:[%s7516_s9 + $0x3c0] sm:$0xff]  }
  0x9f   : > { %5570 = vmatpush3.bf16.msra.mxu1 %v6061_v40  ;;  %5551 = vmatprep.subr.bf16.mxu0 %v6273_v1  ;;  %v6106_v40 = vld [vmem:[%s7516_s9 + $0x388] sm:$0xff]  }
  0xa0   : > { %5571 = vmatprep.subr.bf16.mxu1 %v6273_v1 }
  0xa2   : > { %5552 = vmatpush3.bf16.msra.mxu0 %v6062_v41  ;;  %v6107_v41 = vld [vmem:[%s7516_s9 + $0x3c8] sm:$0xff]  }
  0xa3   : > { %5572 = vmatpush3.bf16.msra.mxu1 %v6063_v42  ;;  %5553 = vmatprep.subr.bf16.mxu0 %v6273_v1  ;;  %v6108_v42 = vld [vmem:[%s7516_s9 + $0x390] sm:$0xff]  }
  0xa4   : > { %5573 = vmatprep.subr.bf16.mxu1 %v6273_v1 }
  0xa6   : > { %5554 = vmatpush3.bf16.msra.mxu0 %v6064_v43  ;;  %v6109_v43 = vld [vmem:[%s7516_s9 + $0x3d0] sm:$0xff]  }
  0xa7   : > { %5574 = vmatpush3.bf16.msra.mxu1 %v6065_v45  ;;  %5555 = vmatprep.subr.bf16.mxu0 %v6273_v1  ;;  %v6111_v45 = vld [vmem:[%s7516_s9 + $0x3d8] sm:$0xff]  }
  0xa8   : > { %5575 = vmatprep.subr.bf16.mxu1 %v6273_v1 }
  0xaa   : > { %5556 = vmatpush3.bf16.msra.mxu0 %v6066_v47  ;;  %v6113_v47 = vld [vmem:[%s7516_s9 + $0x3e0] sm:$0xff]  }
  0xab   : > { %5576 = vmatpush3.bf16.msra.mxu1 %v6067_v48  ;;  %5581 = vmatprep.subr.bf16.mxu0 %v6273_v1  ;;  %v6114_v48 = vld [vmem:[%s7516_s9 + $0x3a8] sm:$0xff]  }
  0xac   : > { %5601 = vmatprep.subr.bf16.mxu1 %v6273_v1 }
  0xad   : > { %5558 = vmatmul.mubr.bf16.vlgmr.msra.gmra.mrb[16].mxu0 %v1904_v49  ;;  %v6115_v49 = vld [vmem:[%s7516_s9 + $0x3e8] sm:$0xff]  }
  0xae   : > { %5582 = vmatpush3.bf16.msra.mxu0 %v6069_v50  ;;  %5578 = vmatmul.mubr.bf16.vlgmr.msra.gmra.mrb[16].mxu1 %v1995_v51 }
  0xaf   : > { %5602 = vmatpush3.bf16.msra.mxu1 %v6070_v52  ;;  %5583 = vmatprep.subr.bf16.mxu0 %v6273_v1 }
  0xb0   : > { %5603 = vmatprep.subr.bf16.mxu1 %v6273_v1  ;;  %5597 = vmatprep.mubr.msk.bf16.mxu0 %vm6274_vm0, %v6273_v1 }
  0xb1   : > { %5617 = vmatprep.mubr.msk.bf16.mxu1 %vm6274_vm0, %v6273_v1 }
  0xb2   : > { %5584 = vmatpush3.bf16.msra.mxu0 %v6071_v53 }
  0xb3   : > { %5604 = vmatpush3.bf16.msra.mxu1 %v6072_v54  ;;  %5585 = vmatprep.subr.bf16.mxu0 %v6273_v1 }
  0xb4   : > { %5605 = vmatprep.subr.bf16.mxu1 %v6273_v1 }
  0xb6   : > { %5586 = vmatpush3.bf16.msra.mxu0 %v6073_v55  ;;  %v6116_v55 = vld [vmem:[%s7516_s9 + $0x3b0] sm:$0xff]  }
  0xb7   : > { %5606 = vmatpush3.bf16.msra.mxu1 %v6074_v56  ;;  %5587 = vmatprep.subr.bf16.mxu0 %v6273_v1  ;;  %v2563_v56 = vld [vmem:[%s6916_s0] sm:$0xe]  ;;  %s7276_s0 = scalar_lea.vmem %s7514_s7, %s4476_s15  ;;  %s7395_s15 = scalar_lea.vmem %s7515_s8, %s4478_s25 }
  0xb8   : > { %5607 = vmatprep.subr.bf16.mxu1 %v6273_v1 }
  0xba   : > { %5588 = vmatpush3.bf16.msra.mxu0 %v6075_v57 }
  0xbb   : > { %5608 = vmatpush3.bf16.msra.mxu1 %v6076_v60  ;;  %5589 = vmatprep.subr.bf16.mxu0 %v6273_v1 }
  0xbc   : > { %5609 = vmatprep.subr.bf16.mxu1 %v6273_v1 }
  0xbe   : > { %5590 = vmatpush3.bf16.msra.mxu0 %v6077_v61 }
  0xbf   : > { %5610 = vmatpush3.bf16.msra.mxu1 %v6078_v62  ;;  %5591 = vmatprep.subr.bf16.mxu0 %v6273_v1  ;;  %v4830_v62 = vcombine.low %v2563_v56, %v6928_v25  ;;  %v6133_v25 = vld [vmem:[%s7516_s9 + $0x430] sm:$0xff]  }
  0xc0   : > { %5611 = vmatprep.subr.bf16.mxu1 %v6273_v1 }
  0xc2   : > { %5592 = vmatpush3.bf16.msra.mxu0 %v6079_v63  ;;  %v6118_v63 = vld [vmem:[%s7516_s9 + $0x3b8] sm:$0xff]  }
  0xc3   : > { %5612 = vmatpush3.bf16.msra.mxu1 %v6080_v2  ;;  %5593 = vmatprep.subr.bf16.mxu0 %v6273_v1  ;;  %v2584_v2 = vrot.slane %v4830_v62, 1 }
  0xc4   : > { %5613 = vmatprep.subr.bf16.mxu1 %v6273_v1 }
  0xc6   : > { %5594 = vmatpush3.bf16.msra.mxu0 %v6081_v3  ;;  %v6121_v3 = vld [vmem:[%s7516_s9 + $0x400] sm:$0xff]  }
  0xc7   : > { %5614 = vmatpush3.bf16.msra.mxu1 %v6082_v5  ;;  %5595 = vmatprep.subr.bf16.mxu0 %v6273_v1  ;;  %v6122_v5 = vld [vmem:[%s7516_s9 + $0x440] sm:$0xff]  }
  0xc8   : > { %5615 = vmatprep.subr.bf16.mxu1 %v6273_v1 }
  0xca   : > { %5596 = vmatpush3.bf16.msra.mxu0 %v6083_v9  ;;  %v6126_v9 = vld [vmem:[%s7516_s9 + $0x450] sm:$0xff]  }
  0xcb   : > { %5616 = vmatpush3.bf16.msra.mxu1 %v6084_v11  ;;  %5621 = vmatprep.subr.bf16.mxu0 %v6273_v1  ;;  %v6128_v11 = vld [vmem:[%s7516_s9 + $0x458] sm:$0xff]  }
  0xcc   : > { %5641 = vmatprep.subr.bf16.mxu1 %v6273_v1 }
  0xcd   : > { %5598 = vmatmul.mubr.bf16.vlgmr.msra.gmra.mrb[20].mxu0 %v2132_v12  ;;  %v2782_v12 = vld [vmem:[%s7035_s16] sm:$0xf] }
  0xce   : > { %5622 = vmatpush3.bf16.msra.mxu0 %v6086_v13  ;;  %5618 = vmatmul.mubr.bf16.vlgmr.msra.gmra.mrb[20].mxu1 %v2244_v14  ;;  %v2783_v13 = vld [vmem:[%s7035_s16 + $0x4] sm:$0x1]  ;;  %s7157_s16 = scalar_lea.vmem %s7513_s6, %s4474_s30 }
  0xcf   : > { %5642 = vmatpush3.bf16.msra.mxu1 %v6088_v15  ;;  %5623 = vmatprep.subr.bf16.mxu0 %v6273_v1  ;;  %v6129_v14 = vld [vmem:[%s7516_s9 + $0x420] sm:$0xff]  }
  0xd0   : > { %5643 = vmatprep.subr.bf16.mxu1 %v6273_v1  ;;  %5637 = vmatprep.mubr.msk.bf16.mxu0 %vm6274_vm0, %v6273_v1  ;;  %v6130_v15 = vld [vmem:[%s7516_s9 + $0x460] sm:$0xff]  }
  0xd1   : > { %5657 = vmatprep.mubr.msk.bf16.mxu1 %vm6274_vm0, %v6273_v1 }
  0xd2   : > { %5624 = vmatpush3.bf16.msra.mxu0 %v6089_v16  ;;  %v4879_v16 = vcombine.low %v2782_v12, %v2783_v13  ;;  %v6157_v12 = vld [vmem:[%s7516_s9 + $0x540] sm:$0xff]  }
  0xd3   : > { %5644 = vmatpush3.bf16.msra.mxu1 %v6090_v17  ;;  %5625 = vmatprep.subr.bf16.mxu0 %v6273_v1  ;;  %v6131_v17 = vld [vmem:[%s7516_s9 + $0x428] sm:$0xff]  }
  0xd4   : > { %5645 = vmatprep.subr.bf16.mxu1 %v6273_v1  ;;  %v2807_v33 = vshrl.u32 %v4879_v16, 16 }
  0xd6   : > { %5626 = vmatpush3.bf16.msra.mxu0 %v6091_v18  ;;  %v6132_v18 = vld [vmem:[%s7516_s9 + $0x468] sm:$0xff]  }
  0xd7   : > { %5646 = vmatpush3.bf16.msra.mxu1 %v6092_v19  ;;  %5627 = vmatprep.subr.bf16.mxu0 %v6273_v1 }
  0xd8   : > { %5647 = vmatprep.subr.bf16.mxu1 %v6273_v1 }
  0xda   : > { %5628 = vmatpush3.bf16.msra.mxu0 %v6093_v20 }
  0xdb   : > { %5648 = vmatpush3.bf16.msra.mxu1 %v6094_v21  ;;  %5629 = vmatprep.subr.bf16.mxu0 %v6273_v1 }
  0xdc   : > { %5649 = vmatprep.subr.bf16.mxu1 %v6273_v1 }
  0xde   : > { %5630 = vmatpush3.bf16.msra.mxu0 %v6095_v22 }
  0xdf   : > { %5650 = vmatpush3.bf16.msra.mxu1 %v6096_v23  ;;  %5631 = vmatprep.subr.bf16.mxu0 %v6273_v1  ;;  %v2809_v23 = vshll.u32 %v4879_v16, 16  ;;  %v6161_v16 = vld [vmem:[%s7516_s9 + $0x550] sm:$0xff]  }
  0xe0   : > { %5651 = vmatprep.subr.bf16.mxu1 %v6273_v1 }
  0xe1   : > { %v2811_v34 = vrot.slane %v2809_v23, 1 }
  0xe2   : > { %5632 = vmatpush3.bf16.msra.mxu0 %v6097_v26 }
  0xe3   : > { %5652 = vmatpush3.bf16.msra.mxu1 %v6098_v28  ;;  %5633 = vmatprep.subr.bf16.mxu0 %v6273_v1 }
  0xe4   : > { %5653 = vmatprep.subr.bf16.mxu1 %v6273_v1 }
  0xe6   : > { %5634 = vmatpush3.bf16.msra.mxu0 %v6099_v29  ;;  %v6134_v29 = vld [vmem:[%s7516_s9 + $0x470] sm:$0xff]  }
  0xe7   : > { %5654 = vmatpush3.bf16.msra.mxu1 %v6100_v31  ;;  %5635 = vmatprep.subr.bf16.mxu0 %v6273_v1 }
  0xe8   : > { %5655 = vmatprep.subr.bf16.mxu1 %v6273_v1 }
  0xea   : > { %5636 = vmatpush3.bf16.msra.mxu0 %v6101_v32 }
  0xeb   : > { %5656 = vmatpush3.bf16.msra.mxu1 %v6102_v35  ;;  %5661 = vmatprep.subr.bf16.mxu0 %v6273_v1  ;;  %v6135_v35 = vld [vmem:[%s7516_s9 + $0x438] sm:$0xff]  }
  0xec   : > { %5681 = vmatprep.subr.bf16.mxu1 %v6273_v1 }
  0xed   : > { %5638 = vmatmul.mubr.bf16.vlgmr.msra.gmra.mrb[24].mxu0 %v2335_v36  ;;  %v4904_v36 = vcombine.low %v2903_v30, %v2783_v13  ;;  %v6158_v13 = vld [vmem:[%s7516_s9 + $0x508] sm:$0xff]  }
  0xee   : > { %5662 = vmatpush3.bf16.msra.mxu0 %v6103_v37  ;;  %5658 = vmatmul.mubr.bf16.vlgmr.msra.gmra.mrb[24].mxu1 %v2472_v38  ;;  %v6136_v37 = vld [vmem:[%s7516_s9 + $0x478] sm:$0xff]   ;;  %v2812_v38 = vor.u32 %v2811_v34, %v2807_v33  ;;  %v6169_v33 = vld [vmem:[%s7516_s9 + $0x570] sm:$0xff]  }
  0xef   : > { %5682 = vmatpush3.bf16.msra.mxu1 %v6105_v39  ;;  %5663 = vmatprep.subr.bf16.mxu0 %v6273_v1  ;;  %v6138_v39 = vld [vmem:[%s7516_s9 + $0x480] sm:$0xff]  }
  0xf0   : > { %5683 = vmatprep.subr.bf16.mxu1 %v6273_v1  ;;  %5677 = vmatprep.mubr.msk.bf16.mxu0 %vm6274_vm0, %v6273_v1 }
  0xf1   : > { %5697 = vmatprep.mubr.msk.bf16.mxu1 %vm6274_vm0, %v6273_v1 }
  0xf2   : > { %5664 = vmatpush3.bf16.msra.mxu0 %v6106_v40  ;;  %v2924_v40 = vrot.slane %v4904_v36, 1 }
  0xf3   : > { %5684 = vmatpush3.bf16.msra.mxu1 %v6107_v41  ;;  %5665 = vmatprep.subr.bf16.mxu0 %v6273_v1  ;;  %v6140_v41 = vld [vmem:[%s7516_s9 + $0x4c0] sm:$0xff]  }
  0xf4   : > { %5685 = vmatprep.subr.bf16.mxu1 %v6273_v1 }
  0xf6   : > { %5666 = vmatpush3.bf16.msra.mxu0 %v6108_v42  ;;  %v6141_v42 = vld [vmem:[%s7516_s9 + $0x488] sm:$0xff]  }
  0xf7   : > { %5686 = vmatpush3.bf16.msra.mxu1 %v6109_v43  ;;  %5667 = vmatprep.subr.bf16.mxu0 %v6273_v1  ;;  %v6142_v43 = vld [vmem:[%s7516_s9 + $0x4c8] sm:$0xff]  }
  0xf8   : > { %5687 = vmatprep.subr.bf16.mxu1 %v6273_v1 }
  0xfa   : > { %5668 = vmatpush3.bf16.msra.mxu0 %v6110_v44  ;;  %v6143_v44 = vld [vmem:[%s7516_s9 + $0x490] sm:$0xff]  }
  0xfb   : > { %5688 = vmatpush3.bf16.msra.mxu1 %v6111_v45  ;;  %5669 = vmatprep.subr.bf16.mxu0 %v6273_v1  ;;  %v6144_v45 = vld [vmem:[%s7516_s9 + $0x4d0] sm:$0xff]  }
  0xfc   : > { %5689 = vmatprep.subr.bf16.mxu1 %v6273_v1 }
  0xfe   : > { %5670 = vmatpush3.bf16.msra.mxu0 %v6112_v46  ;;  %v6145_v46 = vld [vmem:[%s7516_s9 + $0x498] sm:$0xff]  }
  0xff   : > { %5690 = vmatpush3.bf16.msra.mxu1 %v6113_v47  ;;  %5671 = vmatprep.subr.bf16.mxu0 %v6273_v1  ;;  %v6146_v47 = vld [vmem:[%s7516_s9 + $0x4d8] sm:$0xff]  }
 0x100   : > { %v1109_v50 = vpop.f32.mrb[0].mxu0  ;;  %5691 = vmatprep.subr.bf16.mxu1 %v6273_v1 }
 0x101   : > { %v5399_v51 = vpop.f32.mrb[1].mxu0  ;;  %v1197_v52 = vpop.f32.mrb[0].mxu1 }
 0x102   : > { %v7011_v53 = vadd.f32 %v1197_v52, %v1109_v50  ;;  %v1112_v54 = vpop.f32.mrb[2].mxu0  ;;  %5672 = vmatpush3.bf16.msra.mxu0 %v6114_v48  ;;  %v5419_v57 = vpop.f32.mrb[1].mxu1  ;;  %v6147_v48 = vld [vmem:[%s7516_s9 + $0x4a0] sm:$0xff]   ;;  %v6149_v52 = vld [vmem:[%s7516_s9 + $0x4a8] sm:$0xff]  }
 0x103   : > { %v5400_v58 = vpop.f32.mrb[3].mxu0  ;;  %5692 = vmatpush3.bf16.msra.mxu1 %v6115_v49  ;;  %5673 = vmatprep.subr.bf16.mxu0 %v6273_v1  ;;  %v1200_v60 = vpop.f32.mrb[2].mxu1  ;;  %v6148_v49 = vld [vmem:[%s7516_s9 + $0x4e0] sm:$0xff]   ;;  %v6150_v54 = vld [vmem:[%s7516_s9 + $0x4e8] sm:$0xff]  }
 0x104   : > { %5693 = vmatprep.subr.bf16.mxu1 %v6273_v1  ;;  %v5420_v61 = vpop.f32.mrb[3].mxu1  ;;  %v3122_v50 = vld [vmem:[%s7157_s16] sm:$0xf]  ;;  %v7168_v51 = vld [vmem:[%s7157_s16 + $0x4] sm:$0x1]  ;;  %v6151_v60 = vld [vmem:[%s7516_s9 + $0x4b0] sm:$0xff]  }
 0x106   : > { %5674 = vmatpush3.bf16.msra.mxu0 %v6116_v55 }
 0x107   : > { %5694 = vmatpush3.bf16.msra.mxu1 %v6117_v59  ;;  %5675 = vmatprep.subr.bf16.mxu0 %v6273_v1 }
 0x108   : > { %5695 = vmatprep.subr.bf16.mxu1 %v6273_v1 }
 0x10a   : > { %5676 = vmatpush3.bf16.msra.mxu0 %v6118_v63 }
 0x10b   : > { %5696 = vmatpush3.bf16.msra.mxu1 %v6119_v0  ;;  %5701 = vmatprep.subr.bf16.mxu0 %v6273_v1 }
 0x10c   : > { %5721 = vmatprep.subr.bf16.mxu1 %v6273_v1 }
 0x10d   : > { %5678 = vmatmul.mubr.bf16.vlgmr.msra.gmra.mrb[28].mxu0 %v2584_v2  ;;  %v6152_v2 = vld [vmem:[%s7516_s9 + $0x4f0] sm:$0xff]  }
 0x10e   : > { %5702 = vmatpush3.bf16.msra.mxu0 %v6121_v3  ;;  %5698 = vmatmul.mubr.bf16.vlgmr.msra.gmra.mrb[28].mxu1 %v2675_v4 }
 0x10f   : > { %5722 = vmatpush3.bf16.msra.mxu1 %v6122_v5  ;;  %5703 = vmatprep.subr.bf16.mxu0 %v6273_v1  ;;  %v6153_v5 = vld [vmem:[%s7516_s9 + $0x4b8] sm:$0xff]  }
 0x110   : > { %5723 = vmatprep.subr.bf16.mxu1 %v6273_v1  ;;  %5717 = vmatprep.mubr.msk.bf16.mxu0 %vm6274_vm0, %v6273_v1 }
 0x111   : > { %5737 = vmatprep.mubr.msk.bf16.mxu1 %vm6274_vm0, %v6273_v1 }
 0x112   : > { %5704 = vmatpush3.bf16.msra.mxu0 %v6123_v6 }
 0x113   : > { %5724 = vmatpush3.bf16.msra.mxu1 %v6124_v7  ;;  %5705 = vmatprep.subr.bf16.mxu0 %v6273_v1 }
 0x114   : > { %5725 = vmatprep.subr.bf16.mxu1 %v6273_v1 }
 0x116   : > { %5706 = vmatpush3.bf16.msra.mxu0 %v6125_v8  ;;  %v6154_v8 = vld [vmem:[%s7516_s9 + $0x4f8] sm:$0xff]  }
 0x117   : > { %5726 = vmatpush3.bf16.msra.mxu1 %v6126_v9  ;;  %5707 = vmatprep.subr.bf16.mxu0 %v6273_v1  ;;  %v3015_v9 = vld [vmem:[%s7157_s16] sm:$0xf] }
 0x118   : > { %5727 = vmatprep.subr.bf16.mxu1 %v6273_v1 }
 0x11a   : > { %5708 = vmatpush3.bf16.msra.mxu0 %v6127_v10  ;;  %v6155_v10 = vld [vmem:[%s7516_s9 + $0x500] sm:$0xff]  }
 0x11b   : > { %5728 = vmatpush3.bf16.msra.mxu1 %v6128_v11  ;;  %5709 = vmatprep.subr.bf16.mxu0 %v6273_v1 }
 0x11c   : > { %5729 = vmatprep.subr.bf16.mxu1 %v6273_v1 }
 0x11e   : > { %5710 = vmatpush3.bf16.msra.mxu0 %v6129_v14  ;;  %v6159_v14 = vld [vmem:[%s7516_s9 + $0x548] sm:$0xff]  }
 0x11f   : > { %5730 = vmatpush3.bf16.msra.mxu1 %v6130_v15  ;;  %5711 = vmatprep.subr.bf16.mxu0 %v6273_v1  ;;  %v6160_v15 = vld [vmem:[%s7516_s9 + $0x510] sm:$0xff]  }
 0x120   : > { %v1308_v19 = vpop.f32.mrb[4].mxu0  ;;  %5731 = vmatprep.subr.bf16.mxu1 %v6273_v1 }
 0x121   : > { %v1314_v20 = vadd.f32 %v1308_v19, %v7011_v53  ;;  %v5439_v21 = vpop.f32.mrb[5].mxu0  ;;  %v1415_v22 = vpop.f32.mrb[4].mxu1  ;;  %v4953_v53 = vcombine.low %v3122_v50, %v7168_v51  ;;  %v6164_v19 = vld [vmem:[%s7516_s9 + $0x520] sm:$0xff]  }
 0x122   : > { %v1311_v24 = vpop.f32.mrb[6].mxu0  ;;  %5712 = vmatpush3.bf16.msra.mxu0 %v6131_v17  ;;  %v5459_v26 = vpop.f32.mrb[5].mxu1  ;;  %v6162_v17 = vld [vmem:[%s7516_s9 + $0x518] sm:$0xff]   ;;  %v6166_v21 = vld [vmem:[%s7516_s9 + $0x528] sm:$0xff]   ;;  %v3463_v50 = vld [vmem:[%s7276_s0 + $0x4] sm:$0x1] }
 0x123   : > { %v7097_v27 = vadd.f32 %v1415_v22, %v1314_v20  ;;  %v5440_v28 = vpop.f32.mrb[7].mxu0  ;;  %5732 = vmatpush3.bf16.msra.mxu1 %v6132_v18  ;;  %5713 = vmatprep.subr.bf16.mxu0 %v6273_v1  ;;  %v1418_v31 = vpop.f32.mrb[6].mxu1  ;;  %v3149_v61 = vshll.u32 %v4953_v53, 16  ;;  %v3147_v6 = vshrl.u32 %v4953_v53, 16  ;;  %v6163_v18 = vld [vmem:[%s7516_s9 + $0x558] sm:$0xff]   ;;  %v6165_v20 = vld [vmem:[%s7516_s9 + $0x560] sm:$0xff]  }
 0x124   : > { %5733 = vmatprep.subr.bf16.mxu1 %v6273_v1  ;;  %v5460_v32 = vpop.f32.mrb[7].mxu1  ;;  %v6167_v22 = vld [vmem:[%s7516_s9 + $0x568] sm:$0xff]   ;;  %v6168_v28 = vld [vmem:[%s7516_s9 + $0x530] sm:$0xff]  }
 0x125   : > { %v3151_v7 = vrot.slane %v3149_v61, 1 }
 0x126   : > { %5714 = vmatpush3.bf16.msra.mxu0 %v6133_v25 }
 0x127   : > { %5734 = vmatpush3.bf16.msra.mxu1 %v6134_v29  ;;  %5715 = vmatprep.subr.bf16.mxu0 %v6273_v1  ;;  %v3152_v11 = vor.u32 %v3151_v7, %v3147_v6  ;;  %v3243_v29 = vld [vmem:[%s7157_s16] sm:$0xe] }
 0x128   : > { %5735 = vmatprep.subr.bf16.mxu1 %v6273_v1  ;;  %v4978_v36 = vcombine.low %v3243_v29, %v7168_v51  ;;  %v6181_v51 = vld [vmem:[%s7516_s9 + $0x5a0] sm:$0xff]  }
 0x12a   : > { %5716 = vmatpush3.bf16.msra.mxu0 %v6135_v35 }
 0x12b   : > { %5736 = vmatpush3.bf16.msra.mxu1 %v6136_v37  ;;  %5741 = vmatprep.subr.bf16.mxu0 %v6273_v1  ;;  %v6170_v37 = vld [vmem:[%s7516_s9 + $0x538] sm:$0xff]  }
 0x12c   : > { %5761 = vmatprep.subr.bf16.mxu1 %v6273_v1 }
 0x12d   : > { %5718 = vmatmul.mubr.bf16.vlgmr.msra.gmra.mrb[32].mxu0 %v2812_v38  ;;  %v6171_v38 = vld [vmem:[%s7516_s9 + $0x578] sm:$0xff]  }
 0x12e   : > { %5742 = vmatpush3.bf16.msra.mxu0 %v6138_v39  ;;  %5738 = vmatmul.mubr.bf16.vlgmr.msra.gmra.mrb[32].mxu1 %v2924_v40  ;;  %v3264_v39 = vrot.slane %v4978_v36, 1  ;;  %v6173_v40 = vld [vmem:[%s7516_s9 + $0x580] sm:$0xff]  }
 0x12f   : > { %5762 = vmatpush3.bf16.msra.mxu1 %v6140_v41  ;;  %5743 = vmatprep.subr.bf16.mxu0 %v6273_v1  ;;  %v3355_v41 = vld [vmem:[%s7276_s0] sm:$0xf] }
 0x130   : > { %5763 = vmatprep.subr.bf16.mxu1 %v6273_v1  ;;  %5757 = vmatprep.mubr.msk.bf16.mxu0 %vm6274_vm0, %v6273_v1 }
 0x131   : > { %5777 = vmatprep.mubr.msk.bf16.mxu1 %vm6274_vm0, %v6273_v1 }
 0x132   : > { %5744 = vmatpush3.bf16.msra.mxu0 %v6141_v42  ;;  %v6174_v42 = vld [vmem:[%s7516_s9 + $0x5c0] sm:$0xff]  }
 0x133   : > { %5764 = vmatpush3.bf16.msra.mxu1 %v6142_v43  ;;  %5745 = vmatprep.subr.bf16.mxu0 %v6273_v1  ;;  %v6175_v43 = vld [vmem:[%s7516_s9 + $0x588] sm:$0xff]  }
 0x134   : > { %5765 = vmatprep.subr.bf16.mxu1 %v6273_v1 }
 0x136   : > { %5746 = vmatpush3.bf16.msra.mxu0 %v6143_v44  ;;  %v6176_v44 = vld [vmem:[%s7516_s9 + $0x5c8] sm:$0xff]  }
 0x137   : > { %5766 = vmatpush3.bf16.msra.mxu1 %v6144_v45  ;;  %5747 = vmatprep.subr.bf16.mxu0 %v6273_v1  ;;  %v6177_v45 = vld [vmem:[%s7516_s9 + $0x590] sm:$0xff]  }
 0x138   : > { %5767 = vmatprep.subr.bf16.mxu1 %v6273_v1 }
 0x13a   : > { %5748 = vmatpush3.bf16.msra.mxu0 %v6145_v46  ;;  %v6178_v46 = vld [vmem:[%s7516_s9 + $0x5d0] sm:$0xff]  }
 0x13b   : > { %5768 = vmatpush3.bf16.msra.mxu1 %v6146_v47  ;;  %5749 = vmatprep.subr.bf16.mxu0 %v6273_v1  ;;  %v6179_v47 = vld [vmem:[%s7516_s9 + $0x598] sm:$0xff]  }
 0x13c   : > { %5769 = vmatprep.subr.bf16.mxu1 %v6273_v1 }
 0x13e   : > { %5750 = vmatpush3.bf16.msra.mxu0 %v6147_v48  ;;  %v6180_v48 = vld [vmem:[%s7516_s9 + $0x5d8] sm:$0xff]  }
 0x13f   : > { %5770 = vmatpush3.bf16.msra.mxu1 %v6148_v49  ;;  %5751 = vmatprep.subr.bf16.mxu0 %v6273_v1  ;;  %v3462_v49 = vld [vmem:[%s7276_s0] sm:$0xf] }
 0x140   : > { %v1536_v55 = vpop.f32.mrb[8].mxu0  ;;  %5771 = vmatprep.subr.bf16.mxu1 %v6273_v1  ;;  %v5027_v53 = vcombine.low %v3462_v49, %v3463_v50  ;;  %v6209_v49 = vld [vmem:[%s7516_s9 + $0x688] sm:$0xff]  }
 0x141   : > { %v1542_v56 = vadd.f32 %v1536_v55, %v7097_v27  ;;  %v5479_v57 = vpop.f32.mrb[9].mxu0  ;;  %v1648_v58 = vpop.f32.mrb[8].mxu1  ;;  %v6184_v55 = vld [vmem:[%s7516_s9 + $0x5e8] sm:$0xff]  }
 0x142   : > { %v1539_v59 = vpop.f32.mrb[10].mxu0  ;;  %5752 = vmatpush3.bf16.msra.mxu0 %v6149_v52  ;;  %v5499_v62 = vpop.f32.mrb[9].mxu1  ;;  %v6182_v52 = vld [vmem:[%s7516_s9 + $0x5e0] sm:$0xff]   ;;  %v3487_v7 = vshrl.u32 %v5027_v53, 16 }
 0x143   : > { %v1654_v63 = vadd.f32 %v1648_v58, %v1542_v56  ;;  %v5480_v0 = vpop.f32.mrb[11].mxu0  ;;  %5772 = vmatpush3.bf16.msra.mxu1 %v6150_v54  ;;  %5753 = vmatprep.subr.bf16.mxu0 %v6273_v1  ;;  %v1651_v3 = vpop.f32.mrb[10].mxu1  ;;  %v6183_v54 = vld [vmem:[%s7516_s9 + $0x5a8] sm:$0xff]   ;;  %v6185_v62 = vld [vmem:[%s7516_s9 + $0x5b0] sm:$0xff]  }
 0x144   : > { %5773 = vmatprep.subr.bf16.mxu1 %v6273_v1  ;;  %v5500_v4 = vpop.f32.mrb[11].mxu1  ;;  %v6186_v3 = vld [vmem:[%s7516_s9 + $0x5f0] sm:$0xff]  }
 0x145   : > { %v3583_v4 = vld [vmem:[%s7276_s0] sm:$0xe]  ;;  %s4480_s0 = sshll.u32 %s7549_s23, 6 }
 0x146   : > { %5754 = vmatpush3.bf16.msra.mxu0 %v6151_v60  ;;  %v3489_v60 = vshll.u32 %v5027_v53, 16  ;;  %v6213_v53 = vld [vmem:[%s7516_s9 + $0x6a8] sm:$0xff]  }
 0x147   : > { %5774 = vmatpush3.bf16.msra.mxu1 %v6152_v2  ;;  %5755 = vmatprep.subr.bf16.mxu0 %v6273_v1 }
 0x148   : > { %5775 = vmatprep.subr.bf16.mxu1 %v6273_v1 }
 0x14a   : > { %5756 = vmatpush3.bf16.msra.mxu0 %v6153_v5 }
 0x14b   : > { %5776 = vmatpush3.bf16.msra.mxu1 %v6154_v8  ;;  %5781 = vmatprep.subr.bf16.mxu0 %v6273_v1  ;;  %v3491_v8 = vrot.slane %v3489_v60, 1  ;;  %v3923_v60 = vld [vmem:[%s7395_s15] sm:$0xe] }
 0x14c   : > { %5801 = vmatprep.subr.bf16.mxu1 %v6273_v1 }
 0x14d   : > { %5758 = vmatmul.mubr.bf16.vlgmr.msra.gmra.mrb[36].mxu0 %v3015_v9  ;;  %v6187_v9 = vld [vmem:[%s7516_s9 + $0x5b8] sm:$0xff]  }
 0x14e   : > { %5782 = vmatpush3.bf16.msra.mxu0 %v6155_v10  ;;  %5778 = vmatmul.mubr.bf16.vlgmr.msra.gmra.mrb[36].mxu1 %v3152_v11  ;;  %v5052_v10 = vcombine.low %v3583_v4, %v3463_v50  ;;  %v6188_v11 = vld [vmem:[%s7516_s9 + $0x5f8] sm:$0xff]   ;;  %v6210_v50 = vld [vmem:[%s7516_s9 + $0x690] sm:$0xff]  }
 0x14f   : > { %5802 = vmatpush3.bf16.msra.mxu1 %v6157_v12  ;;  %5783 = vmatprep.subr.bf16.mxu0 %v6273_v1  ;;  %v3492_v12 = vor.u32 %v3491_v8, %v3487_v7  ;;  %v6215_v4 = vld [vmem:[%s7516_s9 + $0x6b8] sm:$0xff]  }
 0x150   : > { %5803 = vmatprep.subr.bf16.mxu1 %v6273_v1  ;;  %5797 = vmatprep.mubr.msk.bf16.mxu0 %vm6274_vm0, %v6273_v1 }
 0x151   : > { %5817 = vmatprep.mubr.msk.bf16.mxu1 %vm6274_vm0, %v6273_v1 }
 0x152   : > { %5784 = vmatpush3.bf16.msra.mxu0 %v6158_v13  ;;  %v6190_v13 = vld [vmem:[%s7516_s9 + $0x600] sm:$0xff]  }
 0x153   : > { %5804 = vmatpush3.bf16.msra.mxu1 %v6159_v14  ;;  %5785 = vmatprep.subr.bf16.mxu0 %v6273_v1  ;;  %v3604_v14 = vrot.slane %v5052_v10, 1 }
 0x154   : > { %5805 = vmatprep.subr.bf16.mxu1 %v6273_v1 }
 0x156   : > { %5786 = vmatpush3.bf16.msra.mxu0 %v6160_v15  ;;  %v6192_v15 = vld [vmem:[%s7516_s9 + $0x640] sm:$0xff]  }
 0x157   : > { %5806 = vmatpush3.bf16.msra.mxu1 %v6161_v16  ;;  %5787 = vmatprep.subr.bf16.mxu0 %v6273_v1  ;;  %v6193_v16 = vld [vmem:[%s7516_s9 + $0x608] sm:$0xff]  }
 0x158   : > { %5807 = vmatprep.subr.bf16.mxu1 %v6273_v1 }
 0x15a   : > { %5788 = vmatpush3.bf16.msra.mxu0 %v6162_v17  ;;  %v6194_v17 = vld [vmem:[%s7516_s9 + $0x648] sm:$0xff]  }
 0x15b   : > { %5808 = vmatpush3.bf16.msra.mxu1 %v6163_v18  ;;  %5789 = vmatprep.subr.bf16.mxu0 %v6273_v1  ;;  %v6195_v18 = vld [vmem:[%s7516_s9 + $0x610] sm:$0xff]  }
 0x15c   : > { %5809 = vmatprep.subr.bf16.mxu1 %v6273_v1 }
 0x15e   : > { %5790 = vmatpush3.bf16.msra.mxu0 %v6164_v19  ;;  %v6196_v19 = vld [vmem:[%s7516_s9 + $0x650] sm:$0xff]  }
 0x15f   : > { %5810 = vmatpush3.bf16.msra.mxu1 %v6165_v20  ;;  %5791 = vmatprep.subr.bf16.mxu0 %v6273_v1  ;;  %v6197_v20 = vld [vmem:[%s7516_s9 + $0x618] sm:$0xff]  }
 0x160   : > { %v1755_v23 = vpop.f32.mrb[12].mxu0  ;;  %5811 = vmatprep.subr.bf16.mxu1 %v6273_v1 }
 0x161   : > { %v1761_v24 = vadd.f32 %v1755_v23, %v1654_v63  ;;  %v5519_v25 = vpop.f32.mrb[13].mxu0  ;;  %v1876_v26 = vpop.f32.mrb[12].mxu1  ;;  %v6200_v23 = vld [vmem:[%s7516_s9 + $0x660] sm:$0xff]  }
 0x162   : > { %v1758_v27 = vpop.f32.mrb[14].mxu0  ;;  %5792 = vmatpush3.bf16.msra.mxu0 %v6166_v21  ;;  %v5539_v30 = vpop.f32.mrb[13].mxu1  ;;  %v6198_v21 = vld [vmem:[%s7516_s9 + $0x658] sm:$0xff]   ;;  %v7406_v25 = vld [vmem:[%s7395_s15 + $0x4] sm:$0x1] }
 0x163   : > { %v7257_v31 = vadd.f32 %v1876_v26, %v1761_v24  ;;  %v5520_v32 = vpop.f32.mrb[15].mxu0  ;;  %5812 = vmatpush3.bf16.msra.mxu1 %v6167_v22  ;;  %5793 = vmatprep.subr.bf16.mxu0 %v6273_v1  ;;  %v1879_v34 = vpop.f32.mrb[14].mxu1  ;;  %v6199_v22 = vld [vmem:[%s7516_s9 + $0x620] sm:$0xff]   ;;  %v6201_v26 = vld [vmem:[%s7516_s9 + $0x628] sm:$0xff]  }
 0x164   : > { %5813 = vmatprep.subr.bf16.mxu1 %v6273_v1  ;;  %v5540_v35 = vpop.f32.mrb[15].mxu1  ;;  %v3802_v24 = vld [vmem:[%s7395_s15] sm:$0xf]  ;;  %v6203_v34 = vld [vmem:[%s7516_s9 + $0x630] sm:$0xff]  }
 0x165   : > { %v5101_v27 = vcombine.low %v3802_v24, %v7406_v25 }
 0x166   : > { %5794 = vmatpush3.bf16.msra.mxu0 %v6168_v28  ;;  %v6202_v28 = vld [vmem:[%s7516_s9 + $0x668] sm:$0xff]  }
 0x167   : > { %5814 = vmatpush3.bf16.msra.mxu1 %v6169_v33  ;;  %5795 = vmatprep.subr.bf16.mxu0 %v6273_v1  ;;  %v3829_v35 = vshll.u32 %v5101_v27, 16 }
 0x168   : > { %5815 = vmatprep.subr.bf16.mxu1 %v6273_v1 }
 0x16a   : > { %5796 = vmatpush3.bf16.msra.mxu0 %v6170_v37 }
 0x16b   : > { %5816 = vmatpush3.bf16.msra.mxu1 %v6171_v38  ;;  %5821 = vmatprep.subr.bf16.mxu0 %v6273_v1 }
 0x16c   : > { %5841 = vmatprep.subr.bf16.mxu1 %v6273_v1 }
 0x16d   : > { %5798 = vmatmul.mubr.bf16.vlgmr.msra.gmra.mrb[40].mxu0 %v3264_v39  ;;  %v6204_v39 = vld [vmem:[%s7516_s9 + $0x670] sm:$0xff]  }
 0x16e   : > { %5822 = vmatpush3.bf16.msra.mxu0 %v6173_v40  ;;  %5818 = vmatmul.mubr.bf16.vlgmr.msra.gmra.mrb[40].mxu1 %v3355_v41 }
 0x16f   : > { %5842 = vmatpush3.bf16.msra.mxu1 %v6174_v42  ;;  %5823 = vmatprep.subr.bf16.mxu0 %v6273_v1  ;;  %v6205_v42 = vld [vmem:[%s7516_s9 + $0x638] sm:$0xff]  }
 0x170   : > { %5843 = vmatprep.subr.bf16.mxu1 %v6273_v1  ;;  %5837 = vmatprep.mubr.msk.bf16.mxu0 %vm6274_vm0, %v6273_v1 }
 0x171   : > { %5857 = vmatprep.mubr.msk.bf16.mxu1 %vm6274_vm0, %v6273_v1 }
 0x172   : > { %5824 = vmatpush3.bf16.msra.mxu0 %v6175_v43  ;;  %v3827_v43 = vshrl.u32 %v5101_v27, 16 }
 0x173   : > { %5844 = vmatpush3.bf16.msra.mxu1 %v6176_v44  ;;  %5825 = vmatprep.subr.bf16.mxu0 %v6273_v1  ;;  %v3831_v44 = vrot.slane %v3829_v35, 1 }
 0x174   : > { %5845 = vmatprep.subr.bf16.mxu1 %v6273_v1 }
 0x176   : > { %5826 = vmatpush3.bf16.msra.mxu0 %v6177_v45  ;;  %v6206_v45 = vld [vmem:[%s7516_s9 + $0x678] sm:$0xff]  }
 0x177   : > { %5846 = vmatpush3.bf16.msra.mxu1 %v6178_v46  ;;  %5827 = vmatprep.subr.bf16.mxu0 %v6273_v1  ;;  %v3695_v46 = vld [vmem:[%s7395_s15] sm:$0xf]  ;;  %s4479_s15 = sshll.u32 %s7559_s22, 3 }
 0x178   : > { %5847 = vmatprep.subr.bf16.mxu1 %v6273_v1  ;;  %s961_s1 = sadd.s32 %s4479_s15, %s7561_s21 }
 0x179   : > { %s963_s19 = sadd.s32 %s4480_s0, %s961_s1 }
 0x17a   : > { %5828 = vmatpush3.bf16.msra.mxu0 %v6179_v47  ;;  %v6207_v47 = vld [vmem:[%s7516_s9 + $0x680] sm:$0xff]   ;;  %s4481_s25 = sshll.u32 %s963_s19, 3  ;;  %s4484_s21 = sshll.u32 %s963_s19, 1 }
 0x17b   : > { %5848 = vmatpush3.bf16.msra.mxu1 %v6180_v48  ;;  %5829 = vmatprep.subr.bf16.mxu0 %v6273_v1  ;;  %v3832_v48 = vor.u32 %v3831_v44, %v3827_v43  ;;  %s965_s13 = scalar_lea.vmem %s7518_s11, %s4481_s25  ;;  %s977_s30 = scalar_lea.vmem %s7519_s12, %s4484_s21 }
 0x17c   : > { %5849 = vmatprep.subr.bf16.mxu1 %v6273_v1 }
 0x17e   : > { %5830 = vmatpush3.bf16.msra.mxu0 %v6181_v51  ;;  %v6211_v51 = vld [vmem:[%s7516_s9 + $0x698] sm:$0xff]  }
 0x17f   : > { %5850 = vmatpush3.bf16.msra.mxu1 %v6182_v52  ;;  %5831 = vmatprep.subr.bf16.mxu0 %v6273_v1  ;;  %v6212_v52 = vld [vmem:[%s7516_s9 + $0x6a0] sm:$0xff]  }
 0x180   : > { %v1988_v56 = vpop.f32.mrb[16].mxu0  ;;  %5851 = vmatprep.subr.bf16.mxu1 %v6273_v1 }
 0x181   : > { %v1994_v57 = vadd.f32 %v1988_v56, %v7257_v31  ;;  %v5559_v58 = vpop.f32.mrb[17].mxu0  ;;  %v2095_v59 = vpop.f32.mrb[16].mxu1 }
 0x182   : > { %v1991_v61 = vpop.f32.mrb[18].mxu0  ;;  %5832 = vmatpush3.bf16.msra.mxu0 %v6183_v54  ;;  %v5579_v63 = vpop.f32.mrb[17].mxu1 }
 0x183   : > { %v7337_v0 = vadd.f32 %v2095_v59, %v1994_v57  ;;  %v5560_v2 = vpop.f32.mrb[19].mxu0  ;;  %5852 = vmatpush3.bf16.msra.mxu1 %v6184_v55  ;;  %5833 = vmatprep.subr.bf16.mxu0 %v6273_v1  ;;  %v2098_v5 = vpop.f32.mrb[18].mxu1  ;;  %v6214_v59 = vld [vmem:[%s7516_s9 + $0x6b0] sm:$0xff]  }
 0x184   : > { %5853 = vmatprep.subr.bf16.mxu1 %v6273_v1  ;;  %v5580_v6 = vpop.f32.mrb[19].mxu1 }
 0x186   : > { %5834 = vmatpush3.bf16.msra.mxu0 %v6185_v62 }
 0x187   : > { %5854 = vmatpush3.bf16.msra.mxu1 %v6186_v3  ;;  %5835 = vmatprep.subr.bf16.mxu0 %v6273_v1  ;;  %v5126_v3 = vcombine.low %v3923_v60, %v7406_v25 }
 0x188   : > { %5855 = vmatprep.subr.bf16.mxu1 %v6273_v1 }
 0x189   : > { %v3944_v5 = vrot.slane %v5126_v3, 1  ;;  %v5135_v3 = vld [vmem:[%s7517_s10] ss:$0 sm:$0xff] }
 0x18a   : > { %5836 = vmatpush3.bf16.msra.mxu0 %v6187_v9 }
 0x18b   : > { %5856 = vmatpush3.bf16.msra.mxu1 %v6188_v11  ;;  %5861 = vmatprep.subr.bf16.mxu0 %v6273_v1 }
 0x18c   : > { %5881 = vmatprep.subr.bf16.mxu1 %v6273_v1 }
 0x18d   : > { %5838 = vmatmul.mubr.bf16.vlgmr.msra.gmra.mrb[44].mxu0 %v3492_v12 }
 0x18e   : > { %5862 = vmatpush3.bf16.msra.mxu0 %v6190_v13  ;;  %5858 = vmatmul.mubr.bf16.vlgmr.msra.gmra.mrb[44].mxu1 %v3604_v14 }
 0x18f   : > { %5882 = vmatpush3.bf16.msra.mxu1 %v6192_v15  ;;  %5863 = vmatprep.subr.bf16.mxu0 %v6273_v1 }
 0x190   : > { %5883 = vmatprep.subr.bf16.mxu1 %v6273_v1  ;;  %5877 = vmatprep.mubr.msk.bf16.mxu0 %vm6274_vm0, %v6273_v1 }
 0x191   : > { %5897 = vmatprep.mubr.msk.bf16.mxu1 %vm6274_vm0, %v6273_v1 }
 0x192   : > { %5864 = vmatpush3.bf16.msra.mxu0 %v6193_v16 }
 0x193   : > { %5884 = vmatpush3.bf16.msra.mxu1 %v6194_v17  ;;  %5865 = vmatprep.subr.bf16.mxu0 %v6273_v1 }
 0x194   : > { %5885 = vmatprep.subr.bf16.mxu1 %v6273_v1 }
 0x196   : > { %5866 = vmatpush3.bf16.msra.mxu0 %v6195_v18 }
 0x197   : > { %5886 = vmatpush3.bf16.msra.mxu1 %v6196_v19  ;;  %5867 = vmatprep.subr.bf16.mxu0 %v6273_v1 }
 0x198   : > { %5887 = vmatprep.subr.bf16.mxu1 %v6273_v1 }
 0x19a   : > { %5868 = vmatpush3.bf16.msra.mxu0 %v6197_v20 }
 0x19b   : > { %5888 = vmatpush3.bf16.msra.mxu1 %v6198_v21  ;;  %5869 = vmatprep.subr.bf16.mxu0 %v6273_v1 }
 0x19c   : > { %5889 = vmatprep.subr.bf16.mxu1 %v6273_v1 }
 0x19e   : > { %5870 = vmatpush3.bf16.msra.mxu0 %v6199_v22 }
 0x19f   : > { %5890 = vmatpush3.bf16.msra.mxu1 %v6200_v23  ;;  %5871 = vmatprep.subr.bf16.mxu0 %v6273_v1 }
 0x1a0   : > { %v2216_v29 = vpop.f32.mrb[20].mxu0  ;;  %5891 = vmatprep.subr.bf16.mxu1 %v6273_v1 }
 0x1a1   : > { %v2222_v30 = vadd.f32 %v2216_v29, %v7337_v0  ;;  %v5599_v31 = vpop.f32.mrb[21].mxu0  ;;  %v2328_v32 = vpop.f32.mrb[20].mxu1 }
 0x1a2   : > { %v2219_v33 = vpop.f32.mrb[22].mxu0  ;;  %5872 = vmatpush3.bf16.msra.mxu0 %v6201_v26  ;;  %v5619_v36 = vpop.f32.mrb[21].mxu1 }
 0x1a3   : > { %v2334_v37 = vadd.f32 %v2328_v32, %v2222_v30  ;;  %v5600_v38 = vpop.f32.mrb[23].mxu0  ;;  %5892 = vmatpush3.bf16.msra.mxu1 %v6202_v28  ;;  %5873 = vmatprep.subr.bf16.mxu0 %v6273_v1  ;;  %v2331_v40 = vpop.f32.mrb[22].mxu1 }
 0x1a4   : > { %5893 = vmatprep.subr.bf16.mxu1 %v6273_v1  ;;  %v5620_v41 = vpop.f32.mrb[23].mxu1 }
 0x1a6   : > { %5874 = vmatpush3.bf16.msra.mxu0 %v6203_v34 }
 0x1a7   : > { %5894 = vmatpush3.bf16.msra.mxu1 %v6204_v39  ;;  %5875 = vmatprep.subr.bf16.mxu0 %v6273_v1 }
 0x1a8   : > { %5895 = vmatprep.subr.bf16.mxu1 %v6273_v1 }
 0x1aa   : > { %5876 = vmatpush3.bf16.msra.mxu0 %v6205_v42 }
 0x1ab   : > { %5896 = vmatpush3.bf16.msra.mxu1 %v6206_v45  ;;  %5901 = vmatprep.subr.bf16.mxu0 %v6273_v1 }
 0x1ad   : > { %5878 = vmatmul.mubr.bf16.vlgmr.msra.gmra.mrb[48].mxu0 %v3695_v46 }
 0x1ae   : > { %5902 = vmatpush3.bf16.msra.mxu0 %v6207_v47  ;;  %5898 = vmatmul.mubr.bf16.vlgmr.msra.gmra.mrb[48].mxu1 %v3832_v48 }
 0x1af   : > { %5903 = vmatprep.subr.bf16.mxu0 %v6273_v1  ;;  %5917 = vmatprep.mubr.msk.bf16.mxu0 %vm6274_vm0, %v6273_v1 }
 0x1b2   : > { %5904 = vmatpush3.bf16.msra.mxu0 %v6209_v49 }
 0x1b3   : > { %5905 = vmatprep.subr.bf16.mxu0 %v6273_v1 }
 0x1b6   : > { %5906 = vmatpush3.bf16.msra.mxu0 %v6210_v50 }
 0x1b7   : > { %5907 = vmatprep.subr.bf16.mxu0 %v6273_v1 }
 0x1ba   : > { %5908 = vmatpush3.bf16.msra.mxu0 %v6211_v51 }
 0x1bb   : > { %5909 = vmatprep.subr.bf16.mxu0 %v6273_v1 }
 0x1be   : > { %5910 = vmatpush3.bf16.msra.mxu0 %v6212_v52 }
 0x1bf   : > { %5911 = vmatprep.subr.bf16.mxu0 %v6273_v1 }
 0x1c0   : > { %v2435_v54 = vpop.f32.mrb[24].mxu0 }
 0x1c1   : > { %v2441_v55 = vadd.f32 %v2435_v54, %v2334_v37  ;;  %v5639_v56 = vpop.f32.mrb[25].mxu0  ;;  %v2556_v57 = vpop.f32.mrb[24].mxu1 }
 0x1c2   : > { %v2438_v58 = vpop.f32.mrb[26].mxu0  ;;  %5912 = vmatpush3.bf16.msra.mxu0 %v6213_v53  ;;  %v5659_v61 = vpop.f32.mrb[25].mxu1 }
 0x1c3   : > { %v2562_v62 = vadd.f32 %v2556_v57, %v2441_v55  ;;  %v5640_v63 = vpop.f32.mrb[27].mxu0  ;;  %5913 = vmatprep.subr.bf16.mxu0 %v6273_v1  ;;  %v2559_v0 = vpop.f32.mrb[26].mxu1 }
 0x1c4   : > { %v5660_v2 = vpop.f32.mrb[27].mxu1 }
 0x1c6   : > { %5914 = vmatpush3.bf16.msra.mxu0 %v6214_v59 }
 0x1c7   : > { %5915 = vmatprep.subr.bf16.mxu0 %v6273_v1 }
 0x1ca   : > { %5916 = vmatpush3.bf16.msra.mxu0 %v6215_v4 }
 0x1cd   : > { %5918 = vmatmul.mubr.bf16.vlgmr.msra.gmra.mrb[52].mxu0 %v3944_v5 }
 0x1e0   : > { %v2668_v6 = vpop.f32.mrb[28].mxu0 }
 0x1e1   : > { %v2674_v7 = vadd.f32 %v2668_v6, %v2562_v62  ;;  %v5679_v8 = vpop.f32.mrb[29].mxu0  ;;  %v2775_v9 = vpop.f32.mrb[28].mxu1 }
 0x1e2   : > { %v2671_v10 = vpop.f32.mrb[30].mxu0  ;;  %v5699_v11 = vpop.f32.mrb[29].mxu1 }
 0x1e3   : > { %v2781_v12 = vadd.f32 %v2775_v9, %v2674_v7  ;;  %v5680_v13 = vpop.f32.mrb[31].mxu0  ;;  %v2778_v14 = vpop.f32.mrb[30].mxu1 }
 0x1e4   : > { %v5700_v15 = vpop.f32.mrb[31].mxu1 }
 0x200   : > { %v2896_v16 = vpop.f32.mrb[32].mxu0 }
 0x201   : > { %v2902_v17 = vadd.f32 %v2896_v16, %v2781_v12  ;;  %v5719_v18 = vpop.f32.mrb[33].mxu0  ;;  %v3008_v19 = vpop.f32.mrb[32].mxu1 }
 0x202   : > { %v2899_v20 = vpop.f32.mrb[34].mxu0  ;;  %v5739_v21 = vpop.f32.mrb[33].mxu1 }
 0x203   : > { %v3014_v1 = vadd.f32 %v3008_v19, %v2902_v17  ;;  %v5720_v22 = vpop.f32.mrb[35].mxu0  ;;  %v3011_v23 = vpop.f32.mrb[34].mxu1 }
 0x204   : > { %v5740_v24 = vpop.f32.mrb[35].mxu1 }
 0x220   : > { %v3115_v25 = vpop.f32.mrb[36].mxu0 }
 0x221   : > { %v3121_v26 = vadd.f32 %v3115_v25, %v3014_v1  ;;  %v5759_v27 = vpop.f32.mrb[37].mxu0  ;;  %v3236_v28 = vpop.f32.mrb[36].mxu1 }
 0x222   : > { %v3118_v29 = vpop.f32.mrb[38].mxu0  ;;  %v5779_v30 = vpop.f32.mrb[37].mxu1 }
 0x223   : > { %v3242_v31 = vadd.f32 %v3236_v28, %v3121_v26  ;;  %v5760_v32 = vpop.f32.mrb[39].mxu0  ;;  %v3239_v33 = vpop.f32.mrb[38].mxu1 }
 0x224   : > { %v5780_v34 = vpop.f32.mrb[39].mxu1 }
 0x240   : > { %v3348_v35 = vpop.f32.mrb[40].mxu0 }
 0x241   : > { %v3354_v36 = vadd.f32 %v3348_v35, %v3242_v31  ;;  %v5799_v37 = vpop.f32.mrb[41].mxu0  ;;  %v3455_v38 = vpop.f32.mrb[40].mxu1 }
 0x242   : > { %v3351_v39 = vpop.f32.mrb[42].mxu0  ;;  %v5819_v40 = vpop.f32.mrb[41].mxu1 }
 0x243   : > { %v3461_v41 = vadd.f32 %v3455_v38, %v3354_v36  ;;  %v5800_v42 = vpop.f32.mrb[43].mxu0  ;;  %v3458_v43 = vpop.f32.mrb[42].mxu1 }
 0x244   : > { %v5820_v44 = vpop.f32.mrb[43].mxu1 }
 0x260   : > { %v3576_v45 = vpop.f32.mrb[44].mxu0 }
 0x261   : > { %v3582_v46 = vadd.f32 %v3576_v45, %v3461_v41  ;;  %v5839_v47 = vpop.f32.mrb[45].mxu0  ;;  %v3688_v48 = vpop.f32.mrb[44].mxu1 }
 0x262   : > { %v3579_v49 = vpop.f32.mrb[46].mxu0  ;;  %v5859_v50 = vpop.f32.mrb[45].mxu1 }
 0x263   : > { %v3694_v51 = vadd.f32 %v3688_v48, %v3582_v46  ;;  %v5840_v52 = vpop.f32.mrb[47].mxu0  ;;  %v3691_v53 = vpop.f32.mrb[46].mxu1 }
 0x264   : > { %v5860_v54 = vpop.f32.mrb[47].mxu1 }
 0x280   : > { %v3795_v55 = vpop.f32.mrb[48].mxu0 }
 0x281   : > { %v3801_v56 = vadd.f32 %v3795_v55, %v3694_v51  ;;  %v5879_v57 = vpop.f32.mrb[49].mxu0  ;;  %v3916_v58 = vpop.f32.mrb[48].mxu1 }
 0x282   : > { %v3798_v59 = vpop.f32.mrb[50].mxu0  ;;  %v5899_v60 = vpop.f32.mrb[49].mxu1 }
 0x283   : > { %v3922_v61 = vadd.f32 %v3916_v58, %v3801_v56  ;;  %v5880_v62 = vpop.f32.mrb[51].mxu0  ;;  %v3919_v63 = vpop.f32.mrb[50].mxu1 }
 0x284   : > { %v5900_v0 = vpop.f32.mrb[51].mxu1 }
 0x2a0   : > { %v4028_v2 = vpop.f32.mrb[52].mxu0 }
 0x2a1   : > { %v4034_v4 = vadd.f32 %v4028_v2, %v3922_v61  ;;  %v5919_v5 = vpop.f32.mrb[53].mxu0 }
 0x2a2   : > { %v4031_v6 = vpop.f32.mrb[54].mxu0 }
 0x2a3   : > { %v4042_v7 = vadd.f32 %v5135_v3, %v4034_v4  ;;  %v5920_v8 = vpop.f32.mrb[55].mxu0 }
 0x2a5   : > { %4043 = vst [vmem:[%s965_s13] sm:$0xff] %v4042_v7  ;;  %v4044_v9 = vrot.slane %v4042_v7, 4  ;;  %v4050_v10 = vmul.f32 %v4042_v7, %v4042_v7 }
 0x2a7   : > { %v4045_v11 = vadd.f32 %v4044_v9, %v4042_v7  ;;  %v4051_v12 = vrot.slane %v4050_v10, 4 }
 0x2a9   : > { %v4046_v13 = vrot.slane %v4045_v11, 2  ;;  %v4052_v14 = vadd.f32 %v4051_v12, %v4050_v10 }
 0x2ab   : > { %v4047_v15 = vadd.f32 %v4046_v13, %v4045_v11  ;;  %v4053_v16 = vrot.slane %v4052_v14, 2 }
 0x2ad   : > { %v4048_v17 = vrot.slane %v4047_v15, 1  ;;  %v4054_v18 = vadd.f32 %v4053_v16, %v4052_v14 }
 0x2af   : > { %v4055_v19 = vrot.slane %v4054_v18, 1  ;;  %v4049_v20 = vadd.f32 %v4048_v17, %v4047_v15 }
 0x2b1   : > { %v4056_v21 = vadd.f32 %v4055_v19, %v4054_v18 }
 0x2b3   : > { %v4058_v1 = vsel %vm4057_vm1, %v4049_v20, %v4056_v21 }
 0x2b4   : > { %4059 = vst [vmem:[%s977_s30] sm:$0x3] %v4058_v1 }
 0x2b5 PF: > { %s23_s27 = sadd.s32 1, %s6271_s27   ;;  %s7531_s22 = sld [smem:[#allocation2_spill]] }
 0x2b6   : > { %p20_p1 = scmp.ge.s32.totalorder %s23_s27, 130   ;;  %s7532_s23 = sld [smem:[#allocation3_spill]] }
 0x2b7   : > { %s7533_s16 = sld [smem:[#allocation4_spill]]  ;;  %s7534_s25 = sld [smem:[#allocation5_spill]] }
 0x2b8   : > { %s7535_s26 = sld [smem:[#allocation6_spill]]  ;;  %s7536_s21 = smov %s6259_s24 }
 0x2b9   :  { %22 = sbr.rel (!%p20_p1) target bundleno = 5 (0x5), region = 156 }
 0x2bd   : > { %s7537_s24 = smov %s7533_s16 }

// kernel: inconv_forward.7
= control target key start
LH: loop header
LB: loop body
LE: loop exit
PB: predicated region body
PF: predicated region fallthrough
CT: control target
= control target key end

     0   :  { %s574_s9 = smov 0   ;;  %s858_s0 = inlined_call_operand.vmem [shape: f32[1024,128], index: 0, kind: input, shape index: {}]   ;;  %s859_s1 = inlined_call_operand.vmem [shape: f32[2,128], index: 1, kind: input, shape index: {}]   ;;  %s860_s2 = inlined_call_operand.vmem [shape: f32[1024,128], index: 2, kind: output, shape index: {}]  }
   0x1 LB: > { %s532_s10 = sadd.s32 4294967295, %s557_s9   ;;  %p536_p0 = scmp.ge.s32.totalorder %s557_s9, 1  ;;  %s557_s9 = sphi %s574_s9, %s12_s9  }
   0x2   : > { %p113_p1 = scmp.lt.s32.totalorder %s557_s9, 3 }
   0x4   : > { %p114_p2 = pnand %p536_p0, %p113_p1 }
   0x5   : > { %s537_s11 = sshll.u32 (!%p114_p2), %s532_s10, 6  ;;  %v212_v0 = vlaneseq (!%p114_p2)  ;;  %v147_v2 = vld [vmem:[%s859_s1] sm:$0x3] (!%p114_p2) }
   0x6   : > { %117 = sbr.rel (%p114_p2) target bundleno = 70 (0x46), region = 28  ;;  %p136_p3 = scmp.lt.s32.totalorder (!%p114_p2), %s537_s11, 127 }
   0x7   : > { %v213_v1 = vshrl.u32 (!%p114_p2), %v212_v0, 7 }
   0x9   : > { %v214_v3 = vsub.s32 (!%p114_p2), 0, %v213_v1  ;;  %v282_v4 = vsub.s32 (!%p114_p2), 1, %v213_v1 }
   0xb   : > { %v590_v5 = vrot.slane (!%p114_p2), %v147_v2, %v214_v3  ;;  %v592_v6 = vrot.slane (!%p114_p2), %v147_v2, %v282_v4 }
   0xd   : > { %s862_s11 = smov (!%p136_p3, %s537_s11), 127 }
   0xe   : > { %s538_s14 = sshll.u32 %s862_s11, 3 }
   0xf   : > { %s588_s17 = scalar_lea.vmem %s858_s0, %s538_s14  ;;  %s615_s20 = scalar_lea.vmem %s860_s2, %s538_s14 }
  0x10   : > { %v148_v7 = vld [vmem:[%s588_s17] sm:$0xff]  ;;  %v149_v8 = vld [vmem:[%s588_s17 + $0x8] sm:$0xff]  ;;  %v150_v9 = vld [vmem:[%s588_s17 + $0x10] sm:$0xff] }
  0x11   : > { %v216_v10 = vmul.f32 %v590_v5, %v148_v7  ;;  %v217_v11 = vmul.f32 %v590_v5, %v149_v8  ;;  %v218_v12 = vmul.f32 %v590_v5, %v150_v9  ;;  %v151_v13 = vld [vmem:[%s588_s17 + $0x18] sm:$0xff]  ;;  %v152_v14 = vld [vmem:[%s588_s17 + $0x20] sm:$0xff]  ;;  %v153_v15 = vld [vmem:[%s588_s17 + $0x28] sm:$0xff] }
  0x12   : > { %v219_v16 = vmul.f32 %v590_v5, %v151_v13  ;;  %v220_v17 = vmul.f32 %v590_v5, %v152_v14  ;;  %v221_v18 = vmul.f32 %v590_v5, %v153_v15  ;;  %v154_v19 = vld [vmem:[%s588_s17 + $0x30] sm:$0xff]  ;;  %v155_v20 = vld [vmem:[%s588_s17 + $0x38] sm:$0xff]  ;;  %v156_v29 = vld [vmem:[%s588_s17 + $0x40] sm:$0xff] }
  0x13   : > { %v284_v21 = vadd.f32 %v592_v6, %v216_v10  ;;  %v285_v22 = vadd.f32 %v592_v6, %v217_v11  ;;  %v286_v23 = vadd.f32 %v592_v6, %v218_v12  ;;  %v222_v24 = vmul.f32 %v590_v5, %v154_v19  ;;  %v157_v30 = vld [vmem:[%s588_s17 + $0x48] sm:$0xff]  ;;  %v158_v31 = vld [vmem:[%s588_s17 + $0x50] sm:$0xff]  ;;  %v159_v36 = vld [vmem:[%s588_s17 + $0x58] sm:$0xff] }
  0x14   : > { %v287_v25 = vadd.f32 %v592_v6, %v219_v16  ;;  %v288_v26 = vadd.f32 %v592_v6, %v220_v17  ;;  %v289_v27 = vadd.f32 %v592_v6, %v221_v18  ;;  %v223_v28 = vmul.f32 %v590_v5, %v155_v20  ;;  %v160_v37 = vld [vmem:[%s588_s17 + $0x60] sm:$0xff]  ;;  %v161_v38 = vld [vmem:[%s588_s17 + $0x68] sm:$0xff]  ;;  %v162_v43 = vld [vmem:[%s588_s17 + $0x70] sm:$0xff] }
  0x15   : > { %v348_v32 = vmax.f32 %v284_v21, 0.0  ;;  %v349_v33 = vmax.f32 %v285_v22, 0.0  ;;  %v350_v34 = vmax.f32 %v286_v23, 0.0  ;;  %v290_v35 = vadd.f32 %v592_v6, %v222_v24  ;;  %v163_v48 = vld [vmem:[%s588_s17 + $0x78] sm:$0xff]  ;;  %v164_v61 = vld [vmem:[%s588_s17 + $0x80] sm:$0xff]  ;;  %v165_v62 = vld [vmem:[%s588_s17 + $0x88] sm:$0xff] }
  0x16   : > { %v351_v39 = vmax.f32 %v287_v25, 0.0  ;;  %v352_v40 = vmax.f32 %v288_v26, 0.0  ;;  %v353_v41 = vmax.f32 %v289_v27, 0.0  ;;  %v291_v42 = vadd.f32 %v592_v6, %v223_v28  ;;  %v166_v63 = vld [vmem:[%s588_s17 + $0x90] sm:$0xff]  ;;  %v167_v4 = vld [vmem:[%s588_s17 + $0x98] sm:$0xff]  ;;  %v168_v7 = vld [vmem:[%s588_s17 + $0xa0] sm:$0xff] }
  0x17   : > { %412 = vst [vmem:[%s615_s20] sm:$0xff] %v348_v32  ;;  %413 = vst [vmem:[%s615_s20 + $0x8] sm:$0xff] %v349_v33  ;;  %v354_v44 = vmax.f32 %v290_v35, 0.0  ;;  %v224_v45 = vmul.f32 %v590_v5, %v156_v29  ;;  %v225_v46 = vmul.f32 %v590_v5, %v157_v30  ;;  %v226_v47 = vmul.f32 %v590_v5, %v158_v31  ;;  %v169_v8 = vld [vmem:[%s588_s17 + $0xa8] sm:$0xff]  ;;  %v170_v13 = vld [vmem:[%s588_s17 + $0xb0] sm:$0xff] }
  0x18   : > { %414 = vst [vmem:[%s615_s20 + $0x10] sm:$0xff] %v350_v34  ;;  %415 = vst [vmem:[%s615_s20 + $0x18] sm:$0xff] %v351_v39  ;;  %v355_v49 = vmax.f32 %v291_v42, 0.0  ;;  %v227_v50 = vmul.f32 %v590_v5, %v159_v36  ;;  %v228_v51 = vmul.f32 %v590_v5, %v160_v37  ;;  %v229_v52 = vmul.f32 %v590_v5, %v161_v38  ;;  %v171_v18 = vld [vmem:[%s588_s17 + $0xb8] sm:$0xff]  ;;  %v172_v31 = vld [vmem:[%s588_s17 + $0xc0] sm:$0xff] }
  0x19   : > { %416 = vst [vmem:[%s615_s20 + $0x20] sm:$0xff] %v352_v40  ;;  %417 = vst [vmem:[%s615_s20 + $0x28] sm:$0xff] %v353_v41  ;;  %v292_v53 = vadd.f32 %v592_v6, %v224_v45  ;;  %v293_v54 = vadd.f32 %v592_v6, %v225_v46  ;;  %v294_v55 = vadd.f32 %v592_v6, %v226_v47  ;;  %v173_v32 = vld [vmem:[%s588_s17 + $0xc8] sm:$0xff]  ;;  %v174_v33 = vld [vmem:[%s588_s17 + $0xd0] sm:$0xff] }
  0x1a   : > { %418 = vst [vmem:[%s615_s20 + $0x30] sm:$0xff] %v354_v44  ;;  %v230_v56 = vmul.f32 %v590_v5, %v162_v43  ;;  %419 = vst [vmem:[%s615_s20 + $0x38] sm:$0xff] %v355_v49  ;;  %v295_v57 = vadd.f32 %v592_v6, %v227_v50  ;;  %v296_v58 = vadd.f32 %v592_v6, %v228_v51  ;;  %v175_v38 = vld [vmem:[%s588_s17 + $0xd8] sm:$0xff]  ;;  %v176_v39 = vld [vmem:[%s588_s17 + $0xe0] sm:$0xff] }
  0x1b   : > { %v297_v59 = vadd.f32 %v592_v6, %v229_v52  ;;  %v231_v60 = vmul.f32 %v590_v5, %v163_v48  ;;  %v356_v0 = vmax.f32 %v292_v53, 0.0  ;;  %v357_v1 = vmax.f32 %v293_v54, 0.0  ;;  %v177_v40 = vld [vmem:[%s588_s17 + $0xe8] sm:$0xff]  ;;  %v178_v45 = vld [vmem:[%s588_s17 + $0xf0] sm:$0xff]  ;;  %v179_v50 = vld [vmem:[%s588_s17 + $0xf8] sm:$0xff] }
  0x1c   : > { %v358_v2 = vmax.f32 %v294_v55, 0.0  ;;  %v298_v3 = vadd.f32 %v592_v6, %v230_v56  ;;  %v359_v9 = vmax.f32 %v295_v57, 0.0  ;;  %v360_v10 = vmax.f32 %v296_v58, 0.0 }
  0x1d   : > { %v361_v11 = vmax.f32 %v297_v59, 0.0  ;;  %v299_v12 = vadd.f32 %v592_v6, %v231_v60  ;;  %420 = vst [vmem:[%s615_s20 + $0x40] sm:$0xff] %v356_v0  ;;  %421 = vst [vmem:[%s615_s20 + $0x48] sm:$0xff] %v357_v1  ;;  %v232_v15 = vmul.f32 %v590_v5, %v164_v61  ;;  %v233_v16 = vmul.f32 %v590_v5, %v165_v62  ;;  %v181_v0 = vld [vmem:[%s588_s17 + $0x108] sm:$0xff]  ;;  %v182_v1 = vld [vmem:[%s588_s17 + $0x110] sm:$0xff] }
  0x1e   : > { %422 = vst [vmem:[%s615_s20 + $0x50] sm:$0xff] %v358_v2  ;;  %v362_v14 = vmax.f32 %v298_v3, 0.0  ;;  %v234_v17 = vmul.f32 %v590_v5, %v166_v63  ;;  %423 = vst [vmem:[%s615_s20 + $0x58] sm:$0xff] %v359_v9  ;;  %v235_v20 = vmul.f32 %v590_v5, %v167_v4  ;;  %v236_v21 = vmul.f32 %v590_v5, %v168_v7  ;;  %v180_v63 = vld [vmem:[%s588_s17 + $0x100] sm:$0xff] }
  0x1f   : > { %424 = vst [vmem:[%s615_s20 + $0x60] sm:$0xff] %v360_v10  ;;  %425 = vst [vmem:[%s615_s20 + $0x68] sm:$0xff] %v361_v11  ;;  %v363_v19 = vmax.f32 %v299_v12, 0.0  ;;  %v237_v22 = vmul.f32 %v590_v5, %v169_v8  ;;  %v300_v23 = vadd.f32 %v592_v6, %v232_v15  ;;  %v301_v24 = vadd.f32 %v592_v6, %v233_v16  ;;  %v183_v8 = vld [vmem:[%s588_s17 + $0x118] sm:$0xff]  ;;  %v184_v9 = vld [vmem:[%s588_s17 + $0x120] sm:$0xff] }
  0x20   : > { %426 = vst [vmem:[%s615_s20 + $0x70] sm:$0xff] %v362_v14  ;;  %v302_v25 = vadd.f32 %v592_v6, %v234_v17  ;;  %v238_v26 = vmul.f32 %v590_v5, %v170_v13  ;;  %v303_v27 = vadd.f32 %v592_v6, %v235_v20  ;;  %v304_v28 = vadd.f32 %v592_v6, %v236_v21  ;;  %v185_v10 = vld [vmem:[%s588_s17 + $0x128] sm:$0xff]  ;;  %v186_v15 = vld [vmem:[%s588_s17 + $0x130] sm:$0xff]  ;;  %v187_v20 = vld [vmem:[%s588_s17 + $0x138] sm:$0xff] }
  0x21   : > { %427 = vst [vmem:[%s615_s20 + $0x78] sm:$0xff] %v363_v19  ;;  %v305_v29 = vadd.f32 %v592_v6, %v237_v22  ;;  %v239_v30 = vmul.f32 %v590_v5, %v171_v18  ;;  %v364_v34 = vmax.f32 %v300_v23, 0.0  ;;  %v365_v35 = vmax.f32 %v301_v24, 0.0 }
  0x22   : > { %v366_v36 = vmax.f32 %v302_v25, 0.0  ;;  %v306_v37 = vadd.f32 %v592_v6, %v238_v26  ;;  %v367_v41 = vmax.f32 %v303_v27, 0.0  ;;  %v368_v42 = vmax.f32 %v304_v28, 0.0 }
  0x23   : > { %v369_v43 = vmax.f32 %v305_v29, 0.0  ;;  %v307_v44 = vadd.f32 %v592_v6, %v239_v30  ;;  %428 = vst [vmem:[%s615_s20 + $0x80] sm:$0xff] %v364_v34  ;;  %429 = vst [vmem:[%s615_s20 + $0x88] sm:$0xff] %v365_v35  ;;  %v240_v47 = vmul.f32 %v590_v5, %v172_v31  ;;  %v241_v48 = vmul.f32 %v590_v5, %v173_v32  ;;  %v189_v34 = vld [vmem:[%s588_s17 + $0x148] sm:$0xff]  ;;  %v190_v35 = vld [vmem:[%s588_s17 + $0x150] sm:$0xff] }
  0x24   : > { %430 = vst [vmem:[%s615_s20 + $0x90] sm:$0xff] %v366_v36  ;;  %v370_v46 = vmax.f32 %v306_v37, 0.0  ;;  %v242_v49 = vmul.f32 %v590_v5, %v174_v33  ;;  %431 = vst [vmem:[%s615_s20 + $0x98] sm:$0xff] %v367_v41  ;;  %v243_v52 = vmul.f32 %v590_v5, %v175_v38  ;;  %v244_v53 = vmul.f32 %v590_v5, %v176_v39  ;;  %v188_v33 = vld [vmem:[%s588_s17 + $0x140] sm:$0xff] }
  0x25   : > { %432 = vst [vmem:[%s615_s20 + $0xa0] sm:$0xff] %v368_v42  ;;  %433 = vst [vmem:[%s615_s20 + $0xa8] sm:$0xff] %v369_v43  ;;  %v371_v51 = vmax.f32 %v307_v44, 0.0  ;;  %v245_v54 = vmul.f32 %v590_v5, %v177_v40  ;;  %v308_v55 = vadd.f32 %v592_v6, %v240_v47  ;;  %v309_v56 = vadd.f32 %v592_v6, %v241_v48  ;;  %v191_v40 = vld [vmem:[%s588_s17 + $0x158] sm:$0xff]  ;;  %v192_v41 = vld [vmem:[%s588_s17 + $0x160] sm:$0xff] }
  0x26   : > { %434 = vst [vmem:[%s615_s20 + $0xb0] sm:$0xff] %v370_v46  ;;  %v310_v57 = vadd.f32 %v592_v6, %v242_v49  ;;  %v246_v58 = vmul.f32 %v590_v5, %v178_v45  ;;  %v311_v59 = vadd.f32 %v592_v6, %v243_v52  ;;  %v312_v60 = vadd.f32 %v592_v6, %v244_v53  ;;  %v193_v42 = vld [vmem:[%s588_s17 + $0x168] sm:$0xff]  ;;  %v194_v47 = vld [vmem:[%s588_s17 + $0x170] sm:$0xff]  ;;  %v195_v52 = vld [vmem:[%s588_s17 + $0x178] sm:$0xff] }
  0x27   : > { %435 = vst [vmem:[%s615_s20 + $0xb8] sm:$0xff] %v371_v51  ;;  %v313_v61 = vadd.f32 %v592_v6, %v245_v54  ;;  %v247_v62 = vmul.f32 %v590_v5, %v179_v50  ;;  %v372_v2 = vmax.f32 %v308_v55, 0.0  ;;  %v373_v3 = vmax.f32 %v309_v56, 0.0 }
  0x28   : > { %v374_v4 = vmax.f32 %v310_v57, 0.0  ;;  %v314_v7 = vadd.f32 %v592_v6, %v246_v58  ;;  %v375_v11 = vmax.f32 %v311_v59, 0.0  ;;  %v376_v12 = vmax.f32 %v312_v60, 0.0 }
  0x29   : > { %v377_v13 = vmax.f32 %v313_v61, 0.0  ;;  %v315_v14 = vadd.f32 %v592_v6, %v247_v62  ;;  %436 = vst [vmem:[%s615_s20 + $0xc0] sm:$0xff] %v372_v2  ;;  %437 = vst [vmem:[%s615_s20 + $0xc8] sm:$0xff] %v373_v3  ;;  %v248_v17 = vmul.f32 %v590_v5, %v180_v63  ;;  %v249_v18 = vmul.f32 %v590_v5, %v181_v0  ;;  %v197_v2 = vld [vmem:[%s588_s17 + $0x188] sm:$0xff]  ;;  %v198_v3 = vld [vmem:[%s588_s17 + $0x190] sm:$0xff] }
  0x2a   : > { %438 = vst [vmem:[%s615_s20 + $0xd0] sm:$0xff] %v374_v4  ;;  %v378_v16 = vmax.f32 %v314_v7, 0.0  ;;  %v250_v19 = vmul.f32 %v590_v5, %v182_v1  ;;  %439 = vst [vmem:[%s615_s20 + $0xd8] sm:$0xff] %v375_v11  ;;  %v251_v22 = vmul.f32 %v590_v5, %v183_v8  ;;  %v252_v23 = vmul.f32 %v590_v5, %v184_v9  ;;  %v196_v1 = vld [vmem:[%s588_s17 + $0x180] sm:$0xff] }
  0x2b   : > { %440 = vst [vmem:[%s615_s20 + $0xe0] sm:$0xff] %v376_v12  ;;  %441 = vst [vmem:[%s615_s20 + $0xe8] sm:$0xff] %v377_v13  ;;  %v379_v21 = vmax.f32 %v315_v14, 0.0  ;;  %v253_v24 = vmul.f32 %v590_v5, %v185_v10  ;;  %v316_v25 = vadd.f32 %v592_v6, %v248_v17  ;;  %v317_v26 = vadd.f32 %v592_v6, %v249_v18  ;;  %v199_v10 = vld [vmem:[%s588_s17 + $0x198] sm:$0xff]  ;;  %v200_v11 = vld [vmem:[%s588_s17 + $0x1a0] sm:$0xff] }
  0x2c   : > { %442 = vst [vmem:[%s615_s20 + $0xf0] sm:$0xff] %v378_v16  ;;  %v318_v27 = vadd.f32 %v592_v6, %v250_v19  ;;  %v254_v28 = vmul.f32 %v590_v5, %v186_v15  ;;  %v319_v29 = vadd.f32 %v592_v6, %v251_v22  ;;  %v320_v30 = vadd.f32 %v592_v6, %v252_v23  ;;  %v201_v12 = vld [vmem:[%s588_s17 + $0x1a8] sm:$0xff]  ;;  %v202_v17 = vld [vmem:[%s588_s17 + $0x1b0] sm:$0xff]  ;;  %v203_v22 = vld [vmem:[%s588_s17 + $0x1b8] sm:$0xff] }
  0x2d   : > { %443 = vst [vmem:[%s615_s20 + $0xf8] sm:$0xff] %v379_v21  ;;  %v321_v31 = vadd.f32 %v592_v6, %v253_v24  ;;  %v255_v32 = vmul.f32 %v590_v5, %v187_v20  ;;  %v380_v36 = vmax.f32 %v316_v25, 0.0  ;;  %v381_v37 = vmax.f32 %v317_v26, 0.0 }
  0x2e   : > { %v382_v38 = vmax.f32 %v318_v27, 0.0  ;;  %v322_v39 = vadd.f32 %v592_v6, %v254_v28  ;;  %v383_v43 = vmax.f32 %v319_v29, 0.0  ;;  %v384_v44 = vmax.f32 %v320_v30, 0.0 }
  0x2f   : > { %v385_v45 = vmax.f32 %v321_v31, 0.0  ;;  %v323_v46 = vadd.f32 %v592_v6, %v255_v32  ;;  %444 = vst [vmem:[%s615_s20 + $0x100] sm:$0xff] %v380_v36  ;;  %445 = vst [vmem:[%s615_s20 + $0x108] sm:$0xff] %v381_v37  ;;  %v256_v49 = vmul.f32 %v590_v5, %v188_v33  ;;  %v257_v50 = vmul.f32 %v590_v5, %v189_v34  ;;  %v205_v36 = vld [vmem:[%s588_s17 + $0x1c8] sm:$0xff]  ;;  %v206_v37 = vld [vmem:[%s588_s17 + $0x1d0] sm:$0xff] }
  0x30   : > { %446 = vst [vmem:[%s615_s20 + $0x110] sm:$0xff] %v382_v38  ;;  %v386_v48 = vmax.f32 %v322_v39, 0.0  ;;  %v258_v51 = vmul.f32 %v590_v5, %v190_v35  ;;  %447 = vst [vmem:[%s615_s20 + $0x118] sm:$0xff] %v383_v43  ;;  %v259_v54 = vmul.f32 %v590_v5, %v191_v40  ;;  %v260_v55 = vmul.f32 %v590_v5, %v192_v41  ;;  %v204_v35 = vld [vmem:[%s588_s17 + $0x1c0] sm:$0xff] }
  0x31   : > { %448 = vst [vmem:[%s615_s20 + $0x120] sm:$0xff] %v384_v44  ;;  %449 = vst [vmem:[%s615_s20 + $0x128] sm:$0xff] %v385_v45  ;;  %v387_v53 = vmax.f32 %v323_v46, 0.0  ;;  %v261_v56 = vmul.f32 %v590_v5, %v193_v42  ;;  %v324_v57 = vadd.f32 %v592_v6, %v256_v49  ;;  %v325_v58 = vadd.f32 %v592_v6, %v257_v50  ;;  %v207_v42 = vld [vmem:[%s588_s17 + $0x1d8] sm:$0xff]  ;;  %v208_v43 = vld [vmem:[%s588_s17 + $0x1e0] sm:$0xff] }
  0x32   : > { %450 = vst [vmem:[%s615_s20 + $0x130] sm:$0xff] %v386_v48  ;;  %v326_v59 = vadd.f32 %v592_v6, %v258_v51  ;;  %v262_v60 = vmul.f32 %v590_v5, %v194_v47  ;;  %v327_v61 = vadd.f32 %v592_v6, %v259_v54  ;;  %v328_v62 = vadd.f32 %v592_v6, %v260_v55  ;;  %v209_v44 = vld [vmem:[%s588_s17 + $0x1e8] sm:$0xff]  ;;  %v210_v49 = vld [vmem:[%s588_s17 + $0x1f0] sm:$0xff]  ;;  %v211_v54 = vld [vmem:[%s588_s17 + $0x1f8] sm:$0xff] }
  0x33   : > { %451 = vst [vmem:[%s615_s20 + $0x138] sm:$0xff] %v387_v53  ;;  %v329_v63 = vadd.f32 %v592_v6, %v261_v56  ;;  %v263_v0 = vmul.f32 %v590_v5, %v195_v52  ;;  %v388_v4 = vmax.f32 %v324_v57, 0.0  ;;  %v389_v7 = vmax.f32 %v325_v58, 0.0 }
  0x34   : > { %v390_v8 = vmax.f32 %v326_v59, 0.0  ;;  %v330_v9 = vadd.f32 %v592_v6, %v262_v60  ;;  %v391_v13 = vmax.f32 %v327_v61, 0.0  ;;  %v392_v14 = vmax.f32 %v328_v62, 0.0 }
  0x35   : > { %v393_v15 = vmax.f32 %v329_v63, 0.0  ;;  %v331_v16 = vadd.f32 %v592_v6, %v263_v0  ;;  %452 = vst [vmem:[%s615_s20 + $0x140] sm:$0xff] %v388_v4  ;;  %453 = vst [vmem:[%s615_s20 + $0x148] sm:$0xff] %v389_v7  ;;  %v264_v19 = vmul.f32 %v590_v5, %v196_v1  ;;  %v265_v20 = vmul.f32 %v590_v5, %v197_v2 }
  0x36   : > { %454 = vst [vmem:[%s615_s20 + $0x150] sm:$0xff] %v390_v8  ;;  %v394_v18 = vmax.f32 %v330_v9, 0.0  ;;  %v266_v21 = vmul.f32 %v590_v5, %v198_v3  ;;  %455 = vst [vmem:[%s615_s20 + $0x158] sm:$0xff] %v391_v13  ;;  %v267_v24 = vmul.f32 %v590_v5, %v199_v10  ;;  %v268_v25 = vmul.f32 %v590_v5, %v200_v11 }
  0x37   : > { %456 = vst [vmem:[%s615_s20 + $0x160] sm:$0xff] %v392_v14  ;;  %457 = vst [vmem:[%s615_s20 + $0x168] sm:$0xff] %v393_v15  ;;  %v395_v23 = vmax.f32 %v331_v16, 0.0  ;;  %v269_v26 = vmul.f32 %v590_v5, %v201_v12  ;;  %v332_v27 = vadd.f32 %v592_v6, %v264_v19  ;;  %v333_v28 = vadd.f32 %v592_v6, %v265_v20 }
  0x38   : > { %458 = vst [vmem:[%s615_s20 + $0x170] sm:$0xff] %v394_v18  ;;  %v334_v29 = vadd.f32 %v592_v6, %v266_v21  ;;  %v270_v30 = vmul.f32 %v590_v5, %v202_v17  ;;  %v335_v31 = vadd.f32 %v592_v6, %v267_v24  ;;  %v336_v32 = vadd.f32 %v592_v6, %v268_v25 }
  0x39   : > { %459 = vst [vmem:[%s615_s20 + $0x178] sm:$0xff] %v395_v23  ;;  %v337_v33 = vadd.f32 %v592_v6, %v269_v26  ;;  %v271_v34 = vmul.f32 %v590_v5, %v203_v22  ;;  %v396_v38 = vmax.f32 %v332_v27, 0.0  ;;  %v397_v39 = vmax.f32 %v333_v28, 0.0 }
  0x3a   : > { %v398_v40 = vmax.f32 %v334_v29, 0.0  ;;  %v338_v41 = vadd.f32 %v592_v6, %v270_v30  ;;  %v399_v45 = vmax.f32 %v335_v31, 0.0  ;;  %v400_v46 = vmax.f32 %v336_v32, 0.0 }
  0x3b   : > { %v401_v47 = vmax.f32 %v337_v33, 0.0  ;;  %v339_v48 = vadd.f32 %v592_v6, %v271_v34  ;;  %460 = vst [vmem:[%s615_s20 + $0x180] sm:$0xff] %v396_v38  ;;  %461 = vst [vmem:[%s615_s20 + $0x188] sm:$0xff] %v397_v39  ;;  %v272_v51 = vmul.f32 %v590_v5, %v204_v35  ;;  %v273_v52 = vmul.f32 %v590_v5, %v205_v36 }
  0x3c   : > { %462 = vst [vmem:[%s615_s20 + $0x190] sm:$0xff] %v398_v40  ;;  %v402_v50 = vmax.f32 %v338_v41, 0.0  ;;  %v274_v53 = vmul.f32 %v590_v5, %v206_v37  ;;  %463 = vst [vmem:[%s615_s20 + $0x198] sm:$0xff] %v399_v45  ;;  %v275_v56 = vmul.f32 %v590_v5, %v207_v42  ;;  %v276_v57 = vmul.f32 %v590_v5, %v208_v43 }
  0x3d   : > { %464 = vst [vmem:[%s615_s20 + $0x1a0] sm:$0xff] %v400_v46  ;;  %465 = vst [vmem:[%s615_s20 + $0x1a8] sm:$0xff] %v401_v47  ;;  %v403_v55 = vmax.f32 %v339_v48, 0.0  ;;  %v277_v58 = vmul.f32 %v590_v5, %v209_v44  ;;  %v340_v59 = vadd.f32 %v592_v6, %v272_v51  ;;  %v341_v60 = vadd.f32 %v592_v6, %v273_v52 }
  0x3e   : > { %466 = vst [vmem:[%s615_s20 + $0x1b0] sm:$0xff] %v402_v50  ;;  %v342_v61 = vadd.f32 %v592_v6, %v274_v53  ;;  %v278_v62 = vmul.f32 %v590_v5, %v210_v49  ;;  %v343_v63 = vadd.f32 %v592_v6, %v275_v56  ;;  %v344_v0 = vadd.f32 %v592_v6, %v276_v57 }
  0x3f   : > { %467 = vst [vmem:[%s615_s20 + $0x1b8] sm:$0xff] %v403_v55  ;;  %v345_v1 = vadd.f32 %v592_v6, %v277_v58  ;;  %v279_v2 = vmul.f32 %v590_v5, %v211_v54  ;;  %v404_v3 = vmax.f32 %v340_v59, 0.0  ;;  %v405_v4 = vmax.f32 %v341_v60, 0.0 }
  0x40   : > { %v406_v7 = vmax.f32 %v342_v61, 0.0  ;;  %v346_v8 = vadd.f32 %v592_v6, %v278_v62  ;;  %v407_v9 = vmax.f32 %v343_v63, 0.0  ;;  %v408_v10 = vmax.f32 %v344_v0, 0.0 }
  0x41   : > { %v409_v11 = vmax.f32 %v345_v1, 0.0  ;;  %v347_v12 = vadd.f32 %v592_v6, %v279_v2  ;;  %468 = vst [vmem:[%s615_s20 + $0x1c0] sm:$0xff] %v404_v3  ;;  %469 = vst [vmem:[%s615_s20 + $0x1c8] sm:$0xff] %v405_v4 }
  0x42   : > { %470 = vst [vmem:[%s615_s20 + $0x1d0] sm:$0xff] %v406_v7  ;;  %v410_v13 = vmax.f32 %v346_v8, 0.0  ;;  %471 = vst [vmem:[%s615_s20 + $0x1d8] sm:$0xff] %v407_v9 }
  0x43   : > { %472 = vst [vmem:[%s615_s20 + $0x1e0] sm:$0xff] %v408_v10  ;;  %473 = vst [vmem:[%s615_s20 + $0x1e8] sm:$0xff] %v409_v11  ;;  %v411_v5 = vmax.f32 %v347_v12, 0.0 }
  0x44   : > { %474 = vst [vmem:[%s615_s20 + $0x1f0] sm:$0xff] %v410_v13 }
  0x45   : > { %475 = vst [vmem:[%s615_s20 + $0x1f8] sm:$0xff] %v411_v5 }
  0x46 PF: > { %s12_s9 = sadd.s32 1, %s557_s9  }
  0x47   : > { %p9_p4 = scmp.ge.s32.totalorder %s12_s9, 4  }
  0x49   :  { %11 = sbr.rel (!%p9_p4) target bundleno = 1 (0x1), region = 58 }

</bundles_post_ra>
